<compile_context>
chip_gen: v7x
topology: tpu7x:2x2x1
jax: 0.10.0
libtpu: 0.0.40
codegen_flags: <defaults>
</compile_context>

<pallas_src>
import math

import jax
import jax.numpy as jnp
from jax import lax
from jax.experimental import pallas as pl
from jax.experimental.pallas import tpu as pltpu

# ----- small synthetic configuration -----
B = 2        # batch
N = 16       # nodes (node 0 = depot)
F = 4        # raw node features (first 2 = xy coordinates)
A = 4        # number of agents
D = 32       # embed_dim
H = 4        # num_heads
HD = D // H  # head dim
FFH = 64     # feedforward hidden
L = 3        # num_encoder_layers
TANH_CLIP = 10.0
EPS = 1e-5
NEG_INF = -1e9
T_MAX = 2 * N        # decoding step budget
OUT_ROWS = 8         # padded sublane rows of the packed output tile
OUT_LANES = 128      # lane-dense output width (>= T_MAX)


# --------------------------------------------------------------------------
# Fused Pallas kernel: encoder + decoder cache + greedy multi-agent rollout
# (one grid step == one batch element)
# --------------------------------------------------------------------------
def parco_kernel(feats_ref, w_init_ref, b_init_ref, wqkv_ref, wo_ref,
                 n1s_ref, n1b_ref, w1_ref, b1_ref, w2_ref, b2_ref,
                 n2s_ref, n2b_ref, wcache_ref, dwq_ref, dwo_ref,
                 init_ref, out_ref):
    f32 = jnp.float32
    inv_shd = 1.0 / math.sqrt(HD)
    inv_sd = 1.0 / math.sqrt(D)

    # ---------------- hoisted constants (built once per batch) -------------
    def band_mask(rows_per_head):
        rows = H * rows_per_head
        rr = lax.broadcasted_iota(jnp.int32, (rows, D), 0)
        cc = lax.broadcasted_iota(jnp.int32, (rows, D), 1)
        m = jnp.zeros((rows, D), f32)
        for hh in range(H):
            in_r = jnp.logical_and(rr >= hh * rows_per_head,
                                   rr < (hh + 1) * rows_per_head)
            in_c = jnp.logical_and(cc >= hh * HD, cc < (hh + 1) * HD)
            m = m + jnp.logical_and(in_r, in_c).astype(f32)
        return m

    smask_enc = band_mask(N)                 # (H*N, D) head-band mask
    smask_dec = band_mask(A)                 # (H*A, D) head-band mask

    rrow = lax.broadcasted_iota(jnp.int32, (A, H * A), 0)
    rcol = lax.broadcasted_iota(jnp.int32, (A, H * A), 1)
    r_comb = jnp.zeros((A, H * A), f32)      # combines head row-blocks
    for hh in range(H):
        r_comb = r_comb + (rcol == hh * A + rrow).astype(f32)

    iota_1n = lax.broadcasted_iota(jnp.int32, (1, N), 1)
    nondepot = (iota_1n != 0).astype(f32)                       # (1, N)
    iota_an = lax.broadcasted_iota(jnp.int32, (A, N), 1).astype(f32)
    agent_row = lax.broadcasted_iota(jnp.int32, (A, N), 0).astype(f32)
    lane_t = lax.broadcasted_iota(jnp.int32, (A, OUT_LANES), 1)
    lane128 = lax.broadcasted_iota(jnp.int32, (1, OUT_LANES), 1)

    # ---------------- encoder ----------------------------------------------
    x = feats_ref[...]                                          # (N, F)
    h = jnp.dot(x, w_init_ref[...],
                preferred_element_type=f32) + b_init_ref[...]
    init_ref[...] = h

    def inorm(hh, scale, bias):
        # nn.InstanceNorm1d semantics: normalize over nodes of this batch.
        mean = jnp.mean(hh, axis=0, keepdims=True)
        var = jnp.mean((hh - mean) ** 2, axis=0, keepdims=True)
        return (hh - mean) * lax.rsqrt(var + EPS) * scale + bias

    for l in range(L):                                          # static layers
        # fused Q|K|V projection: one (N, D) x (D, 3D) matmul
        qkv = jnp.dot(h, wqkv_ref[l], preferred_element_type=f32)
        q = qkv[:, 0:D] * inv_shd
        k = qkv[:, D:2 * D]
        v = qkv[:, 2 * D:3 * D]
        # heads stacked along sublanes -> one score matmul, one AV matmul
        qbig = jnp.concatenate([q] * H, axis=0) * smask_enc     # (H*N, D)
        s = lax.dot_general(qbig, k, (((1,), (1,)), ((), ())),
                            preferred_element_type=f32)         # (H*N, N)
        s = s - jnp.max(s, axis=-1, keepdims=True)
        e = jnp.exp(s)
        a = e * pl.reciprocal(jnp.sum(e, axis=-1, keepdims=True), approx=True)
        of = jnp.dot(a, v, preferred_element_type=f32) * smask_enc
        ho = of[0:N, :]
        for hh in range(1, H):
            ho = ho + of[hh * N:(hh + 1) * N, :]                # (N, D)
        mha = jnp.dot(ho, wo_ref[l], preferred_element_type=f32)
        # AM-style post-norm residual blocks (norm_after=False default)
        h = inorm(h + mha, n1s_ref[l:l + 1, :], n1b_ref[l:l + 1, :])
        ff = jnp.maximum(
            jnp.dot(h, w1_ref[l], preferred_element_type=f32)
            + b1_ref[l:l + 1, :], 0.0)
        ff = jnp.dot(ff, w2_ref[l],
                     preferred_element_type=f32) + b2_ref[l:l + 1, :]
        h = inorm(h + ff, n2s_ref[l:l + 1, :], n2b_ref[l:l + 1, :])

    # ---------------- decoder pre_decoder_hook cache (values, no HBM) ------
    kvl = jnp.dot(h, wcache_ref[...], preferred_element_type=f32)  # (N, 3D)
    gk = kvl[:, 0:D]           # glimpse K
    gv = kvl[:, D:2 * D]       # glimpse V
    lk = kvl[:, 2 * D:3 * D]   # logit K
    wq = dwq_ref[...]
    wo_d = dwo_ref[...]
    # pre-projected graph-context query (mean over nodes @ Wq)
    gq = jnp.dot(jnp.mean(h, axis=0, keepdims=True), wq,
                 preferred_element_type=f32)                    # (1, D)

    # ---------------- greedy multi-agent rollout (state in vregs) ----------
    vis0 = jnp.zeros((1, N), f32)                               # visited
    cur0 = (iota_an == 0.0).astype(f32)                         # agents @ depot
    zero11 = jnp.zeros((1, 1), f32)
    acts0 = jnp.zeros((A, OUT_LANES), f32)                      # per-agent acts

    def step(t, carry):
        vis, cur, slp, rep, stp, acts = carry
        unf = jnp.max((1.0 - vis) * nondepot, axis=-1, keepdims=True)  # (1,1)
        allow = jnp.where(iota_1n == 0, 1.0, 1.0 - vis)         # depot open

        # multi-agent context query (graph context already projected by Wq)
        cur_emb = jnp.dot(cur, h, preferred_element_type=f32)   # (A, D)
        q = jnp.dot(cur_emb, wq, preferred_element_type=f32) + gq

        # head-fused masked glimpse attention (heads stacked along sublanes)
        qbig = jnp.concatenate([q * inv_shd] * H, axis=0) * smask_dec
        s = lax.dot_general(qbig, gk, (((1,), (1,)), ((), ())),
                            preferred_element_type=f32)         # (H*A, N)
        s = jnp.where(allow > 0.5, s, NEG_INF)
        s = s - jnp.max(s, axis=-1, keepdims=True)
        e = jnp.exp(s)
        a = e * pl.reciprocal(jnp.sum(e, axis=-1, keepdims=True), approx=True)
        of = jnp.dot(a, gv, preferred_element_type=f32) * smask_dec
        ho = jnp.dot(r_comb, of, preferred_element_type=f32)    # (A, D)
        glimpse = jnp.dot(ho, wo_d, preferred_element_type=f32)

        # tanh-clipped pointer logits + masked log-softmax
        logits = lax.dot_general(glimpse, lk, (((1,), (1,)), ((), ())),
                                 preferred_element_type=f32) * inv_sd
        logits = TANH_CLIP * jnp.tanh(logits)
        logits = jnp.where(allow > 0.5, logits, NEG_INF)
        mx = jnp.max(logits, axis=-1, keepdims=True)
        lse = jnp.log(jnp.sum(jnp.exp(logits - mx), axis=-1,
                              keepdims=True)) + mx
        logp = logits - lse                                     # (A, N)

        # greedy action per agent (first argmax) as one-hot rows
        chosen_lp = jnp.max(logp, axis=-1, keepdims=True)       # (A, 1)
        first = jnp.min(jnp.where(logp >= chosen_lp, iota_an, float(N)),
                        axis=-1, keepdims=True)
        act0 = (iota_an == first).astype(f32)                   # (A, N)

        # vectorized 'highprob' conflict handler: per-node winner = max logp,
        # ties -> lowest agent index; losers fall back to current node.
        masked_lp = jnp.where(act0 > 0.5, chosen_lp, NEG_INF)   # (A, N)
        win_lp = jnp.max(masked_lp, axis=0, keepdims=True)      # (1, N)
        cand = jnp.logical_and(act0 > 0.5, masked_lp >= win_lp)
        cand_idx = jnp.where(cand, agent_row, float(A))
        win_idx = jnp.min(cand_idx, axis=0, keepdims=True)      # (1, N)
        winmask = jnp.where(iota_1n == 0, 1.0,
                            (win_idx == agent_row).astype(f32)) # (A, N)
        keep = jnp.sum(act0 * winmask, axis=-1, keepdims=True)  # (A, 1) in {0,1}
        act = jnp.where(keep > 0.5, act0, cur)                  # (A, N)

        # state / accumulator updates (depot never marked visited)
        rep = rep + jnp.sum(1.0 - keep, axis=0, keepdims=True)
        new_visit = jnp.max(act, axis=0, keepdims=True)
        vis = jnp.where(iota_1n == 0, 0.0, jnp.maximum(vis, new_visit))
        # use_init_logp=True; stop accumulating once this batch is done
        slp = slp + unf * jnp.sum(chosen_lp, axis=0, keepdims=True)
        stp = stp + unf
        act_idx = jnp.sum(act * iota_an, axis=-1, keepdims=True)  # (A, 1)
        acts = jnp.where(lane_t == t, act_idx, acts)
        return (vis, act, slp, rep, stp, acts)

    _, _, slp, rep, stp, acts = lax.fori_loop(
        0, T_MAX, step, (vis0, cur0, zero11, zero11, zero11, acts0))

    # pack actions + stats into one lane-dense (8, 128) tile, single store:
    #   rows 0..A-1 : per-agent chosen node per step (lanes 0..T_MAX-1)
    #   row  A      : lane0 = sum_logp, lane1 = replaced, lane2 = steps
    stats_row = jnp.where(lane128 == 0, slp,
                          jnp.where(lane128 == 1, rep,
                                    jnp.where(lane128 == 2, stp, 0.0)))
    bottom = jnp.concatenate(
        [stats_row, jnp.zeros((OUT_ROWS - A - 1, OUT_LANES), f32)], axis=0)
    out_ref[...] = jnp.concatenate([acts, bottom], axis=0)


# --------------------------------------------------------------------------
# pallas_call wrapper: one launch, grid over the batch
# --------------------------------------------------------------------------
def _rep_spec(shape):
    nd = len(shape)
    return pl.BlockSpec(shape, lambda b, _nd=nd: (0,) * _nd)


@jax.jit
def parco_forward(feats2, p):
    ins = [feats2, p["w_init"], p["b_init"], p["wqkv"], p["wo"],
           p["n1s"], p["n1b"], p["w1"], p["b1"], p["w2"], p["b2"],
           p["n2s"], p["n2b"], p["w_cache"], p["dec_wq"], p["dec_wo"]]
    in_specs = [pl.BlockSpec((N, F), lambda b: (b, 0))]          # per-batch feats
    in_specs += [_rep_spec(a.shape) for a in ins[1:]]            # replicated weights
    out_shape = (jax.ShapeDtypeStruct((B * N, D), jnp.float32),          # init embeds
                 jax.ShapeDtypeStruct((B * OUT_ROWS, OUT_LANES), jnp.float32))
    out_specs = (pl.BlockSpec((N, D), lambda b: (b, 0)),
                 pl.BlockSpec((OUT_ROWS, OUT_LANES), lambda b: (b, 0)))
    return pl.pallas_call(
        parco_kernel, grid=(B,),
        in_specs=in_specs, out_specs=out_specs, out_shape=out_shape,
        compiler_params=pltpu.CompilerParams(
            dimension_semantics=("parallel",)),
    )(*ins)


# --------------------------------------------------------------------------
# deterministic synthetic parameters
# --------------------------------------------------------------------------
def init_params(key):
    ks = jax.random.split(key, 8)
    s = 0.1
    p = {
        "w_init": jax.random.normal(ks[0], (F, D)) * s,
        "b_init": jnp.zeros((1, D)),
        "wqkv": jax.random.normal(ks[1], (L, D, 3 * D)) * s,    # fused Q|K|V
        "wo": jax.random.normal(ks[2], (L, D, D)) * s,
        "n1s": jnp.ones((L, D)), "n1b": jnp.zeros((L, D)),
        "w1": jax.random.normal(ks[3], (L, D, FFH)) * s,
        "b1": jnp.zeros((L, FFH)),
        "w2": jax.random.normal(ks[4], (L, FFH, D)) * s,
        "b2": jnp.zeros((L, D)),
        "n2s": jnp.ones((L, D)), "n2b": jnp.zeros((L, D)),
        "w_cache": jax.random.normal(ks[5], (D, 3 * D)) * s,    # fused K|V|logitK
        "dec_wq": jax.random.normal(ks[6], (D, D)) * s,
        "dec_wo": jax.random.normal(ks[7], (D, D)) * s,
    }
    return jax.tree_util.tree_map(lambda x: x.astype(jnp.float32), p)


# --------------------------------------------------------------------------
# JAX glue: reward = -total tour length (simplified routing env)
# --------------------------------------------------------------------------
@jax.jit
def tour_reward(actions, locs):
    oh = jax.nn.one_hot(actions, N, dtype=jnp.float32)           # (B, A, T, N)
    step_locs = jnp.einsum("batn,bnc->batc", oh, locs)           # (B, A, T, 2)
    depot = jnp.broadcast_to(locs[:, 0, :][:, None, None, :], (B, A, 1, 2))
    path = jnp.concatenate([depot, step_locs], axis=2)           # (B, A, T+1, 2)
    seg = jnp.linalg.norm(path[:, :, 1:, :] - path[:, :, :-1, :], axis=-1)
    back = jnp.linalg.norm(depot[:, :, 0, :] - step_locs[:, :, -1, :], axis=-1)
    return -jnp.sum(jnp.sum(seg, axis=-1) + back, axis=-1)       # (B,)


if __name__ == "__main__":
    key = jax.random.PRNGKey(0)
    kf, kp = jax.random.split(key)
    node_feats = jax.random.uniform(kf, (B, N, F), dtype=jnp.float32)
    params = init_params(kp)

    # encoder + cache + full greedy rollout in ONE Pallas launch
    init2, packed = parco_forward(node_feats.reshape(B * N, F), params)

    packed = packed.reshape(B, OUT_ROWS, OUT_LANES)
    actions = packed[:, :A, :T_MAX].astype(jnp.int32)            # (B, A, T_MAX)
    sum_logp = packed[:, A, 0]                                   # (B,)
    replaced = jnp.sum(packed[:, A, 1])
    steps = jnp.max(packed[:, A, 2])
    halting_ratio = replaced / jnp.maximum(B * A * steps, 1.0)
    reward = tour_reward(actions, node_feats[..., :2])

    outdict = {
        "reward": reward,                        # (B,)
        "log_likelihood": sum_logp,              # (B,)
        "halting_ratio": halting_ratio,
        "actions": actions,                      # (B, A, T_MAX), depot-padded
        "init_embeds": init2.reshape(B, N, D),   # (B, N, D)
        "steps": steps,
    }
    jax.block_until_ready(outdict)
    print("KERNEL_OK")
</pallas_src>

<mosaic_0001>
module attributes {stable_mosaic.version = 11 : i64} {
  func.func @parco_kernel(%arg0: i32, %arg1: memref<16x4xf32, #tpu.memory_space<vmem>>, %arg2: memref<4x32xf32, #tpu.memory_space<vmem>>, %arg3: memref<1x32xf32, #tpu.memory_space<vmem>>, %arg4: memref<3x32x96xf32, #tpu.memory_space<vmem>>, %arg5: memref<3x32x32xf32, #tpu.memory_space<vmem>>, %arg6: memref<3x32xf32, #tpu.memory_space<vmem>>, %arg7: memref<3x32xf32, #tpu.memory_space<vmem>>, %arg8: memref<3x32x64xf32, #tpu.memory_space<vmem>>, %arg9: memref<3x64xf32, #tpu.memory_space<vmem>>, %arg10: memref<3x64x32xf32, #tpu.memory_space<vmem>>, %arg11: memref<3x32xf32, #tpu.memory_space<vmem>>, %arg12: memref<3x32xf32, #tpu.memory_space<vmem>>, %arg13: memref<3x32xf32, #tpu.memory_space<vmem>>, %arg14: memref<32x96xf32, #tpu.memory_space<vmem>>, %arg15: memref<32x32xf32, #tpu.memory_space<vmem>>, %arg16: memref<32x32xf32, #tpu.memory_space<vmem>>, %arg17: memref<16x32xf32, #tpu.memory_space<vmem>>, %arg18: memref<8x128xf32, #tpu.memory_space<vmem>>) attributes {dimension_semantics = [#tpu.dimension_semantics<parallel>], iteration_bounds = array<i64: 2>, scalar_prefetch = 0 : i64, scratch_operands = 0 : i64, tpu.core_type = #tpu.core_type<tc>, window_params = [{transform_indices = @transform_0, window_bounds = array<i64: 16, 4>}, {pipeline_mode = #tpu.pipeline_mode<synchronous>, transform_indices = @transform_1, window_bounds = array<i64: 4, 32>}, {pipeline_mode = #tpu.pipeline_mode<synchronous>, transform_indices = @transform_2, window_bounds = array<i64: 1, 32>}, {pipeline_mode = #tpu.pipeline_mode<synchronous>, transform_indices = @transform_3, window_bounds = array<i64: 3, 32, 96>}, {pipeline_mode = #tpu.pipeline_mode<synchronous>, transform_indices = @transform_4, window_bounds = array<i64: 3, 32, 32>}, {pipeline_mode = #tpu.pipeline_mode<synchronous>, transform_indices = @transform_5, window_bounds = array<i64: 3, 32>}, {pipeline_mode = #tpu.pipeline_mode<synchronous>, transform_indices = @transform_6, window_bounds = array<i64: 3, 32>}, {pipeline_mode = #tpu.pipeline_mode<synchronous>, transform_indices = @transform_7, window_bounds = array<i64: 3, 32, 64>}, {pipeline_mode = #tpu.pipeline_mode<synchronous>, transform_indices = @transform_8, window_bounds = array<i64: 3, 64>}, {pipeline_mode = #tpu.pipeline_mode<synchronous>, transform_indices = @transform_9, window_bounds = array<i64: 3, 64, 32>}, {pipeline_mode = #tpu.pipeline_mode<synchronous>, transform_indices = @transform_10, window_bounds = array<i64: 3, 32>}, {pipeline_mode = #tpu.pipeline_mode<synchronous>, transform_indices = @transform_11, window_bounds = array<i64: 3, 32>}, {pipeline_mode = #tpu.pipeline_mode<synchronous>, transform_indices = @transform_12, window_bounds = array<i64: 3, 32>}, {pipeline_mode = #tpu.pipeline_mode<synchronous>, transform_indices = @transform_13, window_bounds = array<i64: 32, 96>}, {pipeline_mode = #tpu.pipeline_mode<synchronous>, transform_indices = @transform_14, window_bounds = array<i64: 32, 32>}, {pipeline_mode = #tpu.pipeline_mode<synchronous>, transform_indices = @transform_15, window_bounds = array<i64: 32, 32>}, {transform_indices = @transform_16, window_bounds = array<i64: 16, 32>}, {transform_indices = @transform_17, window_bounds = array<i64: 8, 128>}]} {
    %0 = tpu.iota {dimensions = array<i32: 0>} : vector<64x32xi32>
    %1 = tpu.iota {dimensions = array<i32: 1>} : vector<64x32xi32>
    %cst = arith.constant 0.000000e+00 : f32
    %2 = vector.broadcast %cst : f32 to vector<64x32xf32>
    %c0_i32 = arith.constant 0 : i32
    %3 = vector.broadcast %c0_i32 : i32 to vector<64x32xi32>
    %4 = arith.cmpi sge, %0, %3 : vector<64x32xi32>
    %c16_i32 = arith.constant 16 : i32
    %5 = vector.broadcast %c16_i32 : i32 to vector<64x32xi32>
    %6 = arith.cmpi slt, %0, %5 : vector<64x32xi32>
    %7 = arith.andi %4, %6 : vector<64x32xi1>
    %c0_i32_0 = arith.constant 0 : i32
    %8 = vector.broadcast %c0_i32_0 : i32 to vector<64x32xi32>
    %9 = arith.cmpi sge, %1, %8 : vector<64x32xi32>
    %c8_i32 = arith.constant 8 : i32
    %10 = vector.broadcast %c8_i32 : i32 to vector<64x32xi32>
    %11 = arith.cmpi slt, %1, %10 : vector<64x32xi32>
    %12 = arith.andi %9, %11 : vector<64x32xi1>
    %13 = arith.andi %7, %12 : vector<64x32xi1>
    %14 = arith.extui %13 : vector<64x32xi1> to vector<64x32xi32>
    %15 = arith.sitofp %14 : vector<64x32xi32> to vector<64x32xf32>
    %16 = arith.addf %2, %15 : vector<64x32xf32>
    %c16_i32_1 = arith.constant 16 : i32
    %17 = vector.broadcast %c16_i32_1 : i32 to vector<64x32xi32>
    %18 = arith.cmpi sge, %0, %17 : vector<64x32xi32>
    %c32_i32 = arith.constant 32 : i32
    %19 = vector.broadcast %c32_i32 : i32 to vector<64x32xi32>
    %20 = arith.cmpi slt, %0, %19 : vector<64x32xi32>
    %21 = arith.andi %18, %20 : vector<64x32xi1>
    %c8_i32_2 = arith.constant 8 : i32
    %22 = vector.broadcast %c8_i32_2 : i32 to vector<64x32xi32>
    %23 = arith.cmpi sge, %1, %22 : vector<64x32xi32>
    %c16_i32_3 = arith.constant 16 : i32
    %24 = vector.broadcast %c16_i32_3 : i32 to vector<64x32xi32>
    %25 = arith.cmpi slt, %1, %24 : vector<64x32xi32>
    %26 = arith.andi %23, %25 : vector<64x32xi1>
    %27 = arith.andi %21, %26 : vector<64x32xi1>
    %28 = arith.extui %27 : vector<64x32xi1> to vector<64x32xi32>
    %29 = arith.sitofp %28 : vector<64x32xi32> to vector<64x32xf32>
    %30 = arith.addf %16, %29 : vector<64x32xf32>
    %c32_i32_4 = arith.constant 32 : i32
    %31 = vector.broadcast %c32_i32_4 : i32 to vector<64x32xi32>
    %32 = arith.cmpi sge, %0, %31 : vector<64x32xi32>
    %c48_i32 = arith.constant 48 : i32
    %33 = vector.broadcast %c48_i32 : i32 to vector<64x32xi32>
    %34 = arith.cmpi slt, %0, %33 : vector<64x32xi32>
    %35 = arith.andi %32, %34 : vector<64x32xi1>
    %c16_i32_5 = arith.constant 16 : i32
    %36 = vector.broadcast %c16_i32_5 : i32 to vector<64x32xi32>
    %37 = arith.cmpi sge, %1, %36 : vector<64x32xi32>
    %c24_i32 = arith.constant 24 : i32
    %38 = vector.broadcast %c24_i32 : i32 to vector<64x32xi32>
    %39 = arith.cmpi slt, %1, %38 : vector<64x32xi32>
    %40 = arith.andi %37, %39 : vector<64x32xi1>
    %41 = arith.andi %35, %40 : vector<64x32xi1>
    %42 = arith.extui %41 : vector<64x32xi1> to vector<64x32xi32>
    %43 = arith.sitofp %42 : vector<64x32xi32> to vector<64x32xf32>
    %44 = arith.addf %30, %43 : vector<64x32xf32>
    %c48_i32_6 = arith.constant 48 : i32
    %45 = vector.broadcast %c48_i32_6 : i32 to vector<64x32xi32>
    %46 = arith.cmpi sge, %0, %45 : vector<64x32xi32>
    %c64_i32 = arith.constant 64 : i32
    %47 = vector.broadcast %c64_i32 : i32 to vector<64x32xi32>
    %48 = arith.cmpi slt, %0, %47 : vector<64x32xi32>
    %49 = arith.andi %46, %48 : vector<64x32xi1>
    %c24_i32_7 = arith.constant 24 : i32
    %50 = vector.broadcast %c24_i32_7 : i32 to vector<64x32xi32>
    %51 = arith.cmpi sge, %1, %50 : vector<64x32xi32>
    %c32_i32_8 = arith.constant 32 : i32
    %52 = vector.broadcast %c32_i32_8 : i32 to vector<64x32xi32>
    %53 = arith.cmpi slt, %1, %52 : vector<64x32xi32>
    %54 = arith.andi %51, %53 : vector<64x32xi1>
    %55 = arith.andi %49, %54 : vector<64x32xi1>
    %56 = arith.extui %55 : vector<64x32xi1> to vector<64x32xi32>
    %57 = arith.sitofp %56 : vector<64x32xi32> to vector<64x32xf32>
    %58 = arith.addf %44, %57 : vector<64x32xf32>
    %59 = tpu.iota {dimensions = array<i32: 0>} : vector<16x32xi32>
    %60 = tpu.iota {dimensions = array<i32: 1>} : vector<16x32xi32>
    %cst_9 = arith.constant 0.000000e+00 : f32
    %61 = vector.broadcast %cst_9 : f32 to vector<16x32xf32>
    %c0_i32_10 = arith.constant 0 : i32
    %62 = vector.broadcast %c0_i32_10 : i32 to vector<16x32xi32>
    %63 = arith.cmpi sge, %59, %62 : vector<16x32xi32>
    %c4_i32 = arith.constant 4 : i32
    %64 = vector.broadcast %c4_i32 : i32 to vector<16x32xi32>
    %65 = arith.cmpi slt, %59, %64 : vector<16x32xi32>
    %66 = arith.andi %63, %65 : vector<16x32xi1>
    %c0_i32_11 = arith.constant 0 : i32
    %67 = vector.broadcast %c0_i32_11 : i32 to vector<16x32xi32>
    %68 = arith.cmpi sge, %60, %67 : vector<16x32xi32>
    %c8_i32_12 = arith.constant 8 : i32
    %69 = vector.broadcast %c8_i32_12 : i32 to vector<16x32xi32>
    %70 = arith.cmpi slt, %60, %69 : vector<16x32xi32>
    %71 = arith.andi %68, %70 : vector<16x32xi1>
    %72 = arith.andi %66, %71 : vector<16x32xi1>
    %73 = arith.extui %72 : vector<16x32xi1> to vector<16x32xi32>
    %74 = arith.sitofp %73 : vector<16x32xi32> to vector<16x32xf32>
    %75 = arith.addf %61, %74 : vector<16x32xf32>
    %c4_i32_13 = arith.constant 4 : i32
    %76 = vector.broadcast %c4_i32_13 : i32 to vector<16x32xi32>
    %77 = arith.cmpi sge, %59, %76 : vector<16x32xi32>
    %c8_i32_14 = arith.constant 8 : i32
    %78 = vector.broadcast %c8_i32_14 : i32 to vector<16x32xi32>
    %79 = arith.cmpi slt, %59, %78 : vector<16x32xi32>
    %80 = arith.andi %77, %79 : vector<16x32xi1>
    %c8_i32_15 = arith.constant 8 : i32
    %81 = vector.broadcast %c8_i32_15 : i32 to vector<16x32xi32>
    %82 = arith.cmpi sge, %60, %81 : vector<16x32xi32>
    %c16_i32_16 = arith.constant 16 : i32
    %83 = vector.broadcast %c16_i32_16 : i32 to vector<16x32xi32>
    %84 = arith.cmpi slt, %60, %83 : vector<16x32xi32>
    %85 = arith.andi %82, %84 : vector<16x32xi1>
    %86 = arith.andi %80, %85 : vector<16x32xi1>
    %87 = arith.extui %86 : vector<16x32xi1> to vector<16x32xi32>
    %88 = arith.sitofp %87 : vector<16x32xi32> to vector<16x32xf32>
    %89 = arith.addf %75, %88 : vector<16x32xf32>
    %c8_i32_17 = arith.constant 8 : i32
    %90 = vector.broadcast %c8_i32_17 : i32 to vector<16x32xi32>
    %91 = arith.cmpi sge, %59, %90 : vector<16x32xi32>
    %c12_i32 = arith.constant 12 : i32
    %92 = vector.broadcast %c12_i32 : i32 to vector<16x32xi32>
    %93 = arith.cmpi slt, %59, %92 : vector<16x32xi32>
    %94 = arith.andi %91, %93 : vector<16x32xi1>
    %c16_i32_18 = arith.constant 16 : i32
    %95 = vector.broadcast %c16_i32_18 : i32 to vector<16x32xi32>
    %96 = arith.cmpi sge, %60, %95 : vector<16x32xi32>
    %c24_i32_19 = arith.constant 24 : i32
    %97 = vector.broadcast %c24_i32_19 : i32 to vector<16x32xi32>
    %98 = arith.cmpi slt, %60, %97 : vector<16x32xi32>
    %99 = arith.andi %96, %98 : vector<16x32xi1>
    %100 = arith.andi %94, %99 : vector<16x32xi1>
    %101 = arith.extui %100 : vector<16x32xi1> to vector<16x32xi32>
    %102 = arith.sitofp %101 : vector<16x32xi32> to vector<16x32xf32>
    %103 = arith.addf %89, %102 : vector<16x32xf32>
    %c12_i32_20 = arith.constant 12 : i32
    %104 = vector.broadcast %c12_i32_20 : i32 to vector<16x32xi32>
    %105 = arith.cmpi sge, %59, %104 : vector<16x32xi32>
    %c16_i32_21 = arith.constant 16 : i32
    %106 = vector.broadcast %c16_i32_21 : i32 to vector<16x32xi32>
    %107 = arith.cmpi slt, %59, %106 : vector<16x32xi32>
    %108 = arith.andi %105, %107 : vector<16x32xi1>
    %c24_i32_22 = arith.constant 24 : i32
    %109 = vector.broadcast %c24_i32_22 : i32 to vector<16x32xi32>
    %110 = arith.cmpi sge, %60, %109 : vector<16x32xi32>
    %c32_i32_23 = arith.constant 32 : i32
    %111 = vector.broadcast %c32_i32_23 : i32 to vector<16x32xi32>
    %112 = arith.cmpi slt, %60, %111 : vector<16x32xi32>
    %113 = arith.andi %110, %112 : vector<16x32xi1>
    %114 = arith.andi %108, %113 : vector<16x32xi1>
    %115 = arith.extui %114 : vector<16x32xi1> to vector<16x32xi32>
    %116 = arith.sitofp %115 : vector<16x32xi32> to vector<16x32xf32>
    %117 = arith.addf %103, %116 : vector<16x32xf32>
    %118 = tpu.iota {dimensions = array<i32: 0>} : vector<4x16xi32>
    %119 = tpu.iota {dimensions = array<i32: 1>} : vector<4x16xi32>
    %cst_24 = arith.constant 0.000000e+00 : f32
    %120 = vector.broadcast %cst_24 : f32 to vector<4x16xf32>
    %c0_i32_25 = arith.constant 0 : i32
    %121 = vector.broadcast %c0_i32_25 : i32 to vector<4x16xi32>
    %122 = arith.addi %121, %118 : vector<4x16xi32>
    %123 = arith.cmpi eq, %119, %122 : vector<4x16xi32>
    %124 = arith.extui %123 : vector<4x16xi1> to vector<4x16xi32>
    %125 = arith.sitofp %124 : vector<4x16xi32> to vector<4x16xf32>
    %126 = arith.addf %120, %125 : vector<4x16xf32>
    %c4_i32_26 = arith.constant 4 : i32
    %127 = vector.broadcast %c4_i32_26 : i32 to vector<4x16xi32>
    %128 = arith.addi %127, %118 : vector<4x16xi32>
    %129 = arith.cmpi eq, %119, %128 : vector<4x16xi32>
    %130 = arith.extui %129 : vector<4x16xi1> to vector<4x16xi32>
    %131 = arith.sitofp %130 : vector<4x16xi32> to vector<4x16xf32>
    %132 = arith.addf %126, %131 : vector<4x16xf32>
    %c8_i32_27 = arith.constant 8 : i32
    %133 = vector.broadcast %c8_i32_27 : i32 to vector<4x16xi32>
    %134 = arith.addi %133, %118 : vector<4x16xi32>
    %135 = arith.cmpi eq, %119, %134 : vector<4x16xi32>
    %136 = arith.extui %135 : vector<4x16xi1> to vector<4x16xi32>
    %137 = arith.sitofp %136 : vector<4x16xi32> to vector<4x16xf32>
    %138 = arith.addf %132, %137 : vector<4x16xf32>
    %c12_i32_28 = arith.constant 12 : i32
    %139 = vector.broadcast %c12_i32_28 : i32 to vector<4x16xi32>
    %140 = arith.addi %139, %118 : vector<4x16xi32>
    %141 = arith.cmpi eq, %119, %140 : vector<4x16xi32>
    %142 = arith.extui %141 : vector<4x16xi1> to vector<4x16xi32>
    %143 = arith.sitofp %142 : vector<4x16xi32> to vector<4x16xf32>
    %144 = arith.addf %138, %143 : vector<4x16xf32>
    %145 = tpu.iota {dimensions = array<i32: 1>} : vector<1x16xi32>
    %c0_i32_29 = arith.constant 0 : i32
    %146 = vector.broadcast %c0_i32_29 : i32 to vector<1x16xi32>
    %147 = arith.cmpi ne, %145, %146 : vector<1x16xi32>
    %148 = arith.extui %147 : vector<1x16xi1> to vector<1x16xi32>
    %149 = arith.sitofp %148 : vector<1x16xi32> to vector<1x16xf32>
    %150 = tpu.iota {dimensions = array<i32: 1>} : vector<4x16xi32>
    %151 = arith.sitofp %150 : vector<4x16xi32> to vector<4x16xf32>
    %152 = tpu.iota {dimensions = array<i32: 0>} : vector<4x16xi32>
    %153 = arith.sitofp %152 : vector<4x16xi32> to vector<4x16xf32>
    %154 = tpu.iota {dimensions = array<i32: 1>} : vector<4x128xi32>
    %155 = tpu.iota {dimensions = array<i32: 1>} : vector<1x128xi32>
    %c0 = arith.constant 0 : index
    %c0_30 = arith.constant 0 : index
    %156 = vector.load %arg1[%c0, %c0_30] : memref<16x4xf32, #tpu.memory_space<vmem>>, vector<16x4xf32>
    %c0_31 = arith.constant 0 : index
    %c0_32 = arith.constant 0 : index
    %157 = vector.load %arg2[%c0_31, %c0_32] : memref<4x32xf32, #tpu.memory_space<vmem>>, vector<4x32xf32>
    %cst_33 = arith.constant dense<0.000000e+00> : vector<16x32xf32>
    %158 = tpu.matmul %156, %157, %cst_33 {dimension_numbers = #tpu.dot_dimension_numbers<[1], [0], [0], [1], [0, 0, 1, 1], [], []>} : vector<16x4xf32>, vector<4x32xf32>, vector<16x32xf32> -> vector<16x32xf32>
    %c0_34 = arith.constant 0 : index
    %c0_35 = arith.constant 0 : index
    %159 = vector.load %arg3[%c0_34, %c0_35] : memref<1x32xf32, #tpu.memory_space<vmem>>, vector<1x32xf32>
    %160 = vector.broadcast %159 : vector<1x32xf32> to vector<16x32xf32>
    %161 = arith.addf %158, %160 : vector<16x32xf32>
    %c0_36 = arith.constant 0 : index
    %c0_37 = arith.constant 0 : index
    %162 = vector.load %arg17[%c0_36, %c0_37] : memref<16x32xf32, #tpu.memory_space<vmem>>, vector<16x32xf32>
    tpu.vector_store %arg17[%c0_36, %c0_37], %161 {strides = array<i32>} : memref<16x32xf32, #tpu.memory_space<vmem>>, vector<16x32xf32>,
    %c0_38 = arith.constant 0 : index
    %c0_39 = arith.constant 0 : index
    %c0_40 = arith.constant 0 : index
    %163 = vector.load %arg4[%c0_38, %c0_39, %c0_40] : memref<3x32x96xf32, #tpu.memory_space<vmem>>, vector<1x32x96xf32>
    %164 = vector.shape_cast %163 : vector<1x32x96xf32> to vector<32x96xf32>
    %cst_41 = arith.constant dense<0.000000e+00> : vector<16x96xf32>
    %165 = tpu.matmul %161, %164, %cst_41 {dimension_numbers = #tpu.dot_dimension_numbers<[1], [0], [0], [1], [0, 0, 1, 1], [], []>} : vector<16x32xf32>, vector<32x96xf32>, vector<16x96xf32> -> vector<16x96xf32>
    %166 = vector.extract_strided_slice %165 {offsets = [0, 0], sizes = [16, 32], strides = [1, 1]} : vector<16x96xf32> to vector<16x32xf32>
    %cst_42 = arith.constant 0.353553385 : f32
    %167 = vector.broadcast %cst_42 : f32 to vector<16x32xf32>
    %168 = arith.mulf %166, %167 : vector<16x32xf32>
    %169 = vector.extract_strided_slice %165 {offsets = [0, 32], sizes = [16, 32], strides = [1, 1]} : vector<16x96xf32> to vector<16x32xf32>
    %170 = vector.extract_strided_slice %165 {offsets = [0, 64], sizes = [16, 32], strides = [1, 1]} : vector<16x96xf32> to vector<16x32xf32>
    %171 = tpu.concatenate %168, %168, %168, %168 in 0 : vector<16x32xf32>, vector<16x32xf32>, vector<16x32xf32>, vector<16x32xf32> -> vector<64x32xf32>
    %172 = arith.mulf %171, %58 : vector<64x32xf32>
    %cst_43 = arith.constant dense<0.000000e+00> : vector<64x16xf32>
    %173 = tpu.matmul %172, %169, %cst_43 {dimension_numbers = #tpu.dot_dimension_numbers<[1], [1], [0], [0], [0, 0, 1, 0], [], []>} : vector<64x32xf32>, vector<16x32xf32>, vector<64x16xf32> -> vector<64x16xf32>
    %cst_44 = arith.constant dense<0xFF800000> : vector<64xf32>
    %174 = vector.multi_reduction <maximumf>, %173, %cst_44 [1] : vector<64x16xf32> to vector<64xf32>
    %175 = vector.shape_cast %174 : vector<64xf32> to vector<64x1xf32>
    %176 = vector.broadcast %175 : vector<64x1xf32> to vector<64x16xf32>
    %177 = arith.subf %173, %176 : vector<64x16xf32>
    %178 = math.exp %177 : vector<64x16xf32>
    %cst_45 = arith.constant dense<0.000000e+00> : vector<64xf32>
    %179 = vector.multi_reduction <add>, %178, %cst_45 [1] : vector<64x16xf32> to vector<64xf32>
    %180 = vector.shape_cast %179 : vector<64xf32> to vector<64x1xf32>
    %181 = tpu.reciprocal %180 {approx = true} : vector<64x1xf32> -> vector<64x1xf32>
    %182 = vector.broadcast %181 : vector<64x1xf32> to vector<64x16xf32>
    %183 = arith.mulf %178, %182 : vector<64x16xf32>
    %cst_46 = arith.constant dense<0.000000e+00> : vector<64x32xf32>
    %184 = tpu.matmul %183, %170, %cst_46 {dimension_numbers = #tpu.dot_dimension_numbers<[1], [0], [0], [1], [0, 0, 1, 1], [], []>} : vector<64x16xf32>, vector<16x32xf32>, vector<64x32xf32> -> vector<64x32xf32>
    %185 = arith.mulf %184, %58 : vector<64x32xf32>
    %186 = vector.extract_strided_slice %185 {offsets = [0, 0], sizes = [16, 32], strides = [1, 1]} : vector<64x32xf32> to vector<16x32xf32>
    %187 = vector.extract_strided_slice %185 {offsets = [16, 0], sizes = [16, 32], strides = [1, 1]} : vector<64x32xf32> to vector<16x32xf32>
    %188 = arith.addf %186, %187 : vector<16x32xf32>
    %189 = vector.extract_strided_slice %185 {offsets = [32, 0], sizes = [16, 32], strides = [1, 1]} : vector<64x32xf32> to vector<16x32xf32>
    %190 = arith.addf %188, %189 : vector<16x32xf32>
    %191 = vector.extract_strided_slice %185 {offsets = [48, 0], sizes = [16, 32], strides = [1, 1]} : vector<64x32xf32> to vector<16x32xf32>
    %192 = arith.addf %190, %191 : vector<16x32xf32>
    %c0_47 = arith.constant 0 : index
    %c0_48 = arith.constant 0 : index
    %c0_49 = arith.constant 0 : index
    %193 = vector.load %arg5[%c0_47, %c0_48, %c0_49] : memref<3x32x32xf32, #tpu.memory_space<vmem>>, vector<1x32x32xf32>
    %194 = vector.shape_cast %193 : vector<1x32x32xf32> to vector<32x32xf32>
    %cst_50 = arith.constant dense<0.000000e+00> : vector<16x32xf32>
    %195 = tpu.matmul %192, %194, %cst_50 {dimension_numbers = #tpu.dot_dimension_numbers<[1], [0], [0], [1], [0, 0, 1, 1], [], []>} : vector<16x32xf32>, vector<32x32xf32>, vector<16x32xf32> -> vector<16x32xf32>
    %196 = arith.addf %161, %195 : vector<16x32xf32>
    %c0_51 = arith.constant 0 : index
    %c0_52 = arith.constant 0 : index
    %197 = vector.load %arg6[%c0_51, %c0_52] : memref<3x32xf32, #tpu.memory_space<vmem>>, vector<1x32xf32>
    %c0_53 = arith.constant 0 : index
    %c0_54 = arith.constant 0 : index
    %198 = vector.load %arg7[%c0_53, %c0_54] : memref<3x32xf32, #tpu.memory_space<vmem>>, vector<1x32xf32>
    %cst_55 = arith.constant dense<0.000000e+00> : vector<32xf32>
    %199 = vector.multi_reduction <add>, %196, %cst_55 [0] : vector<16x32xf32> to vector<32xf32>
    %200 = vector.shape_cast %199 : vector<32xf32> to vector<1x32xf32>
    %cst_56 = arith.constant 1.600000e+01 : f32
    %201 = vector.broadcast %cst_56 : f32 to vector<1x32xf32>
    %202 = arith.divf %200, %201 : vector<1x32xf32>
    %203 = vector.broadcast %202 : vector<1x32xf32> to vector<16x32xf32>
    %204 = arith.subf %196, %203 : vector<16x32xf32>
    %205 = arith.mulf %204, %204 : vector<16x32xf32>
    %cst_57 = arith.constant dense<0.000000e+00> : vector<32xf32>
    %206 = vector.multi_reduction <add>, %205, %cst_57 [0] : vector<16x32xf32> to vector<32xf32>
    %207 = vector.shape_cast %206 : vector<32xf32> to vector<1x32xf32>
    %cst_58 = arith.constant 1.600000e+01 : f32
    %208 = vector.broadcast %cst_58 : f32 to vector<1x32xf32>
    %209 = arith.divf %207, %208 : vector<1x32xf32>
    %210 = vector.broadcast %202 : vector<1x32xf32> to vector<16x32xf32>
    %211 = arith.subf %196, %210 : vector<16x32xf32>
    %cst_59 = arith.constant 9.99999974E-6 : f32
    %212 = vector.broadcast %cst_59 : f32 to vector<1x32xf32>
    %213 = arith.addf %209, %212 : vector<1x32xf32>
    %214 = math.rsqrt %213 : vector<1x32xf32>
    %215 = vector.broadcast %214 : vector<1x32xf32> to vector<16x32xf32>
    %216 = arith.mulf %211, %215 : vector<16x32xf32>
    %217 = vector.broadcast %197 : vector<1x32xf32> to vector<16x32xf32>
    %218 = arith.mulf %216, %217 : vector<16x32xf32>
    %219 = vector.broadcast %198 : vector<1x32xf32> to vector<16x32xf32>
    %220 = arith.addf %218, %219 : vector<16x32xf32>
    %c0_60 = arith.constant 0 : index
    %c0_61 = arith.constant 0 : index
    %c0_62 = arith.constant 0 : index
    %221 = vector.load %arg8[%c0_60, %c0_61, %c0_62] : memref<3x32x64xf32, #tpu.memory_space<vmem>>, vector<1x32x64xf32>
    %222 = vector.shape_cast %221 : vector<1x32x64xf32> to vector<32x64xf32>
    %cst_63 = arith.constant dense<0.000000e+00> : vector<16x64xf32>
    %223 = tpu.matmul %220, %222, %cst_63 {dimension_numbers = #tpu.dot_dimension_numbers<[1], [0], [0], [1], [0, 0, 1, 1], [], []>} : vector<16x32xf32>, vector<32x64xf32>, vector<16x64xf32> -> vector<16x64xf32>
    %c0_64 = arith.constant 0 : index
    %c0_65 = arith.constant 0 : index
    %224 = vector.load %arg9[%c0_64, %c0_65] : memref<3x64xf32, #tpu.memory_space<vmem>>, vector<1x64xf32>
    %225 = vector.broadcast %224 : vector<1x64xf32> to vector<16x64xf32>
    %226 = arith.addf %223, %225 : vector<16x64xf32>
    %cst_66 = arith.constant 0.000000e+00 : f32
    %227 = vector.broadcast %cst_66 : f32 to vector<16x64xf32>
    %228 = arith.maximumf %226, %227 : vector<16x64xf32>
    %c0_67 = arith.constant 0 : index
    %c0_68 = arith.constant 0 : index
    %c0_69 = arith.constant 0 : index
    %229 = vector.load %arg10[%c0_67, %c0_68, %c0_69] : memref<3x64x32xf32, #tpu.memory_space<vmem>>, vector<1x64x32xf32>
    %230 = vector.shape_cast %229 : vector<1x64x32xf32> to vector<64x32xf32>
    %cst_70 = arith.constant dense<0.000000e+00> : vector<16x32xf32>
    %231 = tpu.matmul %228, %230, %cst_70 {dimension_numbers = #tpu.dot_dimension_numbers<[1], [0], [0], [1], [0, 0, 1, 1], [], []>} : vector<16x64xf32>, vector<64x32xf32>, vector<16x32xf32> -> vector<16x32xf32>
    %c0_71 = arith.constant 0 : index
    %c0_72 = arith.constant 0 : index
    %232 = vector.load %arg11[%c0_71, %c0_72] : memref<3x32xf32, #tpu.memory_space<vmem>>, vector<1x32xf32>
    %233 = vector.broadcast %232 : vector<1x32xf32> to vector<16x32xf32>
    %234 = arith.addf %231, %233 : vector<16x32xf32>
    %235 = arith.addf %220, %234 : vector<16x32xf32>
    %c0_73 = arith.constant 0 : index
    %c0_74 = arith.constant 0 : index
    %236 = vector.load %arg12[%c0_73, %c0_74] : memref<3x32xf32, #tpu.memory_space<vmem>>, vector<1x32xf32>
    %c0_75 = arith.constant 0 : index
    %c0_76 = arith.constant 0 : index
    %237 = vector.load %arg13[%c0_75, %c0_76] : memref<3x32xf32, #tpu.memory_space<vmem>>, vector<1x32xf32>
    %cst_77 = arith.constant dense<0.000000e+00> : vector<32xf32>
    %238 = vector.multi_reduction <add>, %235, %cst_77 [0] : vector<16x32xf32> to vector<32xf32>
    %239 = vector.shape_cast %238 : vector<32xf32> to vector<1x32xf32>
    %cst_78 = arith.constant 1.600000e+01 : f32
    %240 = vector.broadcast %cst_78 : f32 to vector<1x32xf32>
    %241 = arith.divf %239, %240 : vector<1x32xf32>
    %242 = vector.broadcast %241 : vector<1x32xf32> to vector<16x32xf32>
    %243 = arith.subf %235, %242 : vector<16x32xf32>
    %244 = arith.mulf %243, %243 : vector<16x32xf32>
    %cst_79 = arith.constant dense<0.000000e+00> : vector<32xf32>
    %245 = vector.multi_reduction <add>, %244, %cst_79 [0] : vector<16x32xf32> to vector<32xf32>
    %246 = vector.shape_cast %245 : vector<32xf32> to vector<1x32xf32>
    %cst_80 = arith.constant 1.600000e+01 : f32
    %247 = vector.broadcast %cst_80 : f32 to vector<1x32xf32>
    %248 = arith.divf %246, %247 : vector<1x32xf32>
    %249 = vector.broadcast %241 : vector<1x32xf32> to vector<16x32xf32>
    %250 = arith.subf %235, %249 : vector<16x32xf32>
    %cst_81 = arith.constant 9.99999974E-6 : f32
    %251 = vector.broadcast %cst_81 : f32 to vector<1x32xf32>
    %252 = arith.addf %248, %251 : vector<1x32xf32>
    %253 = math.rsqrt %252 : vector<1x32xf32>
    %254 = vector.broadcast %253 : vector<1x32xf32> to vector<16x32xf32>
    %255 = arith.mulf %250, %254 : vector<16x32xf32>
    %256 = vector.broadcast %236 : vector<1x32xf32> to vector<16x32xf32>
    %257 = arith.mulf %255, %256 : vector<16x32xf32>
    %258 = vector.broadcast %237 : vector<1x32xf32> to vector<16x32xf32>
    %259 = arith.addf %257, %258 : vector<16x32xf32>
    %c1 = arith.constant 1 : index
    %c0_82 = arith.constant 0 : index
    %c0_83 = arith.constant 0 : index
    %260 = vector.load %arg4[%c1, %c0_82, %c0_83] : memref<3x32x96xf32, #tpu.memory_space<vmem>>, vector<1x32x96xf32>
    %261 = vector.shape_cast %260 : vector<1x32x96xf32> to vector<32x96xf32>
    %cst_84 = arith.constant dense<0.000000e+00> : vector<16x96xf32>
    %262 = tpu.matmul %259, %261, %cst_84 {dimension_numbers = #tpu.dot_dimension_numbers<[1], [0], [0], [1], [0, 0, 1, 1], [], []>} : vector<16x32xf32>, vector<32x96xf32>, vector<16x96xf32> -> vector<16x96xf32>
    %263 = vector.extract_strided_slice %262 {offsets = [0, 0], sizes = [16, 32], strides = [1, 1]} : vector<16x96xf32> to vector<16x32xf32>
    %cst_85 = arith.constant 0.353553385 : f32
    %264 = vector.broadcast %cst_85 : f32 to vector<16x32xf32>
    %265 = arith.mulf %263, %264 : vector<16x32xf32>
    %266 = vector.extract_strided_slice %262 {offsets = [0, 32], sizes = [16, 32], strides = [1, 1]} : vector<16x96xf32> to vector<16x32xf32>
    %267 = vector.extract_strided_slice %262 {offsets = [0, 64], sizes = [16, 32], strides = [1, 1]} : vector<16x96xf32> to vector<16x32xf32>
    %268 = tpu.concatenate %265, %265, %265, %265 in 0 : vector<16x32xf32>, vector<16x32xf32>, vector<16x32xf32>, vector<16x32xf32> -> vector<64x32xf32>
    %269 = arith.mulf %268, %58 : vector<64x32xf32>
    %cst_86 = arith.constant dense<0.000000e+00> : vector<64x16xf32>
    %270 = tpu.matmul %269, %266, %cst_86 {dimension_numbers = #tpu.dot_dimension_numbers<[1], [1], [0], [0], [0, 0, 1, 0], [], []>} : vector<64x32xf32>, vector<16x32xf32>, vector<64x16xf32> -> vector<64x16xf32>
    %cst_87 = arith.constant dense<0xFF800000> : vector<64xf32>
    %271 = vector.multi_reduction <maximumf>, %270, %cst_87 [1] : vector<64x16xf32> to vector<64xf32>
    %272 = vector.shape_cast %271 : vector<64xf32> to vector<64x1xf32>
    %273 = vector.broadcast %272 : vector<64x1xf32> to vector<64x16xf32>
    %274 = arith.subf %270, %273 : vector<64x16xf32>
    %275 = math.exp %274 : vector<64x16xf32>
    %cst_88 = arith.constant dense<0.000000e+00> : vector<64xf32>
    %276 = vector.multi_reduction <add>, %275, %cst_88 [1] : vector<64x16xf32> to vector<64xf32>
    %277 = vector.shape_cast %276 : vector<64xf32> to vector<64x1xf32>
    %278 = tpu.reciprocal %277 {approx = true} : vector<64x1xf32> -> vector<64x1xf32>
    %279 = vector.broadcast %278 : vector<64x1xf32> to vector<64x16xf32>
    %280 = arith.mulf %275, %279 : vector<64x16xf32>
    %cst_89 = arith.constant dense<0.000000e+00> : vector<64x32xf32>
    %281 = tpu.matmul %280, %267, %cst_89 {dimension_numbers = #tpu.dot_dimension_numbers<[1], [0], [0], [1], [0, 0, 1, 1], [], []>} : vector<64x16xf32>, vector<16x32xf32>, vector<64x32xf32> -> vector<64x32xf32>
    %282 = arith.mulf %281, %58 : vector<64x32xf32>
    %283 = vector.extract_strided_slice %282 {offsets = [0, 0], sizes = [16, 32], strides = [1, 1]} : vector<64x32xf32> to vector<16x32xf32>
    %284 = vector.extract_strided_slice %282 {offsets = [16, 0], sizes = [16, 32], strides = [1, 1]} : vector<64x32xf32> to vector<16x32xf32>
    %285 = arith.addf %283, %284 : vector<16x32xf32>
    %286 = vector.extract_strided_slice %282 {offsets = [32, 0], sizes = [16, 32], strides = [1, 1]} : vector<64x32xf32> to vector<16x32xf32>
    %287 = arith.addf %285, %286 : vector<16x32xf32>
    %288 = vector.extract_strided_slice %282 {offsets = [48, 0], sizes = [16, 32], strides = [1, 1]} : vector<64x32xf32> to vector<16x32xf32>
    %289 = arith.addf %287, %288 : vector<16x32xf32>
    %c1_90 = arith.constant 1 : index
    %c0_91 = arith.constant 0 : index
    %c0_92 = arith.constant 0 : index
    %290 = vector.load %arg5[%c1_90, %c0_91, %c0_92] : memref<3x32x32xf32, #tpu.memory_space<vmem>>, vector<1x32x32xf32>
    %291 = vector.shape_cast %290 : vector<1x32x32xf32> to vector<32x32xf32>
    %cst_93 = arith.constant dense<0.000000e+00> : vector<16x32xf32>
    %292 = tpu.matmul %289, %291, %cst_93 {dimension_numbers = #tpu.dot_dimension_numbers<[1], [0], [0], [1], [0, 0, 1, 1], [], []>} : vector<16x32xf32>, vector<32x32xf32>, vector<16x32xf32> -> vector<16x32xf32>
    %293 = arith.addf %259, %292 : vector<16x32xf32>
    %c1_94 = arith.constant 1 : index
    %c0_95 = arith.constant 0 : index
    %294 = vector.load %arg6[%c1_94, %c0_95] : memref<3x32xf32, #tpu.memory_space<vmem>>, vector<1x32xf32>
    %c1_96 = arith.constant 1 : index
    %c0_97 = arith.constant 0 : index
    %295 = vector.load %arg7[%c1_96, %c0_97] : memref<3x32xf32, #tpu.memory_space<vmem>>, vector<1x32xf32>
    %cst_98 = arith.constant dense<0.000000e+00> : vector<32xf32>
    %296 = vector.multi_reduction <add>, %293, %cst_98 [0] : vector<16x32xf32> to vector<32xf32>
    %297 = vector.shape_cast %296 : vector<32xf32> to vector<1x32xf32>
    %cst_99 = arith.constant 1.600000e+01 : f32
    %298 = vector.broadcast %cst_99 : f32 to vector<1x32xf32>
    %299 = arith.divf %297, %298 : vector<1x32xf32>
    %300 = vector.broadcast %299 : vector<1x32xf32> to vector<16x32xf32>
    %301 = arith.subf %293, %300 : vector<16x32xf32>
    %302 = arith.mulf %301, %301 : vector<16x32xf32>
    %cst_100 = arith.constant dense<0.000000e+00> : vector<32xf32>
    %303 = vector.multi_reduction <add>, %302, %cst_100 [0] : vector<16x32xf32> to vector<32xf32>
    %304 = vector.shape_cast %303 : vector<32xf32> to vector<1x32xf32>
    %cst_101 = arith.constant 1.600000e+01 : f32
    %305 = vector.broadcast %cst_101 : f32 to vector<1x32xf32>
    %306 = arith.divf %304, %305 : vector<1x32xf32>
    %307 = vector.broadcast %299 : vector<1x32xf32> to vector<16x32xf32>
    %308 = arith.subf %293, %307 : vector<16x32xf32>
    %cst_102 = arith.constant 9.99999974E-6 : f32
    %309 = vector.broadcast %cst_102 : f32 to vector<1x32xf32>
    %310 = arith.addf %306, %309 : vector<1x32xf32>
    %311 = math.rsqrt %310 : vector<1x32xf32>
    %312 = vector.broadcast %311 : vector<1x32xf32> to vector<16x32xf32>
    %313 = arith.mulf %308, %312 : vector<16x32xf32>
    %314 = vector.broadcast %294 : vector<1x32xf32> to vector<16x32xf32>
    %315 = arith.mulf %313, %314 : vector<16x32xf32>
    %316 = vector.broadcast %295 : vector<1x32xf32> to vector<16x32xf32>
    %317 = arith.addf %315, %316 : vector<16x32xf32>
    %c1_103 = arith.constant 1 : index
    %c0_104 = arith.constant 0 : index
    %c0_105 = arith.constant 0 : index
    %318 = vector.load %arg8[%c1_103, %c0_104, %c0_105] : memref<3x32x64xf32, #tpu.memory_space<vmem>>, vector<1x32x64xf32>
    %319 = vector.shape_cast %318 : vector<1x32x64xf32> to vector<32x64xf32>
    %cst_106 = arith.constant dense<0.000000e+00> : vector<16x64xf32>
    %320 = tpu.matmul %317, %319, %cst_106 {dimension_numbers = #tpu.dot_dimension_numbers<[1], [0], [0], [1], [0, 0, 1, 1], [], []>} : vector<16x32xf32>, vector<32x64xf32>, vector<16x64xf32> -> vector<16x64xf32>
    %c1_107 = arith.constant 1 : index
    %c0_108 = arith.constant 0 : index
    %321 = vector.load %arg9[%c1_107, %c0_108] : memref<3x64xf32, #tpu.memory_space<vmem>>, vector<1x64xf32>
    %322 = vector.broadcast %321 : vector<1x64xf32> to vector<16x64xf32>
    %323 = arith.addf %320, %322 : vector<16x64xf32>
    %cst_109 = arith.constant 0.000000e+00 : f32
    %324 = vector.broadcast %cst_109 : f32 to vector<16x64xf32>
    %325 = arith.maximumf %323, %324 : vector<16x64xf32>
    %c1_110 = arith.constant 1 : index
    %c0_111 = arith.constant 0 : index
    %c0_112 = arith.constant 0 : index
    %326 = vector.load %arg10[%c1_110, %c0_111, %c0_112] : memref<3x64x32xf32, #tpu.memory_space<vmem>>, vector<1x64x32xf32>
    %327 = vector.shape_cast %326 : vector<1x64x32xf32> to vector<64x32xf32>
    %cst_113 = arith.constant dense<0.000000e+00> : vector<16x32xf32>
    %328 = tpu.matmul %325, %327, %cst_113 {dimension_numbers = #tpu.dot_dimension_numbers<[1], [0], [0], [1], [0, 0, 1, 1], [], []>} : vector<16x64xf32>, vector<64x32xf32>, vector<16x32xf32> -> vector<16x32xf32>
    %c1_114 = arith.constant 1 : index
    %c0_115 = arith.constant 0 : index
    %329 = vector.load %arg11[%c1_114, %c0_115] : memref<3x32xf32, #tpu.memory_space<vmem>>, vector<1x32xf32>
    %330 = vector.broadcast %329 : vector<1x32xf32> to vector<16x32xf32>
    %331 = arith.addf %328, %330 : vector<16x32xf32>
    %332 = arith.addf %317, %331 : vector<16x32xf32>
    %c1_116 = arith.constant 1 : index
    %c0_117 = arith.constant 0 : index
    %333 = vector.load %arg12[%c1_116, %c0_117] : memref<3x32xf32, #tpu.memory_space<vmem>>, vector<1x32xf32>
    %c1_118 = arith.constant 1 : index
    %c0_119 = arith.constant 0 : index
    %334 = vector.load %arg13[%c1_118, %c0_119] : memref<3x32xf32, #tpu.memory_space<vmem>>, vector<1x32xf32>
    %cst_120 = arith.constant dense<0.000000e+00> : vector<32xf32>
    %335 = vector.multi_reduction <add>, %332, %cst_120 [0] : vector<16x32xf32> to vector<32xf32>
    %336 = vector.shape_cast %335 : vector<32xf32> to vector<1x32xf32>
    %cst_121 = arith.constant 1.600000e+01 : f32
    %337 = vector.broadcast %cst_121 : f32 to vector<1x32xf32>
    %338 = arith.divf %336, %337 : vector<1x32xf32>
    %339 = vector.broadcast %338 : vector<1x32xf32> to vector<16x32xf32>
    %340 = arith.subf %332, %339 : vector<16x32xf32>
    %341 = arith.mulf %340, %340 : vector<16x32xf32>
    %cst_122 = arith.constant dense<0.000000e+00> : vector<32xf32>
    %342 = vector.multi_reduction <add>, %341, %cst_122 [0] : vector<16x32xf32> to vector<32xf32>
    %343 = vector.shape_cast %342 : vector<32xf32> to vector<1x32xf32>
    %cst_123 = arith.constant 1.600000e+01 : f32
    %344 = vector.broadcast %cst_123 : f32 to vector<1x32xf32>
    %345 = arith.divf %343, %344 : vector<1x32xf32>
    %346 = vector.broadcast %338 : vector<1x32xf32> to vector<16x32xf32>
    %347 = arith.subf %332, %346 : vector<16x32xf32>
    %cst_124 = arith.constant 9.99999974E-6 : f32
    %348 = vector.broadcast %cst_124 : f32 to vector<1x32xf32>
    %349 = arith.addf %345, %348 : vector<1x32xf32>
    %350 = math.rsqrt %349 : vector<1x32xf32>
    %351 = vector.broadcast %350 : vector<1x32xf32> to vector<16x32xf32>
    %352 = arith.mulf %347, %351 : vector<16x32xf32>
    %353 = vector.broadcast %333 : vector<1x32xf32> to vector<16x32xf32>
    %354 = arith.mulf %352, %353 : vector<16x32xf32>
    %355 = vector.broadcast %334 : vector<1x32xf32> to vector<16x32xf32>
    %356 = arith.addf %354, %355 : vector<16x32xf32>
    %c2 = arith.constant 2 : index
    %c0_125 = arith.constant 0 : index
    %c0_126 = arith.constant 0 : index
    %357 = vector.load %arg4[%c2, %c0_125, %c0_126] : memref<3x32x96xf32, #tpu.memory_space<vmem>>, vector<1x32x96xf32>
    %358 = vector.shape_cast %357 : vector<1x32x96xf32> to vector<32x96xf32>
    %cst_127 = arith.constant dense<0.000000e+00> : vector<16x96xf32>
    %359 = tpu.matmul %356, %358, %cst_127 {dimension_numbers = #tpu.dot_dimension_numbers<[1], [0], [0], [1], [0, 0, 1, 1], [], []>} : vector<16x32xf32>, vector<32x96xf32>, vector<16x96xf32> -> vector<16x96xf32>
    %360 = vector.extract_strided_slice %359 {offsets = [0, 0], sizes = [16, 32], strides = [1, 1]} : vector<16x96xf32> to vector<16x32xf32>
    %cst_128 = arith.constant 0.353553385 : f32
    %361 = vector.broadcast %cst_128 : f32 to vector<16x32xf32>
    %362 = arith.mulf %360, %361 : vector<16x32xf32>
    %363 = vector.extract_strided_slice %359 {offsets = [0, 32], sizes = [16, 32], strides = [1, 1]} : vector<16x96xf32> to vector<16x32xf32>
    %364 = vector.extract_strided_slice %359 {offsets = [0, 64], sizes = [16, 32], strides = [1, 1]} : vector<16x96xf32> to vector<16x32xf32>
    %365 = tpu.concatenate %362, %362, %362, %362 in 0 : vector<16x32xf32>, vector<16x32xf32>, vector<16x32xf32>, vector<16x32xf32> -> vector<64x32xf32>
    %366 = arith.mulf %365, %58 : vector<64x32xf32>
    %cst_129 = arith.constant dense<0.000000e+00> : vector<64x16xf32>
    %367 = tpu.matmul %366, %363, %cst_129 {dimension_numbers = #tpu.dot_dimension_numbers<[1], [1], [0], [0], [0, 0, 1, 0], [], []>} : vector<64x32xf32>, vector<16x32xf32>, vector<64x16xf32> -> vector<64x16xf32>
    %cst_130 = arith.constant dense<0xFF800000> : vector<64xf32>
    %368 = vector.multi_reduction <maximumf>, %367, %cst_130 [1] : vector<64x16xf32> to vector<64xf32>
    %369 = vector.shape_cast %368 : vector<64xf32> to vector<64x1xf32>
    %370 = vector.broadcast %369 : vector<64x1xf32> to vector<64x16xf32>
    %371 = arith.subf %367, %370 : vector<64x16xf32>
    %372 = math.exp %371 : vector<64x16xf32>
    %cst_131 = arith.constant dense<0.000000e+00> : vector<64xf32>
    %373 = vector.multi_reduction <add>, %372, %cst_131 [1] : vector<64x16xf32> to vector<64xf32>
    %374 = vector.shape_cast %373 : vector<64xf32> to vector<64x1xf32>
    %375 = tpu.reciprocal %374 {approx = true} : vector<64x1xf32> -> vector<64x1xf32>
    %376 = vector.broadcast %375 : vector<64x1xf32> to vector<64x16xf32>
    %377 = arith.mulf %372, %376 : vector<64x16xf32>
    %cst_132 = arith.constant dense<0.000000e+00> : vector<64x32xf32>
    %378 = tpu.matmul %377, %364, %cst_132 {dimension_numbers = #tpu.dot_dimension_numbers<[1], [0], [0], [1], [0, 0, 1, 1], [], []>} : vector<64x16xf32>, vector<16x32xf32>, vector<64x32xf32> -> vector<64x32xf32>
    %379 = arith.mulf %378, %58 : vector<64x32xf32>
    %380 = vector.extract_strided_slice %379 {offsets = [0, 0], sizes = [16, 32], strides = [1, 1]} : vector<64x32xf32> to vector<16x32xf32>
    %381 = vector.extract_strided_slice %379 {offsets = [16, 0], sizes = [16, 32], strides = [1, 1]} : vector<64x32xf32> to vector<16x32xf32>
    %382 = arith.addf %380, %381 : vector<16x32xf32>
    %383 = vector.extract_strided_slice %379 {offsets = [32, 0], sizes = [16, 32], strides = [1, 1]} : vector<64x32xf32> to vector<16x32xf32>
    %384 = arith.addf %382, %383 : vector<16x32xf32>
    %385 = vector.extract_strided_slice %379 {offsets = [48, 0], sizes = [16, 32], strides = [1, 1]} : vector<64x32xf32> to vector<16x32xf32>
    %386 = arith.addf %384, %385 : vector<16x32xf32>
    %c2_133 = arith.constant 2 : index
    %c0_134 = arith.constant 0 : index
    %c0_135 = arith.constant 0 : index
    %387 = vector.load %arg5[%c2_133, %c0_134, %c0_135] : memref<3x32x32xf32, #tpu.memory_space<vmem>>, vector<1x32x32xf32>
    %388 = vector.shape_cast %387 : vector<1x32x32xf32> to vector<32x32xf32>
    %cst_136 = arith.constant dense<0.000000e+00> : vector<16x32xf32>
    %389 = tpu.matmul %386, %388, %cst_136 {dimension_numbers = #tpu.dot_dimension_numbers<[1], [0], [0], [1], [0, 0, 1, 1], [], []>} : vector<16x32xf32>, vector<32x32xf32>, vector<16x32xf32> -> vector<16x32xf32>
    %390 = arith.addf %356, %389 : vector<16x32xf32>
    %c2_137 = arith.constant 2 : index
    %c0_138 = arith.constant 0 : index
    %391 = vector.load %arg6[%c2_137, %c0_138] : memref<3x32xf32, #tpu.memory_space<vmem>>, vector<1x32xf32>
    %c2_139 = arith.constant 2 : index
    %c0_140 = arith.constant 0 : index
    %392 = vector.load %arg7[%c2_139, %c0_140] : memref<3x32xf32, #tpu.memory_space<vmem>>, vector<1x32xf32>
    %cst_141 = arith.constant dense<0.000000e+00> : vector<32xf32>
    %393 = vector.multi_reduction <add>, %390, %cst_141 [0] : vector<16x32xf32> to vector<32xf32>
    %394 = vector.shape_cast %393 : vector<32xf32> to vector<1x32xf32>
    %cst_142 = arith.constant 1.600000e+01 : f32
    %395 = vector.broadcast %cst_142 : f32 to vector<1x32xf32>
    %396 = arith.divf %394, %395 : vector<1x32xf32>
    %397 = vector.broadcast %396 : vector<1x32xf32> to vector<16x32xf32>
    %398 = arith.subf %390, %397 : vector<16x32xf32>
    %399 = arith.mulf %398, %398 : vector<16x32xf32>
    %cst_143 = arith.constant dense<0.000000e+00> : vector<32xf32>
    %400 = vector.multi_reduction <add>, %399, %cst_143 [0] : vector<16x32xf32> to vector<32xf32>
    %401 = vector.shape_cast %400 : vector<32xf32> to vector<1x32xf32>
    %cst_144 = arith.constant 1.600000e+01 : f32
    %402 = vector.broadcast %cst_144 : f32 to vector<1x32xf32>
    %403 = arith.divf %401, %402 : vector<1x32xf32>
    %404 = vector.broadcast %396 : vector<1x32xf32> to vector<16x32xf32>
    %405 = arith.subf %390, %404 : vector<16x32xf32>
    %cst_145 = arith.constant 9.99999974E-6 : f32
    %406 = vector.broadcast %cst_145 : f32 to vector<1x32xf32>
    %407 = arith.addf %403, %406 : vector<1x32xf32>
    %408 = math.rsqrt %407 : vector<1x32xf32>
    %409 = vector.broadcast %408 : vector<1x32xf32> to vector<16x32xf32>
    %410 = arith.mulf %405, %409 : vector<16x32xf32>
    %411 = vector.broadcast %391 : vector<1x32xf32> to vector<16x32xf32>
    %412 = arith.mulf %410, %411 : vector<16x32xf32>
    %413 = vector.broadcast %392 : vector<1x32xf32> to vector<16x32xf32>
    %414 = arith.addf %412, %413 : vector<16x32xf32>
    %c2_146 = arith.constant 2 : index
    %c0_147 = arith.constant 0 : index
    %c0_148 = arith.constant 0 : index
    %415 = vector.load %arg8[%c2_146, %c0_147, %c0_148] : memref<3x32x64xf32, #tpu.memory_space<vmem>>, vector<1x32x64xf32>
    %416 = vector.shape_cast %415 : vector<1x32x64xf32> to vector<32x64xf32>
    %cst_149 = arith.constant dense<0.000000e+00> : vector<16x64xf32>
    %417 = tpu.matmul %414, %416, %cst_149 {dimension_numbers = #tpu.dot_dimension_numbers<[1], [0], [0], [1], [0, 0, 1, 1], [], []>} : vector<16x32xf32>, vector<32x64xf32>, vector<16x64xf32> -> vector<16x64xf32>
    %c2_150 = arith.constant 2 : index
    %c0_151 = arith.constant 0 : index
    %418 = vector.load %arg9[%c2_150, %c0_151] : memref<3x64xf32, #tpu.memory_space<vmem>>, vector<1x64xf32>
    %419 = vector.broadcast %418 : vector<1x64xf32> to vector<16x64xf32>
    %420 = arith.addf %417, %419 : vector<16x64xf32>
    %cst_152 = arith.constant 0.000000e+00 : f32
    %421 = vector.broadcast %cst_152 : f32 to vector<16x64xf32>
    %422 = arith.maximumf %420, %421 : vector<16x64xf32>
    %c2_153 = arith.constant 2 : index
    %c0_154 = arith.constant 0 : index
    %c0_155 = arith.constant 0 : index
    %423 = vector.load %arg10[%c2_153, %c0_154, %c0_155] : memref<3x64x32xf32, #tpu.memory_space<vmem>>, vector<1x64x32xf32>
    %424 = vector.shape_cast %423 : vector<1x64x32xf32> to vector<64x32xf32>
    %cst_156 = arith.constant dense<0.000000e+00> : vector<16x32xf32>
    %425 = tpu.matmul %422, %424, %cst_156 {dimension_numbers = #tpu.dot_dimension_numbers<[1], [0], [0], [1], [0, 0, 1, 1], [], []>} : vector<16x64xf32>, vector<64x32xf32>, vector<16x32xf32> -> vector<16x32xf32>
    %c2_157 = arith.constant 2 : index
    %c0_158 = arith.constant 0 : index
    %426 = vector.load %arg11[%c2_157, %c0_158] : memref<3x32xf32, #tpu.memory_space<vmem>>, vector<1x32xf32>
    %427 = vector.broadcast %426 : vector<1x32xf32> to vector<16x32xf32>
    %428 = arith.addf %425, %427 : vector<16x32xf32>
    %429 = arith.addf %414, %428 : vector<16x32xf32>
    %c2_159 = arith.constant 2 : index
    %c0_160 = arith.constant 0 : index
    %430 = vector.load %arg12[%c2_159, %c0_160] : memref<3x32xf32, #tpu.memory_space<vmem>>, vector<1x32xf32>
    %c2_161 = arith.constant 2 : index
    %c0_162 = arith.constant 0 : index
    %431 = vector.load %arg13[%c2_161, %c0_162] : memref<3x32xf32, #tpu.memory_space<vmem>>, vector<1x32xf32>
    %cst_163 = arith.constant dense<0.000000e+00> : vector<32xf32>
    %432 = vector.multi_reduction <add>, %429, %cst_163 [0] : vector<16x32xf32> to vector<32xf32>
    %433 = vector.shape_cast %432 : vector<32xf32> to vector<1x32xf32>
    %cst_164 = arith.constant 1.600000e+01 : f32
    %434 = vector.broadcast %cst_164 : f32 to vector<1x32xf32>
    %435 = arith.divf %433, %434 : vector<1x32xf32>
    %436 = vector.broadcast %435 : vector<1x32xf32> to vector<16x32xf32>
    %437 = arith.subf %429, %436 : vector<16x32xf32>
    %438 = arith.mulf %437, %437 : vector<16x32xf32>
    %cst_165 = arith.constant dense<0.000000e+00> : vector<32xf32>
    %439 = vector.multi_reduction <add>, %438, %cst_165 [0] : vector<16x32xf32> to vector<32xf32>
    %440 = vector.shape_cast %439 : vector<32xf32> to vector<1x32xf32>
    %cst_166 = arith.constant 1.600000e+01 : f32
    %441 = vector.broadcast %cst_166 : f32 to vector<1x32xf32>
    %442 = arith.divf %440, %441 : vector<1x32xf32>
    %443 = vector.broadcast %435 : vector<1x32xf32> to vector<16x32xf32>
    %444 = arith.subf %429, %443 : vector<16x32xf32>
    %cst_167 = arith.constant 9.99999974E-6 : f32
    %445 = vector.broadcast %cst_167 : f32 to vector<1x32xf32>
    %446 = arith.addf %442, %445 : vector<1x32xf32>
    %447 = math.rsqrt %446 : vector<1x32xf32>
    %448 = vector.broadcast %447 : vector<1x32xf32> to vector<16x32xf32>
    %449 = arith.mulf %444, %448 : vector<16x32xf32>
    %450 = vector.broadcast %430 : vector<1x32xf32> to vector<16x32xf32>
    %451 = arith.mulf %449, %450 : vector<16x32xf32>
    %452 = vector.broadcast %431 : vector<1x32xf32> to vector<16x32xf32>
    %453 = arith.addf %451, %452 : vector<16x32xf32>
    %c0_168 = arith.constant 0 : index
    %c0_169 = arith.constant 0 : index
    %454 = vector.load %arg14[%c0_168, %c0_169] : memref<32x96xf32, #tpu.memory_space<vmem>>, vector<32x96xf32>
    %cst_170 = arith.constant dense<0.000000e+00> : vector<16x96xf32>
    %455 = tpu.matmul %453, %454, %cst_170 {dimension_numbers = #tpu.dot_dimension_numbers<[1], [0], [0], [1], [0, 0, 1, 1], [], []>} : vector<16x32xf32>, vector<32x96xf32>, vector<16x96xf32> -> vector<16x96xf32>
    %456 = vector.extract_strided_slice %455 {offsets = [0, 0], sizes = [16, 32], strides = [1, 1]} : vector<16x96xf32> to vector<16x32xf32>
    %457 = vector.extract_strided_slice %455 {offsets = [0, 32], sizes = [16, 32], strides = [1, 1]} : vector<16x96xf32> to vector<16x32xf32>
    %458 = vector.extract_strided_slice %455 {offsets = [0, 64], sizes = [16, 32], strides = [1, 1]} : vector<16x96xf32> to vector<16x32xf32>
    %c0_171 = arith.constant 0 : index
    %c0_172 = arith.constant 0 : index
    %459 = vector.load %arg15[%c0_171, %c0_172] : memref<32x32xf32, #tpu.memory_space<vmem>>, vector<32x32xf32>
    %c0_173 = arith.constant 0 : index
    %c0_174 = arith.constant 0 : index
    %460 = vector.load %arg16[%c0_173, %c0_174] : memref<32x32xf32, #tpu.memory_space<vmem>>, vector<32x32xf32>
    %cst_175 = arith.constant dense<0.000000e+00> : vector<32xf32>
    %461 = vector.multi_reduction <add>, %453, %cst_175 [0] : vector<16x32xf32> to vector<32xf32>
    %462 = vector.shape_cast %461 : vector<32xf32> to vector<1x32xf32>
    %cst_176 = arith.constant 1.600000e+01 : f32
    %463 = vector.broadcast %cst_176 : f32 to vector<1x32xf32>
    %464 = arith.divf %462, %463 : vector<1x32xf32>
    %cst_177 = arith.constant dense<0.000000e+00> : vector<1x32xf32>
    %465 = tpu.matmul %464, %459, %cst_177 {dimension_numbers = #tpu.dot_dimension_numbers<[1], [0], [0], [1], [0, 0, 1, 1], [], []>} : vector<1x32xf32>, vector<32x32xf32>, vector<1x32xf32> -> vector<1x32xf32>
    %cst_178 = arith.constant 0.000000e+00 : f32
    %466 = vector.broadcast %cst_178 : f32 to vector<1x16xf32>
    %cst_179 = arith.constant 0.000000e+00 : f32
    %467 = vector.broadcast %cst_179 : f32 to vector<4x16xf32>
    %468 = arith.cmpf oeq, %151, %467 : vector<4x16xf32>
    %469 = arith.extui %468 : vector<4x16xi1> to vector<4x16xi32>
    %470 = arith.sitofp %469 : vector<4x16xi32> to vector<4x16xf32>
    %cst_180 = arith.constant 0.000000e+00 : f32
    %471 = vector.broadcast %cst_180 : f32 to vector<1x1xf32>
    %cst_181 = arith.constant 0.000000e+00 : f32
    %472 = vector.broadcast %cst_181 : f32 to vector<4x128xf32>
    %c0_i32_182 = arith.constant 0 : i32
    %c32_i32_183 = arith.constant 32 : i32
    %473 = arith.addi %c0_i32_182, %c32_i32_183 : i32
    %c1_i32 = arith.constant 1 : i32
    %474:6 = scf.for %arg19 = %c0_i32_182 to %473 step %c1_i32 iter_args(%arg20 = %466, %arg21 = %470, %arg22 = %471, %arg23 = %471, %arg24 = %471, %arg25 = %472) -> (vector<1x16xf32>, vector<4x16xf32>, vector<1x1xf32>, vector<1x1xf32>, vector<1x1xf32>, vector<4x128xf32>)  : i32 {
      %cst_191 = arith.constant 1.000000e+00 : f32
      %495 = vector.broadcast %cst_191 : f32 to vector<1x16xf32>
      %496 = arith.subf %495, %arg20 : vector<1x16xf32>
      %497 = arith.mulf %496, %149 : vector<1x16xf32>
      %cst_192 = arith.constant dense<0xFF800000> : vector<1xf32>
      %498 = vector.multi_reduction <maximumf>, %497, %cst_192 [1] : vector<1x16xf32> to vector<1xf32>
      %499 = vector.shape_cast %498 : vector<1xf32> to vector<1x1xf32>
      %c0_i32_193 = arith.constant 0 : i32
      %500 = vector.broadcast %c0_i32_193 : i32 to vector<1x16xi32>
      %501 = arith.cmpi eq, %145, %500 : vector<1x16xi32>
      %cst_194 = arith.constant 1.000000e+00 : f32
      %502 = vector.broadcast %cst_194 : f32 to vector<1x16xf32>
      %503 = arith.subf %502, %arg20 : vector<1x16xf32>
      %cst_195 = arith.constant 1.000000e+00 : f32
      %504 = vector.broadcast %cst_195 : f32 to vector<1x16xf32>
      %505 = arith.select %501, %504, %503 : vector<1x16xi1>, vector<1x16xf32>
      %cst_196 = arith.constant dense<0.000000e+00> : vector<4x32xf32>
      %506 = tpu.matmul %arg21, %453, %cst_196 {dimension_numbers = #tpu.dot_dimension_numbers<[1], [0], [0], [1], [0, 0, 1, 1], [], []>} : vector<4x16xf32>, vector<16x32xf32>, vector<4x32xf32> -> vector<4x32xf32>
      %cst_197 = arith.constant dense<0.000000e+00> : vector<4x32xf32>
      %507 = tpu.matmul %506, %459, %cst_197 {dimension_numbers = #tpu.dot_dimension_numbers<[1], [0], [0], [1], [0, 0, 1, 1], [], []>} : vector<4x32xf32>, vector<32x32xf32>, vector<4x32xf32> -> vector<4x32xf32>
      %508 = vector.broadcast %465 : vector<1x32xf32> to vector<4x32xf32>
      %509 = arith.addf %507, %508 : vector<4x32xf32>
      %cst_198 = arith.constant 0.353553385 : f32
      %510 = vector.broadcast %cst_198 : f32 to vector<4x32xf32>
      %511 = arith.mulf %509, %510 : vector<4x32xf32>
      %512 = tpu.concatenate %511, %511, %511, %511 in 0 : vector<4x32xf32>, vector<4x32xf32>, vector<4x32xf32>, vector<4x32xf32> -> vector<16x32xf32>
      %513 = arith.mulf %512, %117 : vector<16x32xf32>
      %cst_199 = arith.constant dense<0.000000e+00> : vector<16x16xf32>
      %514 = tpu.matmul %513, %456, %cst_199 {dimension_numbers = #tpu.dot_dimension_numbers<[1], [1], [0], [0], [0, 0, 1, 0], [], []>} : vector<16x32xf32>, vector<16x32xf32>, vector<16x16xf32> -> vector<16x16xf32>
      %cst_200 = arith.constant 5.000000e-01 : f32
      %515 = vector.broadcast %cst_200 : f32 to vector<1x16xf32>
      %516 = arith.cmpf ogt, %505, %515 : vector<1x16xf32>
      %cst_201 = arith.constant -1.000000e+09 : f32
      %517 = vector.shape_cast %516 : vector<1x16xi1> to vector<1x16xi1>
      %518 = vector.broadcast %517 : vector<1x16xi1> to vector<16x16xi1>
      %519 = vector.broadcast %cst_201 : f32 to vector<16x16xf32>
      %520 = arith.select %518, %514, %519 : vector<16x16xi1>, vector<16x16xf32>
      %cst_202 = arith.constant dense<0xFF800000> : vector<16xf32>
      %521 = vector.multi_reduction <maximumf>, %520, %cst_202 [1] : vector<16x16xf32> to vector<16xf32>
      %522 = vector.shape_cast %521 : vector<16xf32> to vector<16x1xf32>
      %523 = vector.broadcast %522 : vector<16x1xf32> to vector<16x16xf32>
      %524 = arith.subf %520, %523 : vector<16x16xf32>
      %525 = math.exp %524 : vector<16x16xf32>
      %cst_203 = arith.constant dense<0.000000e+00> : vector<16xf32>
      %526 = vector.multi_reduction <add>, %525, %cst_203 [1] : vector<16x16xf32> to vector<16xf32>
      %527 = vector.shape_cast %526 : vector<16xf32> to vector<16x1xf32>
      %528 = tpu.reciprocal %527 {approx = true} : vector<16x1xf32> -> vector<16x1xf32>
      %529 = vector.broadcast %528 : vector<16x1xf32> to vector<16x16xf32>
      %530 = arith.mulf %525, %529 : vector<16x16xf32>
      %cst_204 = arith.constant dense<0.000000e+00> : vector<16x32xf32>
      %531 = tpu.matmul %530, %457, %cst_204 {dimension_numbers = #tpu.dot_dimension_numbers<[1], [0], [0], [1], [0, 0, 1, 1], [], []>} : vector<16x16xf32>, vector<16x32xf32>, vector<16x32xf32> -> vector<16x32xf32>
      %532 = arith.mulf %531, %117 : vector<16x32xf32>
      %cst_205 = arith.constant dense<0.000000e+00> : vector<4x32xf32>
      %533 = tpu.matmul %144, %532, %cst_205 {dimension_numbers = #tpu.dot_dimension_numbers<[1], [0], [0], [1], [0, 0, 1, 1], [], []>} : vector<4x16xf32>, vector<16x32xf32>, vector<4x32xf32> -> vector<4x32xf32>
      %cst_206 = arith.constant dense<0.000000e+00> : vector<4x32xf32>
      %534 = tpu.matmul %533, %460, %cst_206 {dimension_numbers = #tpu.dot_dimension_numbers<[1], [0], [0], [1], [0, 0, 1, 1], [], []>} : vector<4x32xf32>, vector<32x32xf32>, vector<4x32xf32> -> vector<4x32xf32>
      %cst_207 = arith.constant dense<0.000000e+00> : vector<4x16xf32>
      %535 = tpu.matmul %534, %458, %cst_207 {dimension_numbers = #tpu.dot_dimension_numbers<[1], [1], [0], [0], [0, 0, 1, 0], [], []>} : vector<4x32xf32>, vector<16x32xf32>, vector<4x16xf32> -> vector<4x16xf32>
      %cst_208 = arith.constant 0.176776692 : f32
      %536 = vector.broadcast %cst_208 : f32 to vector<4x16xf32>
      %537 = arith.mulf %535, %536 : vector<4x16xf32>
      %538 = math.tanh %537 : vector<4x16xf32>
      %cst_209 = arith.constant 1.000000e+01 : f32
      %539 = vector.broadcast %cst_209 : f32 to vector<4x16xf32>
      %540 = arith.mulf %539, %538 : vector<4x16xf32>
      %cst_210 = arith.constant 5.000000e-01 : f32
      %541 = vector.broadcast %cst_210 : f32 to vector<1x16xf32>
      %542 = arith.cmpf ogt, %505, %541 : vector<1x16xf32>
      %cst_211 = arith.constant -1.000000e+09 : f32
      %543 = vector.shape_cast %542 : vector<1x16xi1> to vector<1x16xi1>
      %544 = vector.broadcast %543 : vector<1x16xi1> to vector<4x16xi1>
      %545 = vector.broadcast %cst_211 : f32 to vector<4x16xf32>
      %546 = arith.select %544, %540, %545 : vector<4x16xi1>, vector<4x16xf32>
      %cst_212 = arith.constant dense<0xFF800000> : vector<4xf32>
      %547 = vector.multi_reduction <maximumf>, %546, %cst_212 [1] : vector<4x16xf32> to vector<4xf32>
      %548 = vector.shape_cast %547 : vector<4xf32> to vector<4x1xf32>
      %549 = vector.broadcast %548 : vector<4x1xf32> to vector<4x16xf32>
      %550 = arith.subf %546, %549 : vector<4x16xf32>
      %551 = math.exp %550 : vector<4x16xf32>
      %cst_213 = arith.constant dense<0.000000e+00> : vector<4xf32>
      %552 = vector.multi_reduction <add>, %551, %cst_213 [1] : vector<4x16xf32> to vector<4xf32>
      %553 = vector.shape_cast %552 : vector<4xf32> to vector<4x1xf32>
      %554 = math.log %553 : vector<4x1xf32>
      %555 = arith.addf %554, %548 : vector<4x1xf32>
      %556 = vector.broadcast %555 : vector<4x1xf32> to vector<4x16xf32>
      %557 = arith.subf %546, %556 : vector<4x16xf32>
      %cst_214 = arith.constant dense<0xFF800000> : vector<4xf32>
      %558 = vector.multi_reduction <maximumf>, %557, %cst_214 [1] : vector<4x16xf32> to vector<4xf32>
      %559 = vector.shape_cast %558 : vector<4xf32> to vector<4x1xf32>
      %560 = vector.broadcast %559 : vector<4x1xf32> to vector<4x16xf32>
      %561 = arith.cmpf oge, %557, %560 : vector<4x16xf32>
      %cst_215 = arith.constant 1.600000e+01 : f32
      %562 = vector.broadcast %cst_215 : f32 to vector<4x16xf32>
      %563 = arith.select %561, %151, %562 : vector<4x16xi1>, vector<4x16xf32>
      %cst_216 = arith.constant dense<0x7F800000> : vector<4xf32>
      %564 = vector.multi_reduction <minimumf>, %563, %cst_216 [1] : vector<4x16xf32> to vector<4xf32>
      %565 = vector.shape_cast %564 : vector<4xf32> to vector<4x1xf32>
      %566 = vector.broadcast %565 : vector<4x1xf32> to vector<4x16xf32>
      %567 = arith.cmpf oeq, %151, %566 : vector<4x16xf32>
      %568 = arith.extui %567 : vector<4x16xi1> to vector<4x16xi32>
      %569 = arith.sitofp %568 : vector<4x16xi32> to vector<4x16xf32>
      %cst_217 = arith.constant 5.000000e-01 : f32
      %570 = vector.broadcast %cst_217 : f32 to vector<4x16xf32>
      %571 = arith.cmpf ogt, %569, %570 : vector<4x16xf32>
      %cst_218 = arith.constant -1.000000e+09 : f32
      %572 = vector.shape_cast %559 : vector<4x1xf32> to vector<4x1xf32>
      %573 = vector.broadcast %572 : vector<4x1xf32> to vector<4x16xf32>
      %574 = vector.broadcast %cst_218 : f32 to vector<4x16xf32>
      %575 = arith.select %571, %573, %574 : vector<4x16xi1>, vector<4x16xf32>
      %cst_219 = arith.constant dense<0xFF800000> : vector<16xf32>
      %576 = vector.multi_reduction <maximumf>, %575, %cst_219 [0] : vector<4x16xf32> to vector<16xf32>
      %577 = vector.shape_cast %576 : vector<16xf32> to vector<1x16xf32>
      %cst_220 = arith.constant 5.000000e-01 : f32
      %578 = vector.broadcast %cst_220 : f32 to vector<4x16xf32>
      %579 = arith.cmpf ogt, %569, %578 : vector<4x16xf32>
      %580 = vector.broadcast %577 : vector<1x16xf32> to vector<4x16xf32>
      %581 = arith.cmpf oge, %575, %580 : vector<4x16xf32>
      %582 = arith.andi %579, %581 : vector<4x16xi1>
      %cst_221 = arith.constant 4.000000e+00 : f32
      %583 = vector.broadcast %cst_221 : f32 to vector<4x16xf32>
      %584 = arith.select %582, %153, %583 : vector<4x16xi1>, vector<4x16xf32>
      %cst_222 = arith.constant dense<0x7F800000> : vector<16xf32>
      %585 = vector.multi_reduction <minimumf>, %584, %cst_222 [0] : vector<4x16xf32> to vector<16xf32>
      %586 = vector.shape_cast %585 : vector<16xf32> to vector<1x16xf32>
      %c0_i32_223 = arith.constant 0 : i32
      %587 = vector.broadcast %c0_i32_223 : i32 to vector<1x16xi32>
      %588 = arith.cmpi eq, %145, %587 : vector<1x16xi32>
      %589 = vector.broadcast %586 : vector<1x16xf32> to vector<4x16xf32>
      %590 = arith.cmpf oeq, %589, %153 : vector<4x16xf32>
      %591 = arith.extui %590 : vector<4x16xi1> to vector<4x16xi32>
      %592 = arith.sitofp %591 : vector<4x16xi32> to vector<4x16xf32>
      %cst_224 = arith.constant 1.000000e+00 : f32
      %593 = vector.shape_cast %588 : vector<1x16xi1> to vector<1x16xi1>
      %594 = vector.broadcast %593 : vector<1x16xi1> to vector<4x16xi1>
      %595 = vector.broadcast %cst_224 : f32 to vector<4x16xf32>
      %596 = arith.select %594, %595, %592 : vector<4x16xi1>, vector<4x16xf32>
      %597 = arith.mulf %569, %596 : vector<4x16xf32>
      %cst_225 = arith.constant dense<0.000000e+00> : vector<4xf32>
      %598 = vector.multi_reduction <add>, %597, %cst_225 [1] : vector<4x16xf32> to vector<4xf32>
      %599 = vector.shape_cast %598 : vector<4xf32> to vector<4x1xf32>
      %cst_226 = arith.constant 5.000000e-01 : f32
      %600 = vector.broadcast %cst_226 : f32 to vector<4x1xf32>
      %601 = arith.cmpf ogt, %599, %600 : vector<4x1xf32>
      %602 = vector.shape_cast %601 : vector<4x1xi1> to vector<4x1xi1>
      %603 = vector.broadcast %602 : vector<4x1xi1> to vector<4x16xi1>
      %604 = arith.select %603, %569, %arg21 : vector<4x16xi1>, vector<4x16xf32>
      %cst_227 = arith.constant 1.000000e+00 : f32
      %605 = vector.broadcast %cst_227 : f32 to vector<4x1xf32>
      %606 = arith.subf %605, %599 : vector<4x1xf32>
      %cst_228 = arith.constant dense<0.000000e+00> : vector<1xf32>
      %607 = vector.multi_reduction <add>, %606, %cst_228 [0] : vector<4x1xf32> to vector<1xf32>
      %608 = vector.shape_cast %607 : vector<1xf32> to vector<1x1xf32>
      %609 = arith.addf %arg23, %608 : vector<1x1xf32>
      %cst_229 = arith.constant dense<0xFF800000> : vector<16xf32>
      %610 = vector.multi_reduction <maximumf>, %604, %cst_229 [0] : vector<4x16xf32> to vector<16xf32>
      %611 = vector.shape_cast %610 : vector<16xf32> to vector<1x16xf32>
      %c0_i32_230 = arith.constant 0 : i32
      %612 = vector.broadcast %c0_i32_230 : i32 to vector<1x16xi32>
      %613 = arith.cmpi eq, %145, %612 : vector<1x16xi32>
      %614 = arith.maximumf %arg20, %611 : vector<1x16xf32>
      %cst_231 = arith.constant 0.000000e+00 : f32
      %615 = vector.broadcast %cst_231 : f32 to vector<1x16xf32>
      %616 = arith.select %613, %615, %614 : vector<1x16xi1>, vector<1x16xf32>
      %cst_232 = arith.constant dense<0.000000e+00> : vector<1xf32>
      %617 = vector.multi_reduction <add>, %559, %cst_232 [0] : vector<4x1xf32> to vector<1xf32>
      %618 = vector.shape_cast %617 : vector<1xf32> to vector<1x1xf32>
      %619 = arith.mulf %499, %618 : vector<1x1xf32>
      %620 = arith.addf %arg22, %619 : vector<1x1xf32>
      %621 = arith.addf %arg24, %499 : vector<1x1xf32>
      %622 = arith.mulf %604, %151 : vector<4x16xf32>
      %cst_233 = arith.constant dense<0.000000e+00> : vector<4xf32>
      %623 = vector.multi_reduction <add>, %622, %cst_233 [1] : vector<4x16xf32> to vector<4xf32>
      %624 = vector.shape_cast %623 : vector<4xf32> to vector<4x1xf32>
      %625 = vector.broadcast %arg19 : i32 to vector<4x128xi32>
      %626 = arith.cmpi eq, %154, %625 : vector<4x128xi32>
      %627 = vector.shape_cast %624 : vector<4x1xf32> to vector<4x1xf32>
      %628 = vector.broadcast %627 : vector<4x1xf32> to vector<4x128xf32>
      %629 = arith.select %626, %628, %arg25 : vector<4x128xi1>, vector<4x128xf32>
      scf.yield %616, %604, %620, %609, %621, %629 : vector<1x16xf32>, vector<4x16xf32>, vector<1x1xf32>, vector<1x1xf32>, vector<1x1xf32>, vector<4x128xf32>
    }
    %c32_i32_184 = arith.constant 32 : i32
    %c0_i32_185 = arith.constant 0 : i32
    %475 = vector.broadcast %c0_i32_185 : i32 to vector<1x128xi32>
    %476 = arith.cmpi eq, %155, %475 : vector<1x128xi32>
    %c1_i32_186 = arith.constant 1 : i32
    %477 = vector.broadcast %c1_i32_186 : i32 to vector<1x128xi32>
    %478 = arith.cmpi eq, %155, %477 : vector<1x128xi32>
    %c2_i32 = arith.constant 2 : i32
    %479 = vector.broadcast %c2_i32 : i32 to vector<1x128xi32>
    %480 = arith.cmpi eq, %155, %479 : vector<1x128xi32>
    %cst_187 = arith.constant 0.000000e+00 : f32
    %481 = vector.shape_cast %474#4 : vector<1x1xf32> to vector<1x1xf32>
    %482 = vector.broadcast %481 : vector<1x1xf32> to vector<1x128xf32>
    %483 = vector.broadcast %cst_187 : f32 to vector<1x128xf32>
    %484 = arith.select %480, %482, %483 : vector<1x128xi1>, vector<1x128xf32>
    %485 = vector.shape_cast %474#3 : vector<1x1xf32> to vector<1x1xf32>
    %486 = vector.broadcast %485 : vector<1x1xf32> to vector<1x128xf32>
    %487 = arith.select %478, %486, %484 : vector<1x128xi1>, vector<1x128xf32>
    %488 = vector.shape_cast %474#2 : vector<1x1xf32> to vector<1x1xf32>
    %489 = vector.broadcast %488 : vector<1x1xf32> to vector<1x128xf32>
    %490 = arith.select %476, %489, %487 : vector<1x128xi1>, vector<1x128xf32>
    %cst_188 = arith.constant 0.000000e+00 : f32
    %491 = vector.broadcast %cst_188 : f32 to vector<3x128xf32>
    %492 = tpu.concatenate %490, %491 in 0 : vector<1x128xf32>, vector<3x128xf32> -> vector<4x128xf32>
    %493 = tpu.concatenate %474#5, %492 in 0 : vector<4x128xf32>, vector<4x128xf32> -> vector<8x128xf32>
    %c0_189 = arith.constant 0 : index
    %c0_190 = arith.constant 0 : index
    %494 = vector.load %arg18[%c0_189, %c0_190] : memref<8x128xf32, #tpu.memory_space<vmem>>, vector<8x128xf32>
    tpu.vector_store %arg18[%c0_189, %c0_190], %493 {strides = array<i32>} : memref<8x128xf32, #tpu.memory_space<vmem>>, vector<8x128xf32>,
    return
  }
  func.func @transform_0(%arg0: i32) -> (i32, i32) {
    %c0_i32 = arith.constant 0 : i32
    %c0_i32_0 = arith.constant 0 : i32
    return %arg0, %c0_i32 : i32, i32
  }
  func.func @transform_1(%arg0: i32) -> (i32, i32) {
    %c0_i32 = arith.constant 0 : i32
    %c0_i32_0 = arith.constant 0 : i32
    %c0_i32_1 = arith.constant 0 : i32
    return %c0_i32, %c0_i32_0 : i32, i32
  }
  func.func @transform_2(%arg0: i32) -> (i32, i32) {
    %c0_i32 = arith.constant 0 : i32
    %c0_i32_0 = arith.constant 0 : i32
    %c0_i32_1 = arith.constant 0 : i32
    return %c0_i32, %c0_i32_0 : i32, i32
  }
  func.func @transform_3(%arg0: i32) -> (i32, i32, i32) {
    %c0_i32 = arith.constant 0 : i32
    %c0_i32_0 = arith.constant 0 : i32
    %c0_i32_1 = arith.constant 0 : i32
    %c0_i32_2 = arith.constant 0 : i32
    return %c0_i32, %c0_i32_0, %c0_i32_1 : i32, i32, i32
  }
  func.func @transform_4(%arg0: i32) -> (i32, i32, i32) {
    %c0_i32 = arith.constant 0 : i32
    %c0_i32_0 = arith.constant 0 : i32
    %c0_i32_1 = arith.constant 0 : i32
    %c0_i32_2 = arith.constant 0 : i32
    return %c0_i32, %c0_i32_0, %c0_i32_1 : i32, i32, i32
  }
  func.func @transform_5(%arg0: i32) -> (i32, i32) {
    %c0_i32 = arith.constant 0 : i32
    %c0_i32_0 = arith.constant 0 : i32
    %c0_i32_1 = arith.constant 0 : i32
    return %c0_i32, %c0_i32_0 : i32, i32
  }
  func.func @transform_6(%arg0: i32) -> (i32, i32) {
    %c0_i32 = arith.constant 0 : i32
    %c0_i32_0 = arith.constant 0 : i32
    %c0_i32_1 = arith.constant 0 : i32
    return %c0_i32, %c0_i32_0 : i32, i32
  }
  func.func @transform_7(%arg0: i32) -> (i32, i32, i32) {
    %c0_i32 = arith.constant 0 : i32
    %c0_i32_0 = arith.constant 0 : i32
    %c0_i32_1 = arith.constant 0 : i32
    %c0_i32_2 = arith.constant 0 : i32
    return %c0_i32, %c0_i32_0, %c0_i32_1 : i32, i32, i32
  }
  func.func @transform_8(%arg0: i32) -> (i32, i32) {
    %c0_i32 = arith.constant 0 : i32
    %c0_i32_0 = arith.constant 0 : i32
    %c0_i32_1 = arith.constant 0 : i32
    return %c0_i32, %c0_i32_0 : i32, i32
  }
  func.func @transform_9(%arg0: i32) -> (i32, i32, i32) {
    %c0_i32 = arith.constant 0 : i32
    %c0_i32_0 = arith.constant 0 : i32
    %c0_i32_1 = arith.constant 0 : i32
    %c0_i32_2 = arith.constant 0 : i32
    return %c0_i32, %c0_i32_0, %c0_i32_1 : i32, i32, i32
  }
  func.func @transform_10(%arg0: i32) -> (i32, i32) {
    %c0_i32 = arith.constant 0 : i32
    %c0_i32_0 = arith.constant 0 : i32
    %c0_i32_1 = arith.constant 0 : i32
    return %c0_i32, %c0_i32_0 : i32, i32
  }
  func.func @transform_11(%arg0: i32) -> (i32, i32) {
    %c0_i32 = arith.constant 0 : i32
    %c0_i32_0 = arith.constant 0 : i32
    %c0_i32_1 = arith.constant 0 : i32
    return %c0_i32, %c0_i32_0 : i32, i32
  }
  func.func @transform_12(%arg0: i32) -> (i32, i32) {
    %c0_i32 = arith.constant 0 : i32
    %c0_i32_0 = arith.constant 0 : i32
    %c0_i32_1 = arith.constant 0 : i32
    return %c0_i32, %c0_i32_0 : i32, i32
  }
  func.func @transform_13(%arg0: i32) -> (i32, i32) {
    %c0_i32 = arith.constant 0 : i32
    %c0_i32_0 = arith.constant 0 : i32
    %c0_i32_1 = arith.constant 0 : i32
    return %c0_i32, %c0_i32_0 : i32, i32
  }
  func.func @transform_14(%arg0: i32) -> (i32, i32) {
    %c0_i32 = arith.constant 0 : i32
    %c0_i32_0 = arith.constant 0 : i32
    %c0_i32_1 = arith.constant 0 : i32
    return %c0_i32, %c0_i32_0 : i32, i32
  }
  func.func @transform_15(%arg0: i32) -> (i32, i32) {
    %c0_i32 = arith.constant 0 : i32
    %c0_i32_0 = arith.constant 0 : i32
    %c0_i32_1 = arith.constant 0 : i32
    return %c0_i32, %c0_i32_0 : i32, i32
  }
  func.func @transform_16(%arg0: i32) -> (i32, i32) {
    %c0_i32 = arith.constant 0 : i32
    %c0_i32_0 = arith.constant 0 : i32
    return %arg0, %c0_i32 : i32, i32
  }
  func.func @transform_17(%arg0: i32) -> (i32, i32) {
    %c0_i32 = arith.constant 0 : i32
    %c0_i32_0 = arith.constant 0 : i32
    return %arg0, %c0_i32 : i32, i32
  }
}

</mosaic_0001>

<bundles_post_ra>
// kernel: parco_forward.1
= control target key start
LH: loop header
LB: loop body
LE: loop exit
PB: predicated region body
PF: predicated region fallthrough
CT: control target
= control target key end

     0   :  { %s7304_s0 = inlined_call_operand.vmem [shape: f32[32,4], index: 0, kind: input, shape index: {}]   ;;  %s7305_s1 = inlined_call_operand.vmem [shape: f32[4,32], index: 1, kind: input, shape index: {}]   ;;  %s7306_s2 = inlined_call_operand.vmem [shape: f32[1,32], index: 2, kind: input, shape index: {}]   ;;  %s7307_s3 = inlined_call_operand.vmem [shape: f32[3,32,96], index: 3, kind: input, shape index: {}]   ;;  %s7308_s4 = inlined_call_operand.vmem [shape: f32[3,32,32], index: 4, kind: input, shape index: {}]   ;;  %s7309_s5 = inlined_call_operand.vmem [shape: f32[3,32], index: 5, kind: input, shape index: {}]   ;;  %s7310_s6 = inlined_call_operand.vmem [shape: f32[3,32], index: 6, kind: input, shape index: {}]   ;;  %s7311_s7 = inlined_call_operand.vmem [shape: f32[3,32,64], index: 7, kind: input, shape index: {}]   ;;  %s7312_s8 = inlined_call_operand.hbm [shape: f32[3,64], index: 8, kind: input, shape index: {}]   ;;  %s7313_s9 = inlined_call_operand.vmem [shape: f32[3,64,32], index: 9, kind: input, shape index: {}]   ;;  %s7314_s10 = inlined_call_operand.hbm [shape: f32[3,32], index: 10, kind: input, shape index: {}]   ;;  %s7315_s11 = inlined_call_operand.vmem [shape: f32[3,32], index: 11, kind: input, shape index: {}]   ;;  %s7316_s12 = inlined_call_operand.vmem [shape: f32[3,32], index: 12, kind: input, shape index: {}]   ;;  %s7317_s13 = inlined_call_operand.vmem [shape: f32[32,96], index: 13, kind: input, shape index: {}]   ;;  %s7318_s14 = inlined_call_operand.hbm [shape: f32[32,32], index: 14, kind: input, shape index: {}]   ;;  %s7319_s15 = inlined_call_operand.hbm [shape: f32[32,32], index: 15, kind: input, shape index: {}]   ;;  %s7320_s16 = inlined_call_operand.hbm [shape: f32[32,32], index: 16, kind: output, shape index: {0}]   ;;  %s7321_s17 = inlined_call_operand.hbm [shape: f32[16,128], index: 17, kind: output, shape index: {1}]  }
   0x1   :  { %7335 = sst [smem:[#allocation25_spill]] %s7304_s0 }
   0x2   :  { %7336 = sst [smem:[#allocation26_spill]] %s7305_s1 }
   0x3   :  { %7337 = sst [smem:[#allocation27_spill]] %s7306_s2 }
   0x4   :  { %7338 = sst [smem:[#allocation28_spill]] %s7312_s8 }
   0x5   :  { %7339 = sst [smem:[#allocation29_spill]] %s7314_s10 }
   0x6   :  { %7340 = sst [smem:[#allocation30_spill]] %s7320_s16 }
   0x7   :  { %7341 = sst [smem:[#allocation31_spill]] %s7321_s17 }
   0x8   :  { %23 = vsyncpa [#allocation3], 0 }
   0x9   :  { %24 = vsyncpa [#allocation6], 0 }
   0xa   :  { %25 = vsyncpa [#allocation9], 0 }
   0xb   :  { %26 = vsyncpa [#allocation4], 0 }
   0xc   :  { %28 = vsyncpa [#allocation4 + $0x1], 0 }
   0xd   :  { %29 = vsyncpa [#allocation12], 0 }
   0xe   :  { %31 = vsyncpa [#allocation12 + $0x1], 0  ;;  %s6243_s24 = smov 0   ;;  %s6245_s25 = smov 0  }
   0xf   :  { %s6247_s26 = smov 0   ;;  %s6249_s27 = smov 0  }
  0x10 LB: > { %7342 = sst [smem:[#allocation18_spill]] %s6091_s24  ;;  %s6264_s28 = sadd.s32 4294967295, %s6103_s27   ;;  %s6103_s27 = sphi %s6249_s27, %s7389_s27   ;;  %s6099_s26 = sphi %s6247_s26, %s7391_s26   ;;  %s6095_s25 = sphi %s6245_s25, %s7393_s25   ;;  %s6091_s24 = sphi %s6243_s24, %s7392_s24  }
  0x11   : > { %7343 = sst [smem:[#allocation19_spill]] %s6099_s26  ;;  %s4623_s29 = sadd.s32 4294967294, %s6103_s27  }
  0x12   : > { %7344 = sst [smem:[#allocation20_spill]] %s6103_s27  ;;  %s6268_s0 = sadd.s32 1, %s6103_s27  }
  0x13   : > { %7345 = sst [smem:[#allocation21_spill]] %s6268_s0  ;;  %s385_s30 = sadd.s32 1, %s6099_s26 }
  0x14   : > { %s382_s18 = ssub.s32 %s6103_s27, %s6268_s0  ;;  %p395_p0 = scmp.ne.s32.totalorder %s6099_s26, %s6095_s25 }
  0x15   : > { %p383_p1 = scmp.eq.s32.totalorder %s382_s18, 0  ;;  %p396_p2 = scmp.eq.s32.totalorder %s6264_s28, 1 }
  0x16   : > { %p401_p3 = scmp.ne.s32.totalorder %s6095_s25, %s6091_s24  ;;  %p402_p4 = scmp.eq.s32.totalorder %s4623_s29, 1 }
  0x17   : > { %s6279_s19 = scalar_select %p383_p1, %s6099_s26, %s385_s30  }
  0x18   : > { %p6281_p5 = por %p396_p2, %p395_p0  ;;  %p6285_p6 = por %p402_p4, %p401_p3 }
  0x19   : > { %7346 = sst [smem:[#allocation22_spill]] %s6279_s19  ;;  %p4624_p7 = scmp.ge.s32.totalorder %s6103_s27, 1 }
  0x1a   : > { %s7347_s1 = scalar_select %p6281_p5, 1, 0 }
  0x1b   : > { %s7349_s20 = scalar_select %p6285_p6, 1, 0 }
  0x1c   : > { %7348 = sst [smem:[#allocation23_spill]] %s7347_s1  ;;  %p435_p8 = scmp.lt.s32.totalorder %s6103_s27, 3 }
  0x1d   : > { %7350 = sst [smem:[#allocation24_spill]] %s7349_s20  ;;  %p7329_p9 = scmp.eq.s32.totalorder %s6264_s28, 0 }
  0x1e   : > { %p6292_p10 = pnand %p4624_p7, %p435_p8  ;;  %s6133_s22 = smov [#allocation5]  }
  0x1f   : > { %s483_s23 = sshll.u32 %s6133_s22, 4  ;;  %s6134_s29 = smov [#allocation2]   ;;  %s484_s23 = int_to_ptr.vmem [resolvable:$true] %s483_s23 }
  0x20   : > { %s7351_s21 = scalar_select %p6292_p10, 1, 0 }
  0x21   : > { %p5560_p11 = pneg %p6292_p10  ;;  %s469_s30 = sshll.u32 %s6134_s29, 4  ;;  %s6304_s30 = int_to_ptr.vmem [resolvable:$true] %s469_s30 }
  0x22   : > { %s6135_s19 = smov [#allocation7]   ;;  %s7353_s10 = sld [smem:[#allocation29_spill]] }
  0x23   : > { %p6300_p12 = pnand %p7329_p9, %p5560_p11  ;;  %s502_s26 = sshll.u32 %s6135_s19, 4  ;;  %s6306_s26 = int_to_ptr.vmem [resolvable:$true] %s502_s26 }
  0x25   : > { %p6316_p0 = pneg %p6300_p12 }
  0x28   : > { %s5857_s22 = scalar_lea.hbm %s7353_s10, 64 }
  0x29   : > { %p5858_p13 = scmp.ne.s32.totalorder %s7353_s10, %s5857_s22  ;;  %p5864_p3 = scmp.lt.u32.totalorder %s5857_s22, %s7353_s10 }
  0x2b   : > { %p5860_p1 = pnand %p6316_p0, %p5858_p13 }
  0x2d   : > { %p5861_p2 = pneg %p5860_p1 }
  0x2f   : > { %p5866_p4 = pnand %p5864_p3, %p5861_p2 }
  0x31   : > { %5869 = shalt.err (!%p5866_p4)
}
  0x32   : > { %s5870_s0 = scalar_lea.vmem %s484_s23, 64  ;;  %p5878_p9 = scmp.lt.s32.totalorder %s484_s23, %s484_s23 }
  0x33   : > { %p5871_p7 = scmp.ne.s32.totalorder %s484_s23, %s5870_s0  ;;  %p5879_p6 = scmp.lt.s32.totalorder %s5870_s0, %s5870_s0 }
  0x35   : > { %p5873_p8 = pnand %p5871_p7, %p6316_p0  ;;  %p5880_p5 = por %p5879_p6, %p5878_p9 }
  0x37   : > { %p5874_p11 = pneg %p5873_p8 }
  0x39   : > { %p5881_p10 = pnand %p5880_p5, %p5874_p11 }
  0x3b   : > { %5884 = shalt.err (!%p5881_p10)
}
  0x3c   : > { %5566 = dma.hbm_to_vmem [thread:$0]  (!%p6300_p12), %s7353_s10, 64, %s484_s23, [#allocation6]  }
  0x3d   : > { %s7355_s8 = sld [smem:[#allocation28_spill]] }
  0x43   : > { %s5885_s22 = scalar_lea.hbm %s7355_s8, 64 }
  0x44   : > { %p5886_p13 = scmp.ne.s32.totalorder %s7355_s8, %s5885_s22  ;;  %p5892_p5 = scmp.lt.u32.totalorder %s5885_s22, %s7355_s8 }
  0x46   : > { %p5888_p1 = pnand %p5886_p13, %p6316_p0 }
  0x48   : > { %p5889_p6 = pneg %p5888_p1 }
  0x4a   : > { %p5894_p9 = pnand %p5892_p5, %p5889_p6 }
  0x4c   : > { %5897 = shalt.err (!%p5894_p9)
}
  0x4d   : > { %s5898_s23 = scalar_lea.vmem %s6304_s30, 64  ;;  %p5906_p4 = scmp.lt.s32.totalorder %s6304_s30, %s6304_s30 }
  0x4e   : > { %p5899_p10 = scmp.ne.s32.totalorder %s6304_s30, %s5898_s23  ;;  %p5907_p7 = scmp.lt.s32.totalorder %s5898_s23, %s5898_s23 }
  0x50   : > { %p5901_p2 = pnand %p5899_p10, %p6316_p0  ;;  %p5908_p8 = por %p5907_p7, %p5906_p4 }
  0x52   : > { %p5902_p3 = pneg %p5901_p2 }
  0x54   : > { %p5909_p11 = pnand %p5908_p8, %p5902_p3 }
  0x56   : > { %5912 = shalt.err (!%p5909_p11)
}
  0x57   : > { %5563 = dma.hbm_to_vmem [thread:$0]  (!%p6300_p12), %s7355_s8, 64, %s6304_s30, [#allocation3]  }
  0x58   : > { %s5913_s17 = scalar_lea.hbm %s7318_s14, 512 }
  0x59   : > { %p5914_p13 = scmp.ne.s32.totalorder %s7318_s14, %s5913_s17  ;;  %p5920_p5 = scmp.lt.u32.totalorder %s5913_s17, %s7318_s14 }
  0x5b   : > { %p5916_p1 = pnand %p5914_p13, %p6316_p0 }
  0x5d   : > { %p5917_p6 = pneg %p5916_p1 }
  0x5f   : > { %p5922_p9 = pnand %p5920_p5, %p5917_p6 }
  0x61   : > { %5925 = shalt.err (!%p5922_p9)
}
  0x62   : > { %s5926_s30 = scalar_lea.vmem %s6306_s26, 512  ;;  %p5934_p4 = scmp.lt.s32.totalorder %s6306_s26, %s6306_s26 }
  0x63   : > { %p5927_p10 = scmp.ne.s32.totalorder %s6306_s26, %s5926_s30  ;;  %p5935_p7 = scmp.lt.s32.totalorder %s5926_s30, %s5926_s30 }
  0x65   : > { %p5929_p2 = pnand %p5927_p10, %p6316_p0  ;;  %p5936_p8 = por %p5935_p7, %p5934_p4 }
  0x67   : > { %p5930_p3 = pneg %p5929_p2 }
  0x69   : > { %p5937_p11 = pnand %p5936_p8, %p5930_p3 }
  0x6b   : > { %5940 = shalt.err (!%p5937_p11)
}
  0x6c   : > { %s6136_s23 = smov 128   ;;  %s6137_s16 = smov 8  }
  0x6d   : > { %5569 = dma.hbm_to_vmem [thread:$0]  (!%p6300_p12), %s7318_s14, 512, %s6306_s26, [#allocation6], %s6136_s23, %s6136_s23, %s6137_s16  }
  0x6e   : > { %s6138_s27 = smov [#allocation8]   ;;  %s5941_s19 = scalar_lea.hbm %s7319_s15, 512 }
  0x6f   : > { %s515_s17 = sshll.u32 %s6138_s27, 4  ;;  %p5942_p13 = scmp.ne.s32.totalorder %s7319_s15, %s5941_s19  ;;  %s516_s17 = int_to_ptr.vmem [resolvable:$true] %s515_s17 }
  0x70   : > { %p5948_p5 = scmp.lt.u32.totalorder %s5941_s19, %s7319_s15 }
  0x71   : > { %p5944_p1 = pnand %p5942_p13, %p6316_p0 }
  0x73   : > { %p5945_p6 = pneg %p5944_p1 }
  0x75   : > { %p5950_p9 = pnand %p5948_p5, %p5945_p6 }
  0x77   : > { %5953 = shalt.err (!%p5950_p9)
}
  0x78   : > { %s5954_s26 = scalar_lea.vmem %s516_s17, 512  ;;  %p5962_p4 = scmp.lt.s32.totalorder %s516_s17, %s516_s17 }
  0x79   : > { %p5955_p10 = scmp.ne.s32.totalorder %s516_s17, %s5954_s26  ;;  %p5963_p7 = scmp.lt.s32.totalorder %s5954_s26, %s5954_s26 }
  0x7b   : > { %p5957_p2 = pnand %p5955_p10, %p6316_p0  ;;  %p5964_p8 = por %p5963_p7, %p5962_p4 }
  0x7d   : > { %p5958_p3 = pneg %p5957_p2 }
  0x7f   : > { %p5965_p11 = pnand %p5964_p8, %p5958_p3 }
  0x81   : > { %5968 = shalt.err (!%p5965_p11)
}
  0x82   : > { %5572 = dma.hbm_to_vmem [thread:$0]  (!%p6300_p12), %s7319_s15, 512, %s516_s17, [#allocation9], %s6136_s23, %s6136_s23, %s6137_s16  }
  0x83   : > { %p7356_p13 = scmp.ne.s32.totalorder %s7351_s21, 0 }
  0x84   : > { %p7357_p1 = scmp.eq.s32.totalorder (!%p7356_p13), %s6264_s28, 0 }
  0x85   : > { %540 = sbr.rel (%p7356_p13) target bundleno = 9059 (0x2363), region = 84 }
  0x8c   : > { %6070 = dma.done.wait (%p7357_p1), [#allocation3], 64   ;;  %p7358_p0 = pmov %p7357_p1 }
  0x8e   : > { %6072 = vsyncadd (%p7358_p0), [#allocation3], 4294967232  ;;  %p7359_p6 = pmov %p7358_p0 }
  0x8f   : > { %p7360_p5 = pmov %p7358_p0 }
  0x90   : > { %6074 = dma.done.wait (%p7359_p6), [#allocation6], 576  }
  0x91   : > { %6076 = vsyncadd (%p7360_p5), [#allocation6], 4294966720  ;;  %p7361_p9 = pmov %p7358_p0 }
  0x92   : > { %p7362_p12 = pmov %p7358_p0 }
  0x93   : > { %6078 = dma.done.wait (%p7361_p9), [#allocation9], 512  }
  0x94   : > { %6080 = vsyncadd (%p7362_p12), [#allocation9], 4294966784  ;;  %s4637_s8 = sshll.u32 %s6264_s28, 1  ;;  %s6412_s10 = sand.u32 1, %s6095_s25   ;;  %vm955_vm0 = vcmask 1043456   ;;  %vm948_vm1 = vcmask 31744   ;;  %v616_v13 = vlaneseq }
  0x95   : > { %p610_p10 = scmp.lt.s32.totalorder %s4637_s8, 3  ;;  %s4636_s21 = sshll.u32 %s6412_s10, 3  ;;  %v6418_v0 = vld [vmem:[#allocation8] sm:$0xff]  ;;  %v6420_v1 = vld [vmem:[#allocation8 + $0x8] sm:$0xff]  ;;  %v6422_v2 = vld [vmem:[#allocation8 + $0x10] sm:$0xff]  ;;  %v6139_v15 = vmov 0.0  }
  0x96   : > { %s7363_s16 = sld [smem:[#allocation25_spill]]  ;;  %v6424_v3 = vld [vmem:[#allocation8 + $0x18] sm:$0xff]  ;;  %s7364_s22 = sld [smem:[#allocation26_spill]]  ;;  %v1037_v7 = vld [vmem:[%s7307_s3] sm:$0xff]  ;;  %v1039_v10 = vld [vmem:[%s7307_s3 + $0x10] sm:$0xff]  ;;  %v6443_v14 = vand.u32 127, %v616_v13 }
  0x97   : > { %s7395_s8 = smov (!%p610_p10, %s4637_s8), 3  ;;  %v1038_v8 = vld [vmem:[%s7307_s3 + $0x8] sm:$0xff]  ;;  %v1040_v11 = vld [vmem:[%s7307_s3 + $0x18] sm:$0xff]  ;;  %s4635_s29 = sshll.u32 %s6412_s10, 4  ;;  %vm1034_vm3 = vcmask 261120   ;;  %v6488_v29 = vshrl.u32 %v616_v13, 7 }
  0x98   : > { %s4638_s18 = sshll.u32 %s7395_s8, 3  ;;  %v5344_v9 = vpack.c.bf16 %v1038_v8, %v1037_v7  ;;  %v5348_v12 = vpack.c.bf16 %v1040_v11, %v1039_v10  ;;  %vm933_vm2 = vcmp.ne.s32.totalorder %v6443_v14, 0  ;;  %s7365_s2 = sld [smem:[#allocation27_spill]]  ;;  %v6470_v22 = vcvt.s32.f32 %v6443_v14 }
  0x99   : > { %v6447_v16 = vsel %vm933_vm2, 1.0, %v6139_v15  ;;  %vm652_vm5 = vcmp.lt.s32.totalorder %v6443_v14, 8  ;;  %vm710_vm6 = vcmp.ge.s32.totalorder %v6443_v14, 8  ;;  %vm711_vm7 = vcmp.lt.s32.totalorder %v6443_v14, 16  ;;  %s6140_s17 = smov 96   ;;  %s6141_s20 = smov 64  }
  0x9a   : > { %5345 = vmatprep.subr.bf16.mxu1 %v5344_v9  ;;  %vm3714_vm4 = vcmp.eq.f32.partialorder %v6470_v22, 0.0  ;;  %v6480_v25 = vsel %vm652_vm5, 1.0, %v6139_v15  ;;  %vm6494_vm8 = vmand %vm710_vm6, %vm711_vm7  ;;  %vm863_vm9 = vcmp.lt.s32.totalorder %v6488_v29, 4  ;;  %vm875_vm10 = vcmp.ge.s32.totalorder %v6488_v29, 4  ;;  %s7046_s26 = scalar_lea.vmem [#allocation11], %s4636_s21  ;;  %s7061_s1 = smov 0  }
  0x9b   : > { %5347 = vmatpush3.bf16.msra.mxu1 %v5344_v9  ;;  %v6474_v23 = vsel %vm3714_vm4, 1.0, %v6139_v15   ;;  %v937_v32 = vcvt.s32.f32 %v6488_v29  ;;  %vm867_vm11 = vmand %vm863_vm9, %vm652_vm5  ;;  %vm769_vm12 = vcmp.ge.s32.totalorder %v6443_v14, 16  ;;  %vm770_vm13 = vcmp.lt.s32.totalorder %v6443_v14, 24 }
  0x9c   : > { %s613_s27 = scalar_lea.vmem %s7363_s16, %s4638_s18  ;;  %v940_v4 = vld [vmem:[%s7364_s22] sm:$0xf]  ;;  %5349 = vmatprep.subr.bf16.mxu1 %v5348_v12  ;;  %vm828_vm14 = vcmp.ge.s32.totalorder %v6443_v14, 24  ;;  %v4647_v33 = vsel %vm867_vm11, 1.0, %v6139_v15  ;;  %vm881_vm15 = vmand %vm875_vm10, %vm6494_vm8  ;;  %v618_v34 = vadd.s32 8, %v6488_v29  ;;  %v919_v35 = vadd.s32 4, %v6488_v29 }
  0x9d   : > { %v938_v5 = vld [vmem:[%s613_s27] sm:$0xff]  ;;  %5008 = vmatprep.subr.msk.mxu0 %vm955_vm0, %v940_v4  ;;  %v939_v6 = vld [vmem:[%s613_s27 + $0x8] sm:$0xff]  ;;  %s6457_s27 = scalar_lea.vmem [#allocation10], %s4635_s29  ;;  %v4648_v36 = vsel %vm881_vm15, 1.0, %v6139_v15  ;;  %v928_v38 = vadd.s32 12, %v6488_v29  ;;  %vm829_vm2 = vcmp.lt.s32.totalorder %v6443_v14, 32  ;;  %vm6520_vm4 = vmand %vm769_vm12, %vm770_vm13 }
  0x9e   : > { %5010 = vmatprep.mubr.msk.f32.mxu0 %vm948_vm1, %v938_v5  ;;  %5009 = vmatpush3.msk.msra.mxu0 %vm955_vm0, %v940_v4  ;;  %v4656_v17 = vld [vmem:[%s7365_s2] ss:$0 sm:$0xff]  ;;  %v6518_v39 = vadd.f32 %v4648_v36, %v4647_v33  ;;  %vm892_vm5 = vcmp.lt.s32.totalorder %v618_v34, 12  ;;  %vm920_vm6 = vcmp.eq.s32.totalorder %v6443_v14, %v919_v35  ;;  %vm924_vm7 = vcmp.eq.s32.totalorder %v6443_v14, %v618_v34  ;;  %vm6534_vm11 = vmand %vm828_vm14, %vm829_vm2 }
  0x9f   : > { %5011 = vmatmul.mubr.msk.f32.vlgmr.msra.gmra.mrb[0].mxu0 %vm948_vm1, %v939_v6  ;;  %5351 = vmatpush3.bf16.msra.mxu1 %v5348_v12  ;;  %vm915_vm1 = vcmp.eq.s32.totalorder %v6443_v14, %v6488_v29  ;;  %vm896_vm9 = vmand %vm892_vm5, %vm6520_vm4  ;;  %v4652_v41 = vsel %vm920_vm6, 1.0, %v6139_v15  ;;  %v4653_v42 = vsel %vm924_vm7, 1.0, %v6139_v15  ;;  %vm929_vm10 = vcmp.eq.s32.totalorder %v6443_v14, %v928_v38 }
  0xa0   : > { %v4651_v37 = vsel %vm915_vm1, 1.0, %v6139_v15  ;;  %v4649_v43 = vsel %vm896_vm9, 1.0, %v6139_v15  ;;  %vm904_vm12 = vcmp.ge.s32.totalorder %v618_v34, 12  ;;  %v4654_v46 = vsel %vm929_vm10, 1.0, %v6139_v15  ;;  %vm6548_vm14 = vmpackc.low %vm1034_vm3, %vm1034_vm3 }
  0xa1   : > { %v923_v44 = vadd.f32 %v4652_v41, %v4651_v37  ;;  %vm908_vm13 = vmand %vm904_vm12, %vm6534_vm11  ;;  %v6559_v57 = vsel %vm6494_vm8, 1.0, %v6139_v15  ;;  %v6568_v60 = vsel %vm6520_vm4, 1.0, %v6139_v15  ;;  %v6578_v63 = vsel %vm6534_vm11, 1.0, %v6139_v15 }
  0xa2   : > { %v4650_v48 = vsel %vm908_vm13, 1.0, %v6139_v15  ;;  %vm1271_vm8 = vcmask 130048   ;;  %vm1744_vm15 = vcmask 523264   ;;  %vm6143_vm1 = vmmov 0  }
  0xa3   : > { %v927_v47 = vadd.f32 %v4653_v42, %v923_v44  ;;  %v6542_v49 = vadd.f32 %v4650_v48, %v4649_v43 }
  0xa5   : > { %v6544_v50 = vadd.f32 %v4654_v46, %v927_v47 }
 0x172   : > { %v5012_v18 = vpop.f32.mrb[0].mxu0 }
 0x173   : > { %v6453_v19 = vadd.f32 %v5012_v18, %v4656_v17  ;;  %v1025_v20 = vpop.f32.mrb[1].mxu0 }
 0x174   : > { %v6455_v21 = vadd.f32 %v4656_v17, %v1025_v20 }
 0x175   : > { %1036 = vst.msk [vmem:[%s6457_s27 + $0x8] sm:$0xff] %vm1034_vm3, %v6453_v19 }
 0x176   : > { %1035 = vst.msk [vmem:[%s6457_s27] sm:$0xff] %vm1034_vm3, %v6455_v21  ;;  %5021 = vmatprep.mubr.msk.f32.mxu1 %vm1034_vm3, %v6455_v21 }
 0x177   : > { %5022 = vmatmul.mubr.msk.f32.vlgmr.msra.gmra.mrb[0].mxu1 %vm1034_vm3, %v6453_v19 }
 0x24a   : > { %v5023_v24 = vpop.f32.mrb[0].mxu1 }
 0x24b   : > { %v1113_v26 = vpop.f32.mrb[1].mxu1  ;;  %v1123_v56 = vmul.f32 0.35355338, %v5023_v24 }
 0x24c   : > { %v6483_v27 = vpack.i.bf16 %v5023_v24, %v1113_v26  ;;  %v6485_v28 = vmul.f32 0.35355338, %v1113_v26 }
 0x24d   : > { %v1125_v58 = vmul.f32 %v6480_v25, %v1123_v56  ;;  %v1127_v61 = vmul.f32 %v6559_v57, %v1123_v56  ;;  %v1129_v4 = vmul.f32 %v6568_v60, %v1123_v56  ;;  %v1131_v6 = vmul.f32 %v6578_v63, %v1123_v56 }
 0x24e   : > { %5696 = vrot.lane.b32.xlu0 %v6483_v27, %s6140_s17  ;;  %v1124_v30 = vmul.f32 %v6480_v25, %v6485_v28  ;;  %v1126_v59 = vmul.f32 %v6559_v57, %v6485_v28  ;;  %v1128_v62 = vmul.f32 %v6568_v60, %v6485_v28  ;;  %v1130_v5 = vmul.f32 %v6578_v63, %v6485_v28 }
 0x250   : > { %5028 = vmatprep.mubr.msk.f32.mxu0 %vm1034_vm3, %v1124_v30 }
 0x2c0   : > { %v5697_v51 = vpop.permute.xlu0 %5696 }
 0x2c1   : > { %v5699_v52 = vunpack.i.h.bf16 %v5697_v51  ;;  %v5698_v53 = vunpack.i.l.bf16 %v5697_v51 }
 0x2c3   : > { %v5352_v55 = vpack.c.bf16 %v5699_v52, %v5698_v53 }
 0x2c5   : > { %5354 = vmatprep.subr.msk.bf16.mxu0 %vm6548_vm14, %v5352_v55 }
 0x2c6   : > { %5357 = vmatpush3.bf16.xpose.msk.msra.mxu0 %vm6548_vm14, %v5352_v55 }
 0x2cd   : > { %5029 = vmatmul.mubr.msk.f32.vlgmr.msra.gmra.mrb[2].mxu0 %vm1034_vm3, %v1125_v58 }
 0x2ce   : > { %5031 = vmatprep.mubr.msk.f32.mxu0 %vm1034_vm3, %v1126_v59 }
 0x2d1   : > { %5032 = vmatmul.mubr.msk.f32.gmra.mrb[4].mxu0 %vm1034_vm3, %v1127_v61 }
 0x2d2   : > { %5034 = vmatprep.mubr.msk.f32.mxu0 %vm1034_vm3, %v1128_v62 }
 0x2d5   : > { %5035 = vmatmul.mubr.msk.f32.gmra.mrb[6].mxu0 %vm1034_vm3, %v1129_v4 }
 0x2d6   : > { %5037 = vmatprep.mubr.msk.f32.mxu0 %vm1034_vm3, %v1130_v5 }
 0x2d9   : > { %5038 = vmatmul.mubr.msk.f32.gmra.mrb[8].mxu0 %vm1034_vm3, %v1131_v6 }
 0x3a0   : > { %v5030_v7 = vpop.f32.mrb[2].mxu0 }
 0x3a1   : > { %v1232_v8 = vpop.f32.mrb[3].mxu0  ;;  %v1275_v9 = vsel %vm1271_vm8, %v5030_v7, -inf }
 0x3a2   : > { %1276 = vmax.xlane.f32.xlu1 %v1275_v9  ;;  %v1272_v10 = vsel %vm1271_vm8, %v1232_v8, -inf }
 0x3a3   : > { %1273 = vmax.xlane.f32.xlu0 %v1272_v10 }
 0x3a4   : > { %v5033_v11 = vpop.f32.mrb[4].mxu0 }
 0x3a5   : > { %v1242_v12 = vpop.f32.mrb[5].mxu0  ;;  %v1281_v13 = vsel %vm1271_vm8, %v5033_v11, -inf }
 0x3a6   : > { %1282 = vmax.xlane.f32.xlu1 %v1281_v13  ;;  %v1278_v20 = vsel %vm1271_vm8, %v1242_v12, -inf }
 0x3a8   : > { %v5036_v17 = vpop.f32.mrb[6].mxu0 }
 0x3a9   : > { %v1252_v18 = vpop.f32.mrb[7].mxu0  ;;  %v1287_v28 = vsel %vm1271_vm8, %v5036_v17, -inf }
 0x3aa   : > { %1279 = vmax.xlane.f32.xlu1 %v1278_v20  ;;  %v1284_v30 = vsel %vm1271_vm8, %v1252_v18, -inf }
 0x3ac   : > { %v5039_v24 = vpop.f32.mrb[8].mxu0 }
 0x3ad   : > { %v1262_v26 = vpop.f32.mrb[9].mxu0  ;;  %v1293_v33 = vsel %vm1271_vm8, %v5039_v24, -inf }
 0x3ae   : > { %1288 = vmax.xlane.f32.xlu1 %v1287_v28  ;;  %v1290_v31 = vsel %vm1271_vm8, %v1262_v26, -inf }
 0x3b2   : > { %1285 = vmax.xlane.f32.xlu1 %v1284_v30 }
 0x3b6   : > { %1291 = vmax.xlane.f32.xlu1 %v1290_v31 }
 0x3ba   : > { %1294 = vmax.xlane.f32.xlu1 %v1293_v33 }
 0x42f   : > { %v1277_v34 = vpop.xlane.xlu1 %1276 }
 0x430   : > { %v1297_v35 = vsub.f32 %v5030_v7, %v1277_v34  ;;  %v1274_v36 = vpop.xlane.xlu0 %1273 }
 0x431   : > { %v1296_v37 = vsub.f32 %v1232_v8, %v1274_v36 }
 0x432   : > { %v1306_v38 = vmul.f32 1.442695, %v1297_v35 }
 0x433   : > { %v1304_v40 = vmul.f32 1.442695, %v1296_v37  ;;  %v1283_v41 = vpop.xlane.xlu1 %1282 }
 0x434   : > { %v1299_v42 = vsub.f32 %v5033_v11, %v1283_v41 }
 0x435   : > { %5725 = vpow2.f32 %v1304_v40 }
 0x436   : > { %5727 = vpow2.f32 %v1306_v38  ;;  %v1310_v43 = vmul.f32 1.442695, %v1299_v42 }
 0x437   : > { %v1280_v44 = vpop.xlane.xlu1 %1279 }
 0x438   : > { %v1298_v45 = vsub.f32 %v1242_v12, %v1280_v44  ;;  %5729 = vpow2.f32 %v1310_v43 }
 0x43a   : > { %v1308_v46 = vmul.f32 1.442695, %v1298_v45 }
 0x43b   : > { %v1289_v47 = vpop.xlane.xlu1 %1288 }
 0x43c   : > { %5731 = vpow2.f32 %v1308_v46  ;;  %v1301_v48 = vsub.f32 %v5036_v17, %v1289_v47 }
 0x43e   : > { %v1314_v51 = vmul.f32 1.442695, %v1301_v48 }
 0x43f   : > { %v5726_v52 = vpop.eup %5725  ;;  %v1286_v53 = vpop.xlane.xlu1 %1285 }
 0x440   : > { %5733 = vpow2.f32 %v1314_v51  ;;  %v1300_v55 = vsub.f32 %v1252_v18, %v1286_v53  ;;  %v1320_v56 = vsel %vm1271_vm8, %v5726_v52, 0.0  ;;  %v5728_v58 = vpop.eup %5727 }
 0x441   : > { %1321 = vadd.xlane.f32.xlu1 %v1320_v56  ;;  %v1323_v4 = vsel %vm1271_vm8, %v5728_v58, 0.0 }
 0x442   : > { %v1312_v59 = vmul.f32 1.442695, %v1300_v55  ;;  %v5730_v5 = vpop.eup %5729 }
 0x443   : > { %v1292_v61 = vpop.xlane.xlu1 %1291  ;;  %v1329_v11 = vsel %vm1271_vm8, %v5730_v5, 0.0 }
 0x444   : > { %5735 = vpow2.f32 %v1312_v59  ;;  %v1302_v62 = vsub.f32 %v1262_v26, %v1292_v61 }
 0x445   : > { %1324 = vadd.xlane.f32.xlu1 %v1323_v4 }
 0x446   : > { %v5732_v6 = vpop.eup %5731  ;;  %v1316_v7 = vmul.f32 1.442695, %v1302_v62 }
 0x447   : > { %v1295_v8 = vpop.xlane.xlu1 %1294  ;;  %v1326_v9 = vsel %vm1271_vm8, %v5732_v6, 0.0 }
 0x448   : > { %5737 = vpow2.f32 %v1316_v7  ;;  %v1303_v10 = vsub.f32 %v5039_v24, %v1295_v8  ;;  %1327 = vadd.xlane.f32.xlu0 %v1326_v9  ;;  %v1511_v9 = vld [vmem:[%s7308_s4 + $0x10] sm:$0xff] }
 0x449   : > { %1330 = vadd.xlane.f32.xlu1 %v1329_v11 }
 0x44a   : > { %v5734_v12 = vpop.eup %5733  ;;  %v1318_v13 = vmul.f32 1.442695, %v1303_v10  ;;  %v1512_v10 = vld [vmem:[%s7308_s4 + $0x18] sm:$0xff] }
 0x44b   : > { %v1335_v17 = vsel %vm1271_vm8, %v5734_v12, 0.0  ;;  %v5366_v11 = vpack.c.bf16 %v1512_v10, %v1511_v9 }
 0x44c   : > { %5739 = vpow2.f32 %v1318_v13 }
 0x44d   : > { %1336 = vadd.xlane.f32.xlu1 %v1335_v17 }
 0x44e   : > { %v5736_v18 = vpop.eup %5735 }
 0x44f   : > { %v1332_v20 = vsel %vm1271_vm8, %v5736_v18, 0.0 }
 0x450   : > { %1333 = vadd.xlane.f32.xlu0 %v1332_v20 }
 0x452   : > { %v5738_v26 = vpop.eup %5737 }
 0x453   : > { %v1338_v28 = vsel %vm1271_vm8, %v5738_v26, 0.0 }
 0x454   : > { %1339 = vadd.xlane.f32.xlu0 %v1338_v28 }
 0x456   : > { %v5740_v30 = vpop.eup %5739 }
 0x457   : > { %v1341_v24 = vsel %vm1271_vm8, %v5740_v30, 0.0 }
 0x458   : > { %1342 = vadd.xlane.f32.xlu1 %v1341_v24 }
 0x46a   : > { %5701 = vrot.lane.b32.xlu0 %v6483_v27, %s6141_s20 }
 0x4ce   : > { %v1322_v31 = vpop.xlane.xlu1 %1321 }
 0x4cf   : > { %5741 = vrcp.f32 %v1322_v31 }
 0x4d2   : > { %v1325_v33 = vpop.xlane.xlu1 %1324 }
 0x4d3   : > { %5743 = vrcp.f32 %v1325_v33 }
 0x4d5   : > { %v1328_v35 = vpop.xlane.xlu0 %1327 }
 0x4d6   : > { %v1331_v38 = vpop.xlane.xlu1 %1330  ;;  %5745 = vrcp.f32 %v1328_v35 }
 0x4d7   : > { %5747 = vrcp.f32 %v1331_v38 }
 0x4d9   : > { %v5742_v34 = vpop.eup %5741 }
 0x4da   : > { %v1352_v36 = vmul.f32 %v5742_v34, %v5726_v52  ;;  %v1337_v41 = vpop.xlane.xlu1 %1336 }
 0x4dc   : > { %5044 = vmatprep.mubr.msk.f32.mxu1 %vm1271_vm8, %v1352_v36 }
 0x4dd   : > { %v1334_v37 = vpop.xlane.xlu0 %1333  ;;  %v5744_v46 = vpop.eup %5743 }
 0x4de   : > { %5749 = vrcp.f32 %v1334_v37  ;;  %v1353_v48 = vmul.f32 %v5744_v46, %v5728_v58  ;;  %v1640_v46 = vld [vmem:[%s7311_s7 + $0x8] sm:$0xff] }
 0x4df   : > { %5751 = vrcp.f32 %v1337_v41 }
 0x4e0   : > { %v5746_v47 = vpop.eup %5745 }
 0x4e1   : > { %v1340_v40 = vpop.xlane.xlu0 %1339  ;;  %v5748_v51 = vpop.eup %5747  ;;  %v1354_v52 = vmul.f32 %v5746_v47, %v5732_v6  ;;  %v1510_v6 = vld [vmem:[%s7308_s4 + $0x8] sm:$0xff] }
 0x4e2   : > { %5753 = vrcp.f32 %v1340_v40  ;;  %v1355_v55 = vmul.f32 %v5748_v51, %v5730_v5  ;;  %v1509_v5 = vld [vmem:[%s7308_s4] sm:$0xff]  ;;  %v1642_v51 = vld [vmem:[%s7311_s7 + $0x18] sm:$0xff] }
 0x4e3   : > { %v5362_v8 = vpack.c.bf16 %v1510_v6, %v1509_v5 }
 0x4e5   : > { %v5702_v42 = vpop.permute.xlu0 %5701  ;;  %v1343_v45 = vpop.xlane.xlu1 %1342  ;;  %5363 = vmatprep.subr.bf16.mxu0 %v5362_v8 }
 0x4e6   : > { %v5704_v43 = vunpack.i.h.bf16 %v5702_v42  ;;  %v5703_v44 = vunpack.i.l.bf16 %v5702_v42  ;;  %5755 = vrcp.f32 %v1343_v45  ;;  %5365 = vmatpush3.bf16.msra.mxu0 %v5362_v8  ;;  %v1639_v45 = vld [vmem:[%s7311_s7] sm:$0xff] }
 0x4e7   : > { %5367 = vmatprep.subr.bf16.mxu0 %v5366_v11  ;;  %v5370_v47 = vpack.c.bf16 %v1640_v46, %v1639_v45  ;;  %v4682_v45 = vld [vmem:[%s7309_s5] ss:$0 sm:$0xff] }
 0x4e8   : > { %v5358_v27 = vpack.c.bf16 %v5704_v43, %v5703_v44  ;;  %v5750_v53 = vpop.eup %5749 }
 0x4e9   : > { %v5752_v56 = vpop.eup %5751  ;;  %v1356_v59 = vmul.f32 %v5750_v53, %v5736_v18  ;;  %v1731_v53 = vld [vmem:[%s7313_s9] sm:$0xff] }
 0x4ea   : > { %5359 = vmatprep.subr.bf16.mxu1 %v5358_v27  ;;  %v1357_v62 = vmul.f32 %v5752_v56, %v5734_v12  ;;  %5369 = vmatpush3.bf16.msra.mxu0 %v5366_v11  ;;  %v1733_v56 = vld [vmem:[%s7313_s9 + $0x10] sm:$0xff] }
 0x4eb   : > { %5361 = vmatpush3.bf16.msra.mxu1 %v5358_v27 }
 0x4ec   : > { %v5754_v61 = vpop.eup %5753  ;;  %5371 = vmatprep.subr.bf16.mxu1 %v5370_v47 }
 0x4ed   : > { %v1358_v7 = vmul.f32 %v5754_v61, %v5738_v26  ;;  %v1734_v61 = vld [vmem:[%s7313_s9 + $0x18] sm:$0xff] }
 0x4ee   : > { %5045 = vmatmul.mubr.msk.f32.vlgmr.msra.gmra.mrb[2].mxu1 %vm1271_vm8, %v1353_v48  ;;  %v1641_v48 = vld [vmem:[%s7311_s7 + $0x10] sm:$0xff] }
 0x4ef   : > { %5047 = vmatprep.mubr.msk.f32.mxu1 %vm1271_vm8, %v1354_v52  ;;  %5373 = vmatpush3.bf16.msra.mxu1 %v5370_v47  ;;  %v5374_v52 = vpack.c.bf16 %v1642_v51, %v1641_v48  ;;  %v4683_v48 = vld [vmem:[%s7310_s6] ss:$0 sm:$0xff] }
 0x4f0   : > { %v5756_v4 = vpop.eup %5755 }
 0x4f1   : > { %v1359_v58 = vmul.f32 %v5756_v4, %v5740_v30  ;;  %5375 = vmatprep.subr.bf16.mxu1 %v5374_v52  ;;  %v1735_v4 = vld [vmem:[%s7313_s9 + $0x20] sm:$0xff] }
 0x4f2   : > { %5048 = vmatmul.mubr.msk.f32.gmra.mrb[4].mxu1 %vm1271_vm8, %v1355_v55  ;;  %v1732_v55 = vld [vmem:[%s7313_s9 + $0x8] sm:$0xff] }
 0x4f3   : > { %5050 = vmatprep.mubr.msk.f32.mxu1 %vm1271_vm8, %v1356_v59  ;;  %5377 = vmatpush3.bf16.msra.mxu1 %v5374_v52  ;;  %v5378_v59 = vpack.c.bf16 %v1732_v55, %v1731_v53 }
 0x4f5   : > { %5379 = vmatprep.subr.bf16.mxu0 %v5378_v59 }
 0x4f6   : > { %5051 = vmatmul.mubr.msk.f32.gmra.mrb[6].mxu1 %vm1271_vm8, %v1357_v62  ;;  %v5382_v62 = vpack.c.bf16 %v1734_v61, %v1733_v56  ;;  %v1737_v56 = vld [vmem:[%s7313_s9 + $0x30] sm:$0xff] }
 0x4f7   : > { %5053 = vmatprep.mubr.msk.f32.mxu1 %vm1271_vm8, %v1358_v7  ;;  %v1736_v7 = vld [vmem:[%s7313_s9 + $0x28] sm:$0xff] }
 0x4fa   : > { %5054 = vmatmul.mubr.msk.f32.gmra.mrb[8].mxu1 %vm1271_vm8, %v1359_v58  ;;  %v5386_v58 = vpack.c.bf16 %v1736_v7, %v1735_v4 }
 0x5c1   : > { %v5046_v12 = vpop.f32.mrb[2].mxu1 }
 0x5c2   : > { %v1456_v13 = vpop.f32.mrb[3].mxu1  ;;  %v1496_v18 = vmul.f32 %v5046_v12, %v6480_v25 }
 0x5c3   : > { %v1495_v28 = vmul.f32 %v6480_v25, %v1456_v13 }
 0x5c5   : > { %v5049_v17 = vpop.f32.mrb[4].mxu1 }
 0x5c6   : > { %v1498_v20 = vmul.f32 %v5049_v17, %v6559_v57  ;;  %v1466_v26 = vpop.f32.mrb[5].mxu1 }
 0x5c7   : > { %v1497_v30 = vmul.f32 %v6559_v57, %v1466_v26 }
 0x5c8   : > { %v1504_v24 = vadd.f32 %v1498_v20, %v1496_v18 }
 0x5c9   : > { %v1503_v31 = vadd.f32 %v1497_v30, %v1495_v28  ;;  %v5052_v33 = vpop.f32.mrb[6].mxu1 }
 0x5ca   : > { %v1500_v34 = vmul.f32 %v5052_v33, %v6568_v60  ;;  %v1476_v35 = vpop.f32.mrb[7].mxu1 }
 0x5cb   : > { %v1499_v36 = vmul.f32 %v6568_v60, %v1476_v35 }
 0x5cc   : > { %v1506_v37 = vadd.f32 %v1504_v24, %v1500_v34 }
 0x5cd   : > { %v1505_v38 = vadd.f32 %v1503_v31, %v1499_v36  ;;  %v5055_v40 = vpop.f32.mrb[8].mxu1 }
 0x5ce   : > { %v1502_v41 = vmul.f32 %v5055_v40, %v6578_v63  ;;  %v1486_v42 = vpop.f32.mrb[9].mxu1 }
 0x5cf   : > { %v1501_v43 = vmul.f32 %v6578_v63, %v1486_v42 }
 0x5d0   : > { %v1508_v44 = vadd.f32 %v1506_v37, %v1502_v41 }
 0x5d1   : > { %v1507_v27 = vadd.f32 %v1505_v38, %v1501_v43 }
 0x5d3   : > { %5064 = vmatprep.mubr.msk.f32.mxu0 %vm1034_vm3, %v1507_v27 }
 0x5d4   : > { %5065 = vmatmul.mubr.msk.f32.vlgmr.msra.gmra.mrb[10].mxu0 %vm1034_vm3, %v1508_v44 }
 0x5d5   : > { %5381 = vmatpush3.bf16.msra.mxu0 %v5378_v59  ;;  %v1738_v59 = vld [vmem:[%s7313_s9 + $0x38] sm:$0xff] }
 0x5d6   : > { %5383 = vmatprep.subr.bf16.mxu0 %v5382_v62  ;;  %v5390_v61 = vpack.c.bf16 %v1738_v59, %v1737_v56 }
 0x5d9   : > { %5385 = vmatpush3.bf16.msra.mxu0 %v5382_v62  ;;  %v4684_v62 = vld [vmem:[#allocation2] ss:$0 sm:$0xff] }
 0x5da   : > { %5387 = vmatprep.subr.bf16.mxu0 %v5386_v58 }
 0x5dd   : > { %5389 = vmatpush3.bf16.msra.mxu0 %v5386_v58 }
 0x5de   : > { %5391 = vmatprep.subr.bf16.mxu0 %v5390_v61 }
 0x5e1   : > { %5393 = vmatpush3.bf16.msra.mxu0 %v5390_v61 }
 0x6a7   : > { %v5066_v5 = vpop.f32.mrb[10].mxu0 }
 0x6a8   : > { %v1595_v6 = vadd.f32 %v5066_v5, %v6453_v19  ;;  %v1585_v8 = vpop.f32.mrb[11].mxu0 }
 0x6a9   : > { %v1594_v9 = vadd.f32 %v1585_v8, %v6455_v21 }
 0x6aa   : > { %v1599_v10 = vsel %vm1034_vm3, %v1595_v6, 0.0 }
 0x6ab   : > { %v1598_v11 = vsel %vm1034_vm3, %v1594_v9, 0.0 }
 0x6ac   : > { %v1600_v12 = vadd.f32 %v1599_v10, %v1598_v11  ;;  %v4693_v10 = vld [vmem:[%s7307_s3 + $0x28] sm:$0xff] }
 0x6ae   : > { %v1601_v13 = vrot.slane %v1600_v12, 4 }
 0x6b0   : > { %v1602_v17 = vadd.f32 %v1601_v13, %v1600_v12  ;;  %v4694_v12 = vld [vmem:[%s7307_s3 + $0x30] sm:$0xff]  ;;  %v4695_v13 = vld [vmem:[%s7307_s3 + $0x38] sm:$0xff] }
 0x6b2   : > { %v1603_v18 = vrot.slane %v1602_v17, 2 }
 0x6b4   : > { %v1604_v20 = vadd.f32 %v1603_v18, %v1602_v17  ;;  %v5398_v17 = vpack.c.bf16 %v4695_v13, %v4694_v12  ;;  %v4687_v18 = vld [vmem:[#allocation5] ss:$0 sm:$0xff] }
 0x6b6   : > { %v1605_v26 = vrot.slane %v1604_v20, 1 }
 0x6b8   : > { %v1606_v28 = vadd.f32 %v1605_v26, %v1604_v20 }
 0x6ba   : > { %v1608_v30 = vmul.f32 0.0625, %v1606_v28 }
 0x6bc   : > { %v1609_v24 = vsub.f32 %v1594_v9, %v1608_v30  ;;  %v1610_v31 = vsub.f32 %v1595_v6, %v1608_v30  ;;  %v4692_v9 = vld [vmem:[%s7307_s3 + $0x20] sm:$0xff] }
 0x6bd   : > { %v5394_v11 = vpack.c.bf16 %v4693_v10, %v4692_v9 }
 0x6be   : > { %v1611_v33 = vmul.f32 %v1609_v24, %v1609_v24  ;;  %v1612_v34 = vmul.f32 %v1610_v31, %v1610_v31 }
 0x6bf   : > { %5395 = vmatprep.subr.bf16.mxu1 %v5394_v11 }
 0x6c0   : > { %v1613_v19 = vsel %vm1034_vm3, %v1611_v33, 0.0  ;;  %v1614_v21 = vsel %vm1034_vm3, %v1612_v34, 0.0 }
 0x6c1   : > { %v1615_v35 = vadd.f32 %v1614_v21, %v1613_v19 }
 0x6c3   : > { %v1616_v36 = vrot.slane %v1615_v35, 4 }
 0x6c5   : > { %v1617_v37 = vadd.f32 %v1616_v36, %v1615_v35 }
 0x6c7   : > { %v1618_v38 = vrot.slane %v1617_v37, 2 }
 0x6c9   : > { %v1619_v40 = vadd.f32 %v1618_v38, %v1617_v37 }
 0x6cb   : > { %v1620_v41 = vrot.slane %v1619_v40, 1 }
 0x6cd   : > { %v1621_v42 = vadd.f32 %v1620_v41, %v1619_v40 }
 0x6cf   : > { %v1622_v43 = vmul.f32 0.0625, %v1621_v42 }
 0x6d1   : > { %v1623_v44 = vadd.f32 1e-05, %v1622_v43 }
 0x6d3   : > { %5757 = vrsqrt.f32 %v1623_v44 }
 0x6dd   : > { %v5758_v27 = vpop.eup %5757 }
 0x6de   : > { %v1625_v46 = vmul.f32 %v5758_v27, %v1609_v24  ;;  %v1626_v47 = vmul.f32 %v5758_v27, %v1610_v31 }
 0x6e0   : > { %v1631_v51 = vmul.f32 %v4682_v45, %v1625_v46  ;;  %v1632_v52 = vmul.f32 %v4682_v45, %v1626_v47 }
 0x6e2   : > { %v1637_v53 = vadd.f32 %v4683_v48, %v1631_v51  ;;  %v1638_v55 = vadd.f32 %v4683_v48, %v1632_v52 }
 0x6e4   : > { %5075 = vmatprep.mubr.msk.f32.mxu1 %vm1034_vm3, %v1637_v53 }
 0x6e5   : > { %5076 = vmatmul.mubr.msk.f32.vlgmr.msra.gmra.mrb[10].mxu1 %vm1034_vm3, %v1638_v55 }
 0x6e6   : > { %5397 = vmatpush3.bf16.msra.mxu1 %v5394_v11 }
 0x6e7   : > { %5399 = vmatprep.subr.bf16.mxu1 %v5398_v17 }
 0x6ea   : > { %5401 = vmatpush3.bf16.msra.mxu1 %v5398_v17 }
 0x7b8   : > { %v5077_v4 = vpop.f32.mrb[10].mxu1 }
 0x7b9   : > { %v1726_v7 = vadd.f32 %v5077_v4, %v4684_v62  ;;  %v1720_v58 = vpop.f32.mrb[11].mxu1  ;;  %v4690_v4 = vld [vmem:[%s7315_s11] ss:$0 sm:$0xff] }
 0x7ba   : > { %v1721_v5 = vadd.f32 %v4684_v62, %v1720_v58 }
 0x7bb   : > { %v1730_v8 = vmax.f32 %v1726_v7, 0.0 }
 0x7bc   : > { %v1729_v6 = vmax.f32 %v1721_v5, 0.0  ;;  %v4691_v5 = vld [vmem:[%s7316_s12] ss:$0 sm:$0xff] }
 0x7be   : > { %5094 = vmatprep.mubr.msk.f32.mxu0 %vm1744_vm15, %v1729_v6 }
 0x7bf   : > { %5095 = vmatmul.mubr.msk.f32.vlgmr.msra.gmra.mrb[12].mxu0 %vm1744_vm15, %v1730_v8 }
 0x892   : > { %v5096_v20 = vpop.f32.mrb[12].mxu0 }
 0x893   : > { %v1823_v26 = vadd.f32 %v5096_v20, %v4687_v18  ;;  %v1817_v28 = vpop.f32.mrb[13].mxu0 }
 0x894   : > { %v1818_v30 = vadd.f32 %v4687_v18, %v1817_v28 }
 0x895   : > { %v1827_v24 = vadd.f32 %v1823_v26, %v1638_v55 }
 0x896   : > { %v1826_v31 = vadd.f32 %v1818_v30, %v1637_v53 }
 0x897   : > { %v1831_v33 = vsel %vm1034_vm3, %v1827_v24, 0.0 }
 0x898   : > { %v1830_v34 = vsel %vm1034_vm3, %v1826_v31, 0.0 }
 0x899   : > { %v1832_v19 = vadd.f32 %v1831_v33, %v1830_v34 }
 0x89b   : > { %v1833_v21 = vrot.slane %v1832_v19, 4 }
 0x89d   : > { %v1834_v35 = vadd.f32 %v1833_v21, %v1832_v19 }
 0x89f   : > { %v1835_v36 = vrot.slane %v1834_v35, 2 }
 0x8a1   : > { %v1836_v37 = vadd.f32 %v1835_v36, %v1834_v35 }
 0x8a3   : > { %v1837_v38 = vrot.slane %v1836_v37, 1 }
 0x8a5   : > { %v1838_v40 = vadd.f32 %v1837_v38, %v1836_v37 }
 0x8a7   : > { %v1839_v41 = vmul.f32 0.0625, %v1838_v40 }
 0x8a9   : > { %v1840_v42 = vsub.f32 %v1826_v31, %v1839_v41  ;;  %v1841_v43 = vsub.f32 %v1827_v24, %v1839_v41 }
 0x8ab   : > { %v1842_v44 = vmul.f32 %v1840_v42, %v1840_v42  ;;  %v1843_v27 = vmul.f32 %v1841_v43, %v1841_v43 }
 0x8ad   : > { %v1844_v45 = vsel %vm1034_vm3, %v1842_v44, 0.0  ;;  %v1845_v46 = vsel %vm1034_vm3, %v1843_v27, 0.0 }
 0x8ae   : > { %v1846_v47 = vadd.f32 %v1845_v46, %v1844_v45 }
 0x8b0   : > { %v1847_v48 = vrot.slane %v1846_v47, 4 }
 0x8b2   : > { %v1848_v51 = vadd.f32 %v1847_v48, %v1846_v47 }
 0x8b4   : > { %v1849_v52 = vrot.slane %v1848_v51, 2 }
 0x8b6   : > { %v1850_v53 = vadd.f32 %v1849_v52, %v1848_v51 }
 0x8b8   : > { %v1851_v55 = vrot.slane %v1850_v53, 1 }
 0x8ba   : > { %v1852_v56 = vadd.f32 %v1851_v55, %v1850_v53 }
 0x8bc   : > { %v1853_v59 = vmul.f32 0.0625, %v1852_v56 }
 0x8be   : > { %v1854_v61 = vadd.f32 1e-05, %v1853_v59 }
 0x8c0   : > { %5759 = vrsqrt.f32 %v1854_v61 }
 0x8ca   : > { %v5760_v62 = vpop.eup %5759 }
 0x8cb   : > { %v1856_v7 = vmul.f32 %v5760_v62, %v1840_v42  ;;  %v1857_v58 = vmul.f32 %v5760_v62, %v1841_v43 }
 0x8cd   : > { %v1862_v6 = vmul.f32 %v4690_v4, %v1856_v7  ;;  %v1863_v8 = vmul.f32 %v4690_v4, %v1857_v58 }
 0x8cf   : > { %v6710_v9 = vadd.f32 %v4691_v5, %v1862_v6  ;;  %v6712_v10 = vadd.f32 %v4691_v5, %v1863_v8 }
 0x8d1   : > { %5105 = vmatprep.mubr.msk.f32.mxu1 %vm1034_vm3, %v6710_v9 }
 0x8d2   : > { %5106 = vmatmul.mubr.msk.f32.vlgmr.msra.gmra.mrb[12].mxu1 %vm1034_vm3, %v6712_v10 }
 0x9a5   : > { %v5107_v11 = vpop.f32.mrb[12].mxu1 }
 0x9a6   : > { %v1947_v12 = vpop.f32.mrb[13].mxu1  ;;  %v1957_v24 = vmul.f32 0.35355338, %v5107_v11 }
 0x9a7   : > { %v6718_v13 = vpack.i.bf16 %v5107_v11, %v1947_v12  ;;  %v1956_v17 = vmul.f32 0.35355338, %v1947_v12 }
 0x9a8   : > { %v1959_v31 = vmul.f32 %v6480_v25, %v1957_v24  ;;  %v1961_v34 = vmul.f32 %v6559_v57, %v1957_v24  ;;  %v1963_v21 = vmul.f32 %v6568_v60, %v1957_v24  ;;  %v1965_v36 = vmul.f32 %v6578_v63, %v1957_v24 }
 0x9a9   : > { %5706 = vrot.lane.b32.xlu1 %v6718_v13, %s6140_s17  ;;  %v1958_v18 = vmul.f32 %v6480_v25, %v1956_v17  ;;  %v1960_v33 = vmul.f32 %v6559_v57, %v1956_v17  ;;  %v1962_v19 = vmul.f32 %v6568_v60, %v1956_v17  ;;  %v1964_v35 = vmul.f32 %v6578_v63, %v1956_v17 }
 0x9ab   : > { %5112 = vmatprep.mubr.msk.f32.mxu1 %vm1034_vm3, %v1958_v18 }
 0xa1b   : > { %v5707_v20 = vpop.permute.xlu1 %5706 }
 0xa1c   : > { %v5709_v26 = vunpack.i.h.bf16 %v5707_v20  ;;  %v5708_v28 = vunpack.i.l.bf16 %v5707_v20 }
 0xa1e   : > { %v5402_v30 = vpack.c.bf16 %v5709_v26, %v5708_v28 }
 0xa20   : > { %5404 = vmatprep.subr.msk.bf16.mxu1 %vm6548_vm14, %v5402_v30 }
 0xa21   : > { %5407 = vmatpush3.bf16.xpose.msk.msra.mxu1 %vm6548_vm14, %v5402_v30 }
 0xa28   : > { %5113 = vmatmul.mubr.msk.f32.vlgmr.msra.gmra.mrb[14].mxu1 %vm1034_vm3, %v1959_v31 }
 0xa29   : > { %5115 = vmatprep.mubr.msk.f32.mxu1 %vm1034_vm3, %v1960_v33 }
 0xa2c   : > { %5116 = vmatmul.mubr.msk.f32.gmra.mrb[16].mxu1 %vm1034_vm3, %v1961_v34 }
 0xa2d   : > { %5118 = vmatprep.mubr.msk.f32.mxu1 %vm1034_vm3, %v1962_v19 }
 0xa30   : > { %5119 = vmatmul.mubr.msk.f32.gmra.mrb[18].mxu1 %vm1034_vm3, %v1963_v21 }
 0xa31   : > { %5121 = vmatprep.mubr.msk.f32.mxu1 %vm1034_vm3, %v1964_v35 }
 0xa34   : > { %5122 = vmatmul.mubr.msk.f32.gmra.mrb[20].mxu1 %vm1034_vm3, %v1965_v36 }
 0xafb   : > { %v5114_v37 = vpop.f32.mrb[14].mxu1 }
 0xafc   : > { %v2066_v38 = vpop.f32.mrb[15].mxu1  ;;  %v2108_v40 = vsel %vm1271_vm8, %v5114_v37, -inf }
 0xafd   : > { %2109 = vmax.xlane.f32.xlu0 %v2108_v40  ;;  %v2105_v41 = vsel %vm1271_vm8, %v2066_v38, -inf }
 0xafe   : > { %2106 = vmax.xlane.f32.xlu1 %v2105_v41 }
 0xaff   : > { %v5117_v42 = vpop.f32.mrb[16].mxu1 }
 0xb00   : > { %v2076_v43 = vpop.f32.mrb[17].mxu1  ;;  %v2114_v44 = vsel %vm1271_vm8, %v5117_v42, -inf }
 0xb01   : > { %v2111_v27 = vsel %vm1271_vm8, %v2076_v43, -inf }
 0xb02   : > { %2115 = vmax.xlane.f32.xlu1 %v2114_v44  ;;  %2112 = vmax.xlane.f32.xlu0 %v2111_v27 }
 0xb03   : > { %v5120_v45 = vpop.f32.mrb[18].mxu1 }
 0xb04   : > { %v2086_v46 = vpop.f32.mrb[19].mxu1  ;;  %v2120_v47 = vsel %vm1271_vm8, %v5120_v45, -inf }
 0xb05   : > { %v2117_v48 = vsel %vm1271_vm8, %v2086_v46, -inf }
 0xb06   : > { %2121 = vmax.xlane.f32.xlu1 %v2120_v47  ;;  %2118 = vmax.xlane.f32.xlu0 %v2117_v48 }
 0xb07   : > { %v5123_v51 = vpop.f32.mrb[20].mxu1 }
 0xb08   : > { %v2096_v52 = vpop.f32.mrb[21].mxu1  ;;  %v2126_v53 = vsel %vm1271_vm8, %v5123_v51, -inf }
 0xb09   : > { %v2123_v55 = vsel %vm1271_vm8, %v2096_v52, -inf }
 0xb0a   : > { %2127 = vmax.xlane.f32.xlu1 %v2126_v53  ;;  %2124 = vmax.xlane.f32.xlu0 %v2123_v55 }
 0xb8a   : > { %v2110_v56 = vpop.xlane.xlu0 %2109 }
 0xb8b   : > { %v2130_v59 = vsub.f32 %v5114_v37, %v2110_v56  ;;  %v2107_v61 = vpop.xlane.xlu1 %2106 }
 0xb8c   : > { %v2129_v62 = vsub.f32 %v2066_v38, %v2107_v61 }
 0xb8d   : > { %v2139_v4 = vmul.f32 1.442695, %v2130_v59 }
 0xb8e   : > { %v2137_v7 = vmul.f32 1.442695, %v2129_v62 }
 0xb8f   : > { %5761 = vpow2.f32 %v2139_v4  ;;  %v2116_v58 = vpop.xlane.xlu1 %2115  ;;  %v2113_v5 = vpop.xlane.xlu0 %2112 }
 0xb90   : > { %5763 = vpow2.f32 %v2137_v7  ;;  %v2132_v6 = vsub.f32 %v5117_v42, %v2116_v58  ;;  %v2131_v8 = vsub.f32 %v2076_v43, %v2113_v5 }
 0xb92   : > { %v2143_v11 = vmul.f32 1.442695, %v2132_v6  ;;  %v2141_v12 = vmul.f32 1.442695, %v2131_v8 }
 0xb93   : > { %v2122_v17 = vpop.xlane.xlu1 %2121  ;;  %v2119_v18 = vpop.xlane.xlu0 %2118 }
 0xb94   : > { %5765 = vpow2.f32 %v2143_v11  ;;  %v2134_v20 = vsub.f32 %v5120_v45, %v2122_v17  ;;  %v2133_v26 = vsub.f32 %v2086_v46, %v2119_v18 }
 0xb95   : > { %5767 = vpow2.f32 %v2141_v12 }
 0xb96   : > { %v2147_v28 = vmul.f32 1.442695, %v2134_v20  ;;  %v2145_v30 = vmul.f32 1.442695, %v2133_v26 }
 0xb97   : > { %v2128_v24 = vpop.xlane.xlu1 %2127  ;;  %v2125_v31 = vpop.xlane.xlu0 %2124 }
 0xb98   : > { %5769 = vpow2.f32 %v2147_v28  ;;  %v2136_v33 = vsub.f32 %v5123_v51, %v2128_v24  ;;  %v2135_v34 = vsub.f32 %v2096_v52, %v2125_v31 }
 0xb99   : > { %v5762_v19 = vpop.eup %5761  ;;  %5771 = vpow2.f32 %v2145_v30 }
 0xb9a   : > { %v5764_v21 = vpop.eup %5763  ;;  %v2151_v35 = vmul.f32 1.442695, %v2136_v33  ;;  %v2149_v36 = vmul.f32 1.442695, %v2135_v34  ;;  %v2156_v37 = vsel %vm1271_vm8, %v5762_v19, 0.0 }
 0xb9b   : > { %2157 = vadd.xlane.f32.xlu1 %v2156_v37  ;;  %v2153_v38 = vsel %vm1271_vm8, %v5764_v21, 0.0  ;;  %v4717_v37 = vld [vmem:[%s7308_s4 + $0x28] sm:$0xff] }
 0xb9c   : > { %5773 = vpow2.f32 %v2151_v35  ;;  %2154 = vadd.xlane.f32.xlu0 %v2153_v38 }
 0xb9d   : > { %5775 = vpow2.f32 %v2149_v36  ;;  %v4716_v36 = vld [vmem:[%s7308_s4 + $0x20] sm:$0xff] }
 0xb9e   : > { %v5766_v40 = vpop.eup %5765  ;;  %v5412_v38 = vpack.c.bf16 %v4717_v37, %v4716_v36 }
 0xb9f   : > { %v5768_v41 = vpop.eup %5767  ;;  %v2162_v42 = vsel %vm1271_vm8, %v5766_v40, 0.0 }
 0xba0   : > { %2163 = vadd.xlane.f32.xlu1 %v2162_v42  ;;  %v2159_v43 = vsel %vm1271_vm8, %v5768_v41, 0.0  ;;  %5413 = vmatprep.subr.bf16.mxu1 %v5412_v38 }
 0xba1   : > { %2160 = vadd.xlane.f32.xlu0 %v2159_v43  ;;  %5415 = vmatpush3.bf16.msra.mxu1 %v5412_v38 }
 0xba2   : > { %v5770_v44 = vpop.eup %5769 }
 0xba3   : > { %v5772_v27 = vpop.eup %5771  ;;  %v2168_v45 = vsel %vm1271_vm8, %v5770_v44, 0.0 }
 0xba4   : > { %2169 = vadd.xlane.f32.xlu1 %v2168_v45  ;;  %v2165_v46 = vsel %vm1271_vm8, %v5772_v27, 0.0 }
 0xba5   : > { %2166 = vadd.xlane.f32.xlu0 %v2165_v46 }
 0xba6   : > { %v5774_v47 = vpop.eup %5773 }
 0xba7   : > { %v5776_v48 = vpop.eup %5775  ;;  %v2174_v51 = vsel %vm1271_vm8, %v5774_v47, 0.0 }
 0xba8   : > { %2175 = vadd.xlane.f32.xlu1 %v2174_v51  ;;  %v2171_v52 = vsel %vm1271_vm8, %v5776_v48, 0.0 }
 0xba9   : > { %2172 = vadd.xlane.f32.xlu0 %v2171_v52 }
 0xbbf   : > { %5711 = vrot.lane.b32.xlu0 %v6718_v13, %s6141_s20 }
 0xc28   : > { %v2158_v55 = vpop.xlane.xlu1 %2157 }
 0xc29   : > { %v2155_v53 = vpop.xlane.xlu0 %2154 }
 0xc2a   : > { %5777 = vrcp.f32 %v2155_v53 }
 0xc2b   : > { %5779 = vrcp.f32 %v2158_v55 }
 0xc2d   : > { %v2164_v59 = vpop.xlane.xlu1 %2163 }
 0xc2e   : > { %v2161_v56 = vpop.xlane.xlu0 %2160 }
 0xc2f   : > { %5781 = vrcp.f32 %v2161_v56 }
 0xc30   : > { %5783 = vrcp.f32 %v2164_v59 }
 0xc31   : > { %v2170_v58 = vpop.xlane.xlu1 %2169 }
 0xc32   : > { %v2167_v61 = vpop.xlane.xlu0 %2166 }
 0xc33   : > { %5785 = vrcp.f32 %v2167_v61 }
 0xc34   : > { %v5778_v62 = vpop.eup %5777  ;;  %5787 = vrcp.f32 %v2170_v58 }
 0xc35   : > { %v2185_v4 = vmul.f32 %v5778_v62, %v5764_v21  ;;  %v2176_v13 = vpop.xlane.xlu1 %2175  ;;  %v5780_v12 = vpop.eup %5779 }
 0xc36   : > { %v2173_v7 = vpop.xlane.xlu0 %2172  ;;  %v2186_v18 = vmul.f32 %v5780_v12, %v5762_v19  ;;  %v4725_v12 = vld [vmem:[%s7311_s7 + $0x28] sm:$0xff] }
 0xc37   : > { %5128 = vmatprep.mubr.msk.f32.mxu0 %vm1271_vm8, %v2185_v4  ;;  %5789 = vrcp.f32 %v2173_v7 }
 0xc38   : > { %5791 = vrcp.f32 %v2176_v13 }
 0xc39   : > { %v5782_v17 = vpop.eup %5781 }
 0xc3a   : > { %v5712_v5 = vpop.permute.xlu0 %5711  ;;  %v5784_v20 = vpop.eup %5783  ;;  %v2187_v26 = vmul.f32 %v5782_v17, %v5768_v41  ;;  %v4719_v41 = vld [vmem:[%s7308_s4 + $0x38] sm:$0xff] }
 0xc3b   : > { %v5714_v6 = vunpack.i.h.bf16 %v5712_v5  ;;  %v5713_v8 = vunpack.i.l.bf16 %v5712_v5  ;;  %v2188_v30 = vmul.f32 %v5784_v20, %v5766_v40  ;;  %v4718_v40 = vld [vmem:[%s7308_s4 + $0x30] sm:$0xff]  ;;  %v4727_v20 = vld [vmem:[%s7311_s7 + $0x38] sm:$0xff] }
 0xc3c   : > { %v5416_v42 = vpack.c.bf16 %v4719_v41, %v4718_v40 }
 0xc3d   : > { %v5408_v11 = vpack.c.bf16 %v5714_v6, %v5713_v8  ;;  %v5786_v28 = vpop.eup %5785 }
 0xc3e   : > { %v5788_v24 = vpop.eup %5787  ;;  %v2189_v31 = vmul.f32 %v5786_v28, %v5772_v27  ;;  %5417 = vmatprep.subr.bf16.mxu1 %v5416_v42  ;;  %v4731_v28 = vld [vmem:[%s7313_s9 + $0x40] sm:$0xff] }
 0xc3f   : > { %5409 = vmatprep.subr.bf16.mxu0 %v5408_v11  ;;  %v2190_v34 = vmul.f32 %v5788_v24, %v5770_v44  ;;  %5419 = vmatpush3.bf16.msra.mxu1 %v5416_v42  ;;  %v4733_v24 = vld [vmem:[%s7313_s9 + $0x50] sm:$0xff] }
 0xc40   : > { %5411 = vmatpush3.bf16.msra.mxu0 %v5408_v11  ;;  %v4724_v11 = vld [vmem:[%s7311_s7 + $0x20] sm:$0xff] }
 0xc41   : > { %v5790_v33 = vpop.eup %5789  ;;  %v5420_v17 = vpack.c.bf16 %v4725_v12, %v4724_v11  ;;  %v4722_v11 = vld [vmem:[%s7309_s5 + $0x1] ss:$0 sm:$0xff] }
 0xc42   : > { %v5792_v21 = vpop.eup %5791  ;;  %v2191_v35 = vmul.f32 %v5790_v33, %v5776_v48  ;;  %v4734_v33 = vld [vmem:[%s7313_s9 + $0x58] sm:$0xff] }
 0xc43   : > { %5129 = vmatmul.mubr.msk.f32.vlgmr.msra.gmra.mrb[14].mxu0 %vm1271_vm8, %v2186_v18  ;;  %v2192_v19 = vmul.f32 %v5792_v21, %v5774_v47  ;;  %5421 = vmatprep.subr.bf16.mxu0 %v5420_v17  ;;  %v4726_v18 = vld [vmem:[%s7311_s7 + $0x30] sm:$0xff]  ;;  %v4735_v21 = vld [vmem:[%s7313_s9 + $0x60] sm:$0xff] }
 0xc44   : > { %5131 = vmatprep.mubr.msk.f32.mxu0 %vm1271_vm8, %v2187_v26  ;;  %5423 = vmatpush3.bf16.msra.mxu0 %v5420_v17  ;;  %v5424_v26 = vpack.c.bf16 %v4727_v20, %v4726_v18  ;;  %v4723_v18 = vld [vmem:[%s7310_s6 + $0x1] ss:$0 sm:$0xff] }
 0xc46   : > { %5425 = vmatprep.subr.bf16.mxu0 %v5424_v26 }
 0xc47   : > { %5132 = vmatmul.mubr.msk.f32.gmra.mrb[16].mxu0 %vm1271_vm8, %v2188_v30  ;;  %v4732_v30 = vld [vmem:[%s7313_s9 + $0x48] sm:$0xff] }
 0xc48   : > { %5134 = vmatprep.mubr.msk.f32.mxu0 %vm1271_vm8, %v2189_v31  ;;  %5427 = vmatpush3.bf16.msra.mxu0 %v5424_v26  ;;  %v5428_v31 = vpack.c.bf16 %v4732_v30, %v4731_v28 }
 0xc4a   : > { %5429 = vmatprep.subr.bf16.mxu1 %v5428_v31 }
 0xc4b   : > { %5135 = vmatmul.mubr.msk.f32.gmra.mrb[18].mxu0 %vm1271_vm8, %v2190_v34  ;;  %v5432_v34 = vpack.c.bf16 %v4734_v33, %v4733_v24  ;;  %v4737_v24 = vld [vmem:[%s7313_s9 + $0x70] sm:$0xff] }
 0xc4c   : > { %5137 = vmatprep.mubr.msk.f32.mxu0 %vm1271_vm8, %v2191_v35  ;;  %v4736_v35 = vld [vmem:[%s7313_s9 + $0x68] sm:$0xff] }
 0xc4f   : > { %5138 = vmatmul.mubr.msk.f32.gmra.mrb[20].mxu0 %vm1271_vm8, %v2192_v19  ;;  %v5436_v19 = vpack.c.bf16 %v4736_v35, %v4735_v21 }
 0xd16   : > { %v5130_v43 = vpop.f32.mrb[14].mxu0 }
 0xd17   : > { %v2289_v44 = vpop.f32.mrb[15].mxu0  ;;  %v2329_v45 = vmul.f32 %v5130_v43, %v6480_v25 }
 0xd18   : > { %v2328_v48 = vmul.f32 %v6480_v25, %v2289_v44 }
 0xd1a   : > { %v5133_v27 = vpop.f32.mrb[16].mxu0 }
 0xd1b   : > { %v2331_v46 = vmul.f32 %v5133_v27, %v6559_v57  ;;  %v2299_v47 = vpop.f32.mrb[17].mxu0 }
 0xd1c   : > { %v2330_v51 = vmul.f32 %v6559_v57, %v2299_v47 }
 0xd1d   : > { %v2337_v52 = vadd.f32 %v2331_v46, %v2329_v45 }
 0xd1e   : > { %v2336_v53 = vadd.f32 %v2330_v51, %v2328_v48  ;;  %v5136_v55 = vpop.f32.mrb[18].mxu0 }
 0xd1f   : > { %v2333_v56 = vmul.f32 %v5136_v55, %v6568_v60  ;;  %v2309_v59 = vpop.f32.mrb[19].mxu0 }
 0xd20   : > { %v2332_v61 = vmul.f32 %v6568_v60, %v2309_v59 }
 0xd21   : > { %v2339_v62 = vadd.f32 %v2337_v52, %v2333_v56 }
 0xd22   : > { %v2338_v4 = vadd.f32 %v2336_v53, %v2332_v61  ;;  %v5139_v7 = vpop.f32.mrb[20].mxu0 }
 0xd23   : > { %v2335_v58 = vmul.f32 %v5139_v7, %v6578_v63  ;;  %v2319_v5 = vpop.f32.mrb[21].mxu0 }
 0xd24   : > { %v2334_v6 = vmul.f32 %v6578_v63, %v2319_v5 }
 0xd25   : > { %v2341_v8 = vadd.f32 %v2339_v62, %v2335_v58 }
 0xd26   : > { %v2340_v13 = vadd.f32 %v2338_v4, %v2334_v6 }
 0xd28   : > { %5148 = vmatprep.mubr.msk.f32.mxu1 %vm1034_vm3, %v2340_v13 }
 0xd29   : > { %5149 = vmatmul.mubr.msk.f32.vlgmr.msra.gmra.mrb[22].mxu1 %vm1034_vm3, %v2341_v8 }
 0xd2a   : > { %5431 = vmatpush3.bf16.msra.mxu1 %v5428_v31  ;;  %v4738_v31 = vld [vmem:[%s7313_s9 + $0x78] sm:$0xff] }
 0xd2b   : > { %5433 = vmatprep.subr.bf16.mxu1 %v5432_v34  ;;  %v5440_v33 = vpack.c.bf16 %v4738_v31, %v4737_v24 }
 0xd2e   : > { %5435 = vmatpush3.bf16.msra.mxu1 %v5432_v34  ;;  %v4728_v34 = vld [vmem:[#allocation2 + $0x1] ss:$0 sm:$0xff] }
 0xd2f   : > { %5437 = vmatprep.subr.bf16.mxu1 %v5436_v19 }
 0xd32   : > { %5439 = vmatpush3.bf16.msra.mxu1 %v5436_v19 }
 0xd33   : > { %5441 = vmatprep.subr.bf16.mxu1 %v5440_v33 }
 0xd36   : > { %5443 = vmatpush3.bf16.msra.mxu1 %v5440_v33 }
 0xdfc   : > { %v5150_v36 = vpop.f32.mrb[22].mxu1 }
 0xdfd   : > { %v2429_v37 = vadd.f32 %v5150_v36, %v6712_v10  ;;  %v2419_v38 = vpop.f32.mrb[23].mxu1 }
 0xdfe   : > { %v2428_v40 = vadd.f32 %v2419_v38, %v6710_v9 }
 0xdff   : > { %v2433_v41 = vsel %vm1034_vm3, %v2429_v37, 0.0 }
 0xe00   : > { %v2432_v42 = vsel %vm1034_vm3, %v2428_v40, 0.0 }
 0xe01   : > { %v2434_v43 = vadd.f32 %v2433_v41, %v2432_v42  ;;  %v4745_v41 = vld [vmem:[%s7307_s3 + $0x48] sm:$0xff] }
 0xe03   : > { %v2435_v44 = vrot.slane %v2434_v43, 4 }
 0xe05   : > { %v2436_v27 = vadd.f32 %v2435_v44, %v2434_v43  ;;  %v4746_v43 = vld [vmem:[%s7307_s3 + $0x50] sm:$0xff]  ;;  %v4747_v44 = vld [vmem:[%s7307_s3 + $0x58] sm:$0xff] }
 0xe07   : > { %v2437_v45 = vrot.slane %v2436_v27, 2 }
 0xe09   : > { %v2438_v46 = vadd.f32 %v2437_v45, %v2436_v27  ;;  %v5448_v27 = vpack.c.bf16 %v4747_v44, %v4746_v43  ;;  %v4739_v45 = vld [vmem:[#allocation5 + $0x1] ss:$0 sm:$0xff] }
 0xe0b   : > { %v2439_v47 = vrot.slane %v2438_v46, 1 }
 0xe0d   : > { %v2440_v48 = vadd.f32 %v2439_v47, %v2438_v46 }
 0xe0f   : > { %v2441_v51 = vmul.f32 0.0625, %v2440_v48 }
 0xe11   : > { %v2442_v52 = vsub.f32 %v2428_v40, %v2441_v51  ;;  %v2443_v53 = vsub.f32 %v2429_v37, %v2441_v51  ;;  %v4744_v40 = vld [vmem:[%s7307_s3 + $0x40] sm:$0xff] }
 0xe12   : > { %v5444_v42 = vpack.c.bf16 %v4745_v41, %v4744_v40 }
 0xe13   : > { %v2444_v55 = vmul.f32 %v2442_v52, %v2442_v52  ;;  %v2445_v56 = vmul.f32 %v2443_v53, %v2443_v53 }
 0xe14   : > { %5445 = vmatprep.subr.bf16.mxu0 %v5444_v42 }
 0xe15   : > { %v2446_v10 = vsel %vm1034_vm3, %v2444_v55, 0.0  ;;  %v2447_v9 = vsel %vm1034_vm3, %v2445_v56, 0.0 }
 0xe16   : > { %v2448_v59 = vadd.f32 %v2447_v9, %v2446_v10 }
 0xe18   : > { %v2449_v61 = vrot.slane %v2448_v59, 4 }
 0xe1a   : > { %v2450_v62 = vadd.f32 %v2449_v61, %v2448_v59 }
 0xe1c   : > { %v2451_v4 = vrot.slane %v2450_v62, 2 }
 0xe1e   : > { %v2452_v7 = vadd.f32 %v2451_v4, %v2450_v62 }
 0xe20   : > { %v2453_v58 = vrot.slane %v2452_v7, 1 }
 0xe22   : > { %v2454_v5 = vadd.f32 %v2453_v58, %v2452_v7 }
 0xe24   : > { %v2455_v6 = vmul.f32 0.0625, %v2454_v5 }
 0xe26   : > { %v2456_v8 = vadd.f32 1e-05, %v2455_v6 }
 0xe28   : > { %5793 = vrsqrt.f32 %v2456_v8 }
 0xe32   : > { %v5794_v13 = vpop.eup %5793 }
 0xe33   : > { %v2458_v12 = vmul.f32 %v5794_v13, %v2442_v52  ;;  %v2459_v17 = vmul.f32 %v5794_v13, %v2443_v53 }
 0xe35   : > { %v2464_v20 = vmul.f32 %v4722_v11, %v2458_v12  ;;  %v2465_v26 = vmul.f32 %v4722_v11, %v2459_v17 }
 0xe37   : > { %v2470_v28 = vadd.f32 %v4723_v18, %v2464_v20  ;;  %v2471_v30 = vadd.f32 %v4723_v18, %v2465_v26 }
 0xe39   : > { %5159 = vmatprep.mubr.msk.f32.mxu0 %vm1034_vm3, %v2470_v28 }
 0xe3a   : > { %5160 = vmatmul.mubr.msk.f32.vlgmr.msra.gmra.mrb[22].mxu0 %vm1034_vm3, %v2471_v30 }
 0xe3b   : > { %5447 = vmatpush3.bf16.msra.mxu0 %v5444_v42 }
 0xe3c   : > { %5449 = vmatprep.subr.bf16.mxu0 %v5448_v27 }
 0xe3f   : > { %5451 = vmatpush3.bf16.msra.mxu0 %v5448_v27 }
 0xf0d   : > { %v5161_v21 = vpop.f32.mrb[22].mxu0 }
 0xf0e   : > { %v2560_v35 = vadd.f32 %v5161_v21, %v4728_v34  ;;  %v2554_v19 = vpop.f32.mrb[23].mxu0  ;;  %v4742_v21 = vld [vmem:[%s7315_s11 + $0x1] ss:$0 sm:$0xff] }
 0xf0f   : > { %v2555_v36 = vadd.f32 %v4728_v34, %v2554_v19 }
 0xf10   : > { %v2564_v38 = vmax.f32 %v2560_v35, 0.0 }
 0xf11   : > { %v2563_v37 = vmax.f32 %v2555_v36, 0.0  ;;  %v4743_v36 = vld [vmem:[%s7316_s12 + $0x1] ss:$0 sm:$0xff] }
 0xf13   : > { %5178 = vmatprep.mubr.msk.f32.mxu1 %vm1744_vm15, %v2563_v37 }
 0xf14   : > { %5179 = vmatmul.mubr.msk.f32.vlgmr.msra.gmra.mrb[24].mxu1 %vm1744_vm15, %v2564_v38 }
 0xfe7   : > { %v5180_v46 = vpop.f32.mrb[24].mxu1 }
 0xfe8   : > { %v2657_v47 = vadd.f32 %v5180_v46, %v4739_v45  ;;  %v2651_v48 = vpop.f32.mrb[25].mxu1 }
 0xfe9   : > { %v2652_v51 = vadd.f32 %v4739_v45, %v2651_v48 }
 0xfea   : > { %v2661_v52 = vadd.f32 %v2657_v47, %v2471_v30 }
 0xfeb   : > { %v2660_v53 = vadd.f32 %v2652_v51, %v2470_v28 }
 0xfec   : > { %v2665_v55 = vsel %vm1034_vm3, %v2661_v52, 0.0 }
 0xfed   : > { %v2664_v56 = vsel %vm1034_vm3, %v2660_v53, 0.0 }
 0xfee   : > { %v2666_v10 = vadd.f32 %v2665_v55, %v2664_v56 }
 0xff0   : > { %v2667_v9 = vrot.slane %v2666_v10, 4 }
 0xff2   : > { %v2668_v59 = vadd.f32 %v2667_v9, %v2666_v10 }
 0xff4   : > { %v2669_v61 = vrot.slane %v2668_v59, 2 }
 0xff6   : > { %v2670_v62 = vadd.f32 %v2669_v61, %v2668_v59 }
 0xff8   : > { %v2671_v4 = vrot.slane %v2670_v62, 1 }
 0xffa   : > { %v2672_v7 = vadd.f32 %v2671_v4, %v2670_v62 }
 0xffc   : > { %v2673_v58 = vmul.f32 0.0625, %v2672_v7 }
 0xffe   : > { %v2674_v5 = vsub.f32 %v2660_v53, %v2673_v58  ;;  %v2675_v6 = vsub.f32 %v2661_v52, %v2673_v58 }
0x1000   : > { %v2676_v8 = vmul.f32 %v2674_v5, %v2674_v5  ;;  %v2677_v13 = vmul.f32 %v2675_v6, %v2675_v6 }
0x1002   : > { %v2678_v11 = vsel %vm1034_vm3, %v2676_v8, 0.0  ;;  %v2679_v12 = vsel %vm1034_vm3, %v2677_v13, 0.0 }
0x1003   : > { %v2680_v17 = vadd.f32 %v2679_v12, %v2678_v11 }
0x1005   : > { %v2681_v18 = vrot.slane %v2680_v17, 4 }
0x1007   : > { %v2682_v20 = vadd.f32 %v2681_v18, %v2680_v17 }
0x1009   : > { %v2683_v26 = vrot.slane %v2682_v20, 2 }
0x100b   : > { %v2684_v28 = vadd.f32 %v2683_v26, %v2682_v20 }
0x100d   : > { %v2685_v30 = vrot.slane %v2684_v28, 1 }
0x100f   : > { %v2686_v24 = vadd.f32 %v2685_v30, %v2684_v28 }
0x1011   : > { %v2687_v31 = vmul.f32 0.0625, %v2686_v24 }
0x1013   : > { %v2688_v33 = vadd.f32 1e-05, %v2687_v31 }
0x1015   : > { %5795 = vrsqrt.f32 %v2688_v33 }
0x101f   : > { %v5796_v34 = vpop.eup %5795 }
0x1020   : > { %v2690_v35 = vmul.f32 %v5796_v34, %v2674_v5  ;;  %v2691_v19 = vmul.f32 %v5796_v34, %v2675_v6 }
0x1022   : > { %v2696_v37 = vmul.f32 %v4742_v21, %v2690_v35  ;;  %v2697_v38 = vmul.f32 %v4742_v21, %v2691_v19 }
0x1024   : > { %v6864_v40 = vadd.f32 %v4743_v36, %v2696_v37  ;;  %v6866_v41 = vadd.f32 %v4743_v36, %v2697_v38 }
0x1026   : > { %5189 = vmatprep.mubr.msk.f32.mxu0 %vm1034_vm3, %v6864_v40 }
0x1027   : > { %5190 = vmatmul.mubr.msk.f32.vlgmr.msra.gmra.mrb[24].mxu0 %vm1034_vm3, %v6866_v41 }
0x10fa   : > { %v5191_v42 = vpop.f32.mrb[24].mxu0 }
0x10fb   : > { %v2781_v43 = vpop.f32.mrb[25].mxu0  ;;  %v2791_v52 = vmul.f32 0.35355338, %v5191_v42 }
0x10fc   : > { %v6872_v44 = vpack.i.bf16 %v5191_v42, %v2781_v43  ;;  %v2790_v27 = vmul.f32 0.35355338, %v2781_v43 }
0x10fd   : > { %v2793_v53 = vmul.f32 %v6480_v25, %v2791_v52  ;;  %v2795_v56 = vmul.f32 %v6559_v57, %v2791_v52  ;;  %v2797_v9 = vmul.f32 %v6568_v60, %v2791_v52  ;;  %v2799_v61 = vmul.f32 %v6578_v63, %v2791_v52 }
0x10fe   : > { %5716 = vrot.lane.b32.xlu1 %v6872_v44, %s6140_s17  ;;  %v2792_v45 = vmul.f32 %v6480_v25, %v2790_v27  ;;  %v2794_v55 = vmul.f32 %v6559_v57, %v2790_v27  ;;  %v2796_v10 = vmul.f32 %v6568_v60, %v2790_v27  ;;  %v2798_v59 = vmul.f32 %v6578_v63, %v2790_v27 }
0x1100   : > { %5196 = vmatprep.mubr.msk.f32.mxu0 %vm1034_vm3, %v2792_v45 }
0x1170   : > { %v5717_v46 = vpop.permute.xlu1 %5716 }
0x1171   : > { %v5719_v47 = vunpack.i.h.bf16 %v5717_v46  ;;  %v5718_v48 = vunpack.i.l.bf16 %v5717_v46 }
0x1173   : > { %v5452_v51 = vpack.c.bf16 %v5719_v47, %v5718_v48 }
0x1175   : > { %5454 = vmatprep.subr.msk.bf16.mxu0 %vm6548_vm14, %v5452_v51 }
0x1176   : > { %5457 = vmatpush3.bf16.xpose.msk.msra.mxu0 %vm6548_vm14, %v5452_v51 }
0x117d   : > { %5197 = vmatmul.mubr.msk.f32.vlgmr.msra.gmra.mrb[26].mxu0 %vm1034_vm3, %v2793_v53 }
0x117e   : > { %5199 = vmatprep.mubr.msk.f32.mxu0 %vm1034_vm3, %v2794_v55 }
0x1181   : > { %5200 = vmatmul.mubr.msk.f32.gmra.mrb[28].mxu0 %vm1034_vm3, %v2795_v56 }
0x1182   : > { %5202 = vmatprep.mubr.msk.f32.mxu0 %vm1034_vm3, %v2796_v10 }
0x1185   : > { %5203 = vmatmul.mubr.msk.f32.gmra.mrb[30].mxu0 %vm1034_vm3, %v2797_v9 }
0x1186   : > { %5205 = vmatprep.mubr.msk.f32.mxu0 %vm1034_vm3, %v2798_v59 }
0x1189   : > { %5206 = vmatmul.mubr.msk.f32.gmra.mrb[32].mxu0 %vm1034_vm3, %v2799_v61 }
0x1250   : > { %v5198_v62 = vpop.f32.mrb[26].mxu0 }
0x1251   : > { %v2900_v4 = vpop.f32.mrb[27].mxu0  ;;  %v2942_v7 = vsel %vm1271_vm8, %v5198_v62, -inf }
0x1252   : > { %2943 = vmax.xlane.f32.xlu0 %v2942_v7  ;;  %v2939_v58 = vsel %vm1271_vm8, %v2900_v4, -inf }
0x1253   : > { %2940 = vmax.xlane.f32.xlu1 %v2939_v58 }
0x1254   : > { %v5201_v5 = vpop.f32.mrb[28].mxu0 }
0x1255   : > { %v2910_v6 = vpop.f32.mrb[29].mxu0  ;;  %v2948_v8 = vsel %vm1271_vm8, %v5201_v5, -inf }
0x1256   : > { %v2945_v13 = vsel %vm1271_vm8, %v2910_v6, -inf }
0x1257   : > { %2949 = vmax.xlane.f32.xlu1 %v2948_v8  ;;  %2946 = vmax.xlane.f32.xlu0 %v2945_v13 }
0x1258   : > { %v5204_v11 = vpop.f32.mrb[30].mxu0 }
0x1259   : > { %v2920_v12 = vpop.f32.mrb[31].mxu0  ;;  %v2954_v17 = vsel %vm1271_vm8, %v5204_v11, -inf }
0x125a   : > { %v2951_v18 = vsel %vm1271_vm8, %v2920_v12, -inf }
0x125b   : > { %2955 = vmax.xlane.f32.xlu1 %v2954_v17  ;;  %2952 = vmax.xlane.f32.xlu0 %v2951_v18 }
0x125c   : > { %v5207_v20 = vpop.f32.mrb[32].mxu0 }
0x125d   : > { %v2930_v26 = vpop.f32.mrb[33].mxu0  ;;  %v2960_v28 = vsel %vm1271_vm8, %v5207_v20, -inf }
0x125e   : > { %v2957_v30 = vsel %vm1271_vm8, %v2930_v26, -inf }
0x125f   : > { %2961 = vmax.xlane.f32.xlu1 %v2960_v28  ;;  %2958 = vmax.xlane.f32.xlu0 %v2957_v30 }
0x12df   : > { %v2944_v24 = vpop.xlane.xlu0 %2943 }
0x12e0   : > { %v2964_v31 = vsub.f32 %v5198_v62, %v2944_v24  ;;  %v2941_v33 = vpop.xlane.xlu1 %2940 }
0x12e1   : > { %v2963_v34 = vsub.f32 %v2900_v4, %v2941_v33 }
0x12e2   : > { %v2973_v21 = vmul.f32 1.442695, %v2964_v31 }
0x12e3   : > { %v2971_v35 = vmul.f32 1.442695, %v2963_v34 }
0x12e4   : > { %5797 = vpow2.f32 %v2973_v21  ;;  %v2950_v19 = vpop.xlane.xlu1 %2949  ;;  %v2947_v36 = vpop.xlane.xlu0 %2946 }
0x12e5   : > { %5799 = vpow2.f32 %v2971_v35  ;;  %v2966_v37 = vsub.f32 %v5201_v5, %v2950_v19  ;;  %v2965_v38 = vsub.f32 %v2910_v6, %v2947_v36 }
0x12e7   : > { %v2977_v42 = vmul.f32 1.442695, %v2966_v37  ;;  %v2975_v43 = vmul.f32 1.442695, %v2965_v38 }
0x12e8   : > { %v2956_v27 = vpop.xlane.xlu1 %2955  ;;  %v2953_v45 = vpop.xlane.xlu0 %2952 }
0x12e9   : > { %5801 = vpow2.f32 %v2977_v42  ;;  %v2968_v46 = vsub.f32 %v5204_v11, %v2956_v27  ;;  %v2967_v47 = vsub.f32 %v2920_v12, %v2953_v45 }
0x12ea   : > { %5803 = vpow2.f32 %v2975_v43 }
0x12eb   : > { %v2981_v48 = vmul.f32 1.442695, %v2968_v46  ;;  %v2979_v51 = vmul.f32 1.442695, %v2967_v47 }
0x12ec   : > { %v2962_v52 = vpop.xlane.xlu1 %2961  ;;  %v2959_v53 = vpop.xlane.xlu0 %2958 }
0x12ed   : > { %5805 = vpow2.f32 %v2981_v48  ;;  %v2970_v55 = vsub.f32 %v5207_v20, %v2962_v52  ;;  %v2969_v56 = vsub.f32 %v2930_v26, %v2959_v53 }
0x12ee   : > { %v5798_v10 = vpop.eup %5797  ;;  %5807 = vpow2.f32 %v2979_v51 }
0x12ef   : > { %v5800_v9 = vpop.eup %5799  ;;  %v2985_v59 = vmul.f32 1.442695, %v2970_v55  ;;  %v2983_v61 = vmul.f32 1.442695, %v2969_v56  ;;  %v2990_v62 = vsel %vm1271_vm8, %v5798_v10, 0.0 }
0x12f0   : > { %2991 = vadd.xlane.f32.xlu1 %v2990_v62  ;;  %v2987_v4 = vsel %vm1271_vm8, %v5800_v9, 0.0  ;;  %v4769_v62 = vld [vmem:[%s7308_s4 + $0x48] sm:$0xff] }
0x12f1   : > { %5809 = vpow2.f32 %v2985_v59  ;;  %2988 = vadd.xlane.f32.xlu0 %v2987_v4 }
0x12f2   : > { %5811 = vpow2.f32 %v2983_v61  ;;  %v4768_v61 = vld [vmem:[%s7308_s4 + $0x40] sm:$0xff] }
0x12f3   : > { %v5802_v7 = vpop.eup %5801  ;;  %v5462_v4 = vpack.c.bf16 %v4769_v62, %v4768_v61 }
0x12f4   : > { %v5804_v58 = vpop.eup %5803  ;;  %v2996_v5 = vsel %vm1271_vm8, %v5802_v7, 0.0 }
0x12f5   : > { %2997 = vadd.xlane.f32.xlu1 %v2996_v5  ;;  %v2993_v6 = vsel %vm1271_vm8, %v5804_v58, 0.0  ;;  %5463 = vmatprep.subr.bf16.mxu0 %v5462_v4 }
0x12f6   : > { %2994 = vadd.xlane.f32.xlu0 %v2993_v6  ;;  %5465 = vmatpush3.bf16.msra.mxu0 %v5462_v4 }
0x12f7   : > { %v5806_v8 = vpop.eup %5805 }
0x12f8   : > { %v5808_v13 = vpop.eup %5807  ;;  %v3002_v11 = vsel %vm1271_vm8, %v5806_v8, 0.0 }
0x12f9   : > { %3003 = vadd.xlane.f32.xlu1 %v3002_v11  ;;  %v2999_v12 = vsel %vm1271_vm8, %v5808_v13, 0.0 }
0x12fa   : > { %3000 = vadd.xlane.f32.xlu0 %v2999_v12 }
0x12fb   : > { %v5810_v17 = vpop.eup %5809 }
0x12fc   : > { %v5812_v18 = vpop.eup %5811  ;;  %v3008_v20 = vsel %vm1271_vm8, %v5810_v17, 0.0 }
0x12fd   : > { %3009 = vadd.xlane.f32.xlu1 %v3008_v20  ;;  %v3005_v26 = vsel %vm1271_vm8, %v5812_v18, 0.0 }
0x12fe   : > { %3006 = vadd.xlane.f32.xlu0 %v3005_v26 }
0x1314   : > { %5721 = vrot.lane.b32.xlu0 %v6872_v44, %s6141_s20 }
0x137d   : > { %v2992_v30 = vpop.xlane.xlu1 %2991 }
0x137e   : > { %v2989_v28 = vpop.xlane.xlu0 %2988 }
0x137f   : > { %5813 = vrcp.f32 %v2989_v28 }
0x1380   : > { %5815 = vrcp.f32 %v2992_v30 }
0x1382   : > { %v2998_v31 = vpop.xlane.xlu1 %2997 }
0x1383   : > { %v2995_v24 = vpop.xlane.xlu0 %2994 }
0x1384   : > { %5817 = vrcp.f32 %v2995_v24 }
0x1385   : > { %5819 = vrcp.f32 %v2998_v31 }
0x1386   : > { %v3004_v19 = vpop.xlane.xlu1 %3003 }
0x1387   : > { %v3001_v33 = vpop.xlane.xlu0 %3000 }
0x1388   : > { %5821 = vrcp.f32 %v3001_v33 }
0x1389   : > { %v5814_v34 = vpop.eup %5813  ;;  %5823 = vrcp.f32 %v3004_v19 }
0x138a   : > { %v3019_v21 = vmul.f32 %v5814_v34, %v5800_v9  ;;  %v3010_v44 = vpop.xlane.xlu1 %3009  ;;  %v5816_v43 = vpop.eup %5815 }
0x138b   : > { %v3007_v35 = vpop.xlane.xlu0 %3006  ;;  %v3020_v45 = vmul.f32 %v5816_v43, %v5798_v10 }
0x138c   : > { %5212 = vmatprep.mubr.msk.f32.mxu1 %vm1271_vm8, %v3019_v21  ;;  %5825 = vrcp.f32 %v3007_v35 }
0x138d   : > { %5827 = vrcp.f32 %v3010_v44 }
0x138e   : > { %v5818_v27 = vpop.eup %5817 }
0x138f   : > { %v5722_v36 = vpop.permute.xlu0 %5721  ;;  %v5820_v46 = vpop.eup %5819  ;;  %v3021_v47 = vmul.f32 %v5818_v27, %v5804_v58  ;;  %v4771_v58 = vld [vmem:[%s7308_s4 + $0x58] sm:$0xff]  ;;  %v4783_v27 = vld [vmem:[%s7313_s9 + $0x80] sm:$0xff] }
0x1390   : > { %v5724_v37 = vunpack.i.h.bf16 %v5722_v36  ;;  %v5723_v38 = vunpack.i.l.bf16 %v5722_v36  ;;  %v3022_v51 = vmul.f32 %v5820_v46, %v5802_v7  ;;  %v4770_v7 = vld [vmem:[%s7308_s4 + $0x50] sm:$0xff] }
0x1391   : > { %v5466_v5 = vpack.c.bf16 %v4771_v58, %v4770_v7  ;;  %v4785_v46 = vld [vmem:[%s7313_s9 + $0x90] sm:$0xff] }
0x1392   : > { %v5458_v42 = vpack.c.bf16 %v5724_v37, %v5723_v38  ;;  %v5822_v48 = vpop.eup %5821 }
0x1393   : > { %v5824_v52 = vpop.eup %5823  ;;  %v3023_v53 = vmul.f32 %v5822_v48, %v5808_v13  ;;  %5467 = vmatprep.subr.bf16.mxu0 %v5466_v5  ;;  %v4786_v48 = vld [vmem:[%s7313_s9 + $0x98] sm:$0xff] }
0x1394   : > { %5459 = vmatprep.subr.bf16.mxu1 %v5458_v42  ;;  %v3024_v56 = vmul.f32 %v5824_v52, %v5806_v8  ;;  %5469 = vmatpush3.bf16.msra.mxu0 %v5466_v5  ;;  %v4787_v52 = vld [vmem:[%s7313_s9 + $0xa0] sm:$0xff] }
0x1395   : > { %5461 = vmatpush3.bf16.msra.mxu1 %v5458_v42  ;;  %v4779_v42 = vld [vmem:[%s7311_s7 + $0x58] sm:$0xff] }
0x1396   : > { %v5826_v55 = vpop.eup %5825 }
0x1397   : > { %v5828_v9 = vpop.eup %5827  ;;  %v3025_v59 = vmul.f32 %v5826_v55, %v5812_v18 }
0x1398   : > { %5213 = vmatmul.mubr.msk.f32.vlgmr.msra.gmra.mrb[26].mxu1 %vm1271_vm8, %v3020_v45  ;;  %v3026_v10 = vmul.f32 %v5828_v9, %v5810_v17  ;;  %v4784_v45 = vld [vmem:[%s7313_s9 + $0x88] sm:$0xff] }
0x1399   : > { %5215 = vmatprep.mubr.msk.f32.mxu1 %vm1271_vm8, %v3021_v47  ;;  %v5478_v47 = vpack.c.bf16 %v4784_v45, %v4783_v27  ;;  %v4780_v45 = vld [vmem:[#allocation2 + $0x2] ss:$0 sm:$0xff] }
0x139b   : > { %5479 = vmatprep.subr.bf16.mxu0 %v5478_v47 }
0x139c   : > { %5216 = vmatmul.mubr.msk.f32.gmra.mrb[28].mxu1 %vm1271_vm8, %v3022_v51  ;;  %v5482_v51 = vpack.c.bf16 %v4786_v48, %v4785_v46 }
0x139d   : > { %5218 = vmatprep.mubr.msk.f32.mxu1 %vm1271_vm8, %v3023_v53  ;;  %v4788_v53 = vld [vmem:[%s7313_s9 + $0xa8] sm:$0xff] }
0x139e   : > { %v5486_v55 = vpack.c.bf16 %v4788_v53, %v4787_v52 }
0x13a0   : > { %5219 = vmatmul.mubr.msk.f32.gmra.mrb[30].mxu1 %vm1271_vm8, %v3024_v56 }
0x13a1   : > { %5221 = vmatprep.mubr.msk.f32.mxu1 %vm1271_vm8, %v3025_v59 }
0x13a4   : > { %5222 = vmatmul.mubr.msk.f32.gmra.mrb[32].mxu1 %vm1271_vm8, %v3026_v10 }
0x146b   : > { %v5214_v6 = vpop.f32.mrb[26].mxu1 }
0x146c   : > { %v3123_v8 = vpop.f32.mrb[27].mxu1  ;;  %v3163_v11 = vmul.f32 %v5214_v6, %v6480_v25 }
0x146d   : > { %v3162_v18 = vmul.f32 %v6480_v25, %v3123_v8 }
0x146f   : > { %v5217_v13 = vpop.f32.mrb[28].mxu1 }
0x1470   : > { %v3165_v12 = vmul.f32 %v5217_v13, %v6559_v57  ;;  %v3133_v17 = vpop.f32.mrb[29].mxu1 }
0x1471   : > { %v3164_v20 = vmul.f32 %v6559_v57, %v3133_v17  ;;  %v4776_v57 = vld [vmem:[%s7311_s7 + $0x40] sm:$0xff] }
0x1472   : > { %v3171_v26 = vadd.f32 %v3165_v12, %v3163_v11 }
0x1473   : > { %v3170_v28 = vadd.f32 %v3164_v20, %v3162_v18  ;;  %v5220_v30 = vpop.f32.mrb[30].mxu1 }
0x1474   : > { %v3167_v24 = vmul.f32 %v5220_v30, %v6568_v60  ;;  %v3143_v31 = vpop.f32.mrb[31].mxu1 }
0x1475   : > { %v3166_v33 = vmul.f32 %v6568_v60, %v3143_v31  ;;  %v4777_v60 = vld [vmem:[%s7311_s7 + $0x48] sm:$0xff] }
0x1476   : > { %v3173_v34 = vadd.f32 %v3171_v26, %v3167_v24  ;;  %v5470_v44 = vpack.c.bf16 %v4777_v60, %v4776_v57 }
0x1477   : > { %v3172_v21 = vadd.f32 %v3170_v28, %v3166_v33  ;;  %v5223_v35 = vpop.f32.mrb[32].mxu1 }
0x1478   : > { %v3169_v19 = vmul.f32 %v5223_v35, %v6578_v63  ;;  %v3153_v36 = vpop.f32.mrb[33].mxu1  ;;  %5471 = vmatprep.subr.bf16.mxu1 %v5470_v44 }
0x1479   : > { %v3168_v37 = vmul.f32 %v6578_v63, %v3153_v36  ;;  %5473 = vmatpush3.bf16.msra.mxu1 %v5470_v44  ;;  %v4778_v63 = vld [vmem:[%s7311_s7 + $0x50] sm:$0xff]  ;;  %v4774_v36 = vld [vmem:[%s7309_s5 + $0x2] ss:$0 sm:$0xff] }
0x147a   : > { %v3175_v38 = vadd.f32 %v3173_v34, %v3169_v19  ;;  %v5474_v43 = vpack.c.bf16 %v4779_v42, %v4778_v63  ;;  %v4789_v42 = vld [vmem:[%s7313_s9 + $0xb0] sm:$0xff] }
0x147b   : > { %v3174_v25 = vadd.f32 %v3172_v21, %v3168_v37 }
0x147c   : > { %5475 = vmatprep.subr.bf16.mxu1 %v5474_v43 }
0x147d   : > { %5232 = vmatprep.mubr.msk.f32.mxu0 %vm1034_vm3, %v3174_v25  ;;  %5477 = vmatpush3.bf16.msra.mxu1 %v5474_v43  ;;  %v4775_v25 = vld [vmem:[%s7310_s6 + $0x2] ss:$0 sm:$0xff]  ;;  %v4790_v43 = vld [vmem:[%s7313_s9 + $0xb8] sm:$0xff] }
0x147e   : > { %5233 = vmatmul.mubr.msk.f32.vlgmr.msra.gmra.mrb[34].mxu0 %vm1034_vm3, %v3175_v38  ;;  %v5490_v27 = vpack.c.bf16 %v4790_v43, %v4789_v42  ;;  %v4794_v43 = vld [vmem:[%s7315_s11 + $0x2] ss:$0 sm:$0xff] }
0x147f   : > { %5481 = vmatpush3.bf16.msra.mxu0 %v5478_v47 }
0x1480   : > { %5483 = vmatprep.subr.bf16.mxu0 %v5482_v51 }
0x1483   : > { %5485 = vmatpush3.bf16.msra.mxu0 %v5482_v51 }
0x1484   : > { %5487 = vmatprep.subr.bf16.mxu0 %v5486_v55 }
0x1487   : > { %5489 = vmatpush3.bf16.msra.mxu0 %v5486_v55  ;;  %v3538_v55 = vld [vmem:[%s7317_s13] sm:$0xff] }
0x1488   : > { %5491 = vmatprep.subr.bf16.mxu0 %v5490_v27 }
0x148b   : > { %5493 = vmatpush3.bf16.msra.mxu0 %v5490_v27 }
0x1551   : > { %v5234_v56 = vpop.f32.mrb[34].mxu0 }
0x1552   : > { %v3263_v9 = vadd.f32 %v5234_v56, %v6866_v41  ;;  %v3253_v59 = vpop.f32.mrb[35].mxu0  ;;  %v3539_v56 = vld [vmem:[%s7317_s13 + $0x8] sm:$0xff] }
0x1553   : > { %v3262_v10 = vadd.f32 %v3253_v59, %v6864_v40  ;;  %v3540_v59 = vld [vmem:[%s7317_s13 + $0x10] sm:$0xff] }
0x1554   : > { %v3267_v61 = vsel %vm1034_vm3, %v3263_v9, 0.0 }
0x1555   : > { %v3266_v62 = vsel %vm1034_vm3, %v3262_v10, 0.0 }
0x1556   : > { %v3268_v4 = vadd.f32 %v3267_v61, %v3266_v62  ;;  %v6142_v62 = vmov 0.0|0.0  }
0x1558   : > { %v3269_v7 = vrot.slane %v3268_v4, 4 }
0x155a   : > { %v3270_v58 = vadd.f32 %v3269_v7, %v3268_v4  ;;  %v4791_v4 = vld [vmem:[#allocation5 + $0x2] ss:$0 sm:$0xff] }
0x155c   : > { %v3271_v5 = vrot.slane %v3270_v58, 2 }
0x155e   : > { %v3272_v6 = vadd.f32 %v3271_v5, %v3270_v58 }
0x1560   : > { %v3273_v8 = vrot.slane %v3272_v6, 1 }
0x1562   : > { %v3274_v13 = vadd.f32 %v3273_v8, %v3272_v6 }
0x1564   : > { %v3275_v11 = vmul.f32 0.0625, %v3274_v13 }
0x1566   : > { %v3276_v12 = vsub.f32 %v3262_v10, %v3275_v11  ;;  %v3277_v17 = vsub.f32 %v3263_v9, %v3275_v11  ;;  %v5494_v9 = vpack.c.bf16 %v3539_v56, %v3538_v55  ;;  %v3541_v10 = vld [vmem:[%s7317_s13 + $0x18] sm:$0xff] }
0x1567   : > { %v5498_v61 = vpack.c.bf16 %v3541_v10, %v3540_v59  ;;  %v3626_v59 = vld [vmem:[#allocation7 + $0x18] sm:$0xff] }
0x1568   : > { %v3278_v18 = vmul.f32 %v3276_v12, %v3276_v12  ;;  %v3279_v20 = vmul.f32 %v3277_v17, %v3277_v17  ;;  %5495 = vmatprep.subr.bf16.mxu1 %v5494_v9 }
0x156a   : > { %v3280_v41 = vsel %vm1034_vm3, %v3278_v18, 0.0  ;;  %v3281_v40 = vsel %vm1034_vm3, %v3279_v20, 0.0 }
0x156b   : > { %v3282_v26 = vadd.f32 %v3281_v40, %v3280_v41 }
0x156d   : > { %v3283_v28 = vrot.slane %v3282_v26, 4 }
0x156f   : > { %v3284_v30 = vadd.f32 %v3283_v28, %v3282_v26 }
0x1571   : > { %v3285_v24 = vrot.slane %v3284_v30, 2 }
0x1573   : > { %v3286_v31 = vadd.f32 %v3285_v24, %v3284_v30 }
0x1575   : > { %v3287_v33 = vrot.slane %v3286_v31, 1 }
0x1577   : > { %v3288_v34 = vadd.f32 %v3287_v33, %v3286_v31 }
0x1579   : > { %v3289_v21 = vmul.f32 0.0625, %v3288_v34 }
0x157b   : > { %v3290_v35 = vadd.f32 1e-05, %v3289_v21 }
0x157d   : > { %5829 = vrsqrt.f32 %v3290_v35 }
0x1587   : > { %v5830_v19 = vpop.eup %5829 }
0x1588   : > { %v3292_v37 = vmul.f32 %v5830_v19, %v3276_v12  ;;  %v3293_v38 = vmul.f32 %v5830_v19, %v3277_v17 }
0x158a   : > { %v3298_v57 = vmul.f32 %v4774_v36, %v3292_v37  ;;  %v3299_v60 = vmul.f32 %v4774_v36, %v3293_v38 }
0x158c   : > { %v3304_v44 = vadd.f32 %v4775_v25, %v3298_v57  ;;  %v3305_v63 = vadd.f32 %v4775_v25, %v3299_v60 }
0x158e   : > { %5243 = vmatprep.mubr.msk.f32.mxu1 %vm1034_vm3, %v3304_v44 }
0x158f   : > { %5244 = vmatmul.mubr.msk.f32.vlgmr.msra.gmra.mrb[34].mxu1 %vm1034_vm3, %v3305_v63 }
0x1590   : > { %5497 = vmatpush3.bf16.msra.mxu1 %v5494_v9  ;;  %v3625_v9 = vld [vmem:[#allocation7 + $0x10] sm:$0xff] }
0x1591   : > { %5499 = vmatprep.subr.bf16.mxu1 %v5498_v61 }
0x1594   : > { %5501 = vmatpush3.bf16.msra.mxu1 %v5498_v61 }
0x1595   : > { %5502 = vmatprep.subr.bf16.mxu1 %v6142_v62 }
0x1662   : > { %v5245_v46 = vpop.f32.mrb[34].mxu1 }
0x1663   : > { %v3394_v47 = vadd.f32 %v5245_v46, %v4780_v45  ;;  %v3388_v48 = vpop.f32.mrb[35].mxu1  ;;  %v4795_v46 = vld [vmem:[%s7316_s12 + $0x2] ss:$0 sm:$0xff] }
0x1664   : > { %v3389_v51 = vadd.f32 %v4780_v45, %v3388_v48  ;;  %v3624_v48 = vld [vmem:[#allocation7 + $0x8] sm:$0xff] }
0x1665   : > { %v3398_v53 = vmax.f32 %v3394_v47, 0.0  ;;  %v3623_v47 = vld [vmem:[#allocation7] sm:$0xff] }
0x1666   : > { %v3397_v52 = vmax.f32 %v3389_v51, 0.0  ;;  %v7022_v56 = vpack.c.bf16 %v3624_v48, %v3623_v47 }
0x1668   : > { %5262 = vmatprep.mubr.msk.f32.mxu0 %vm1744_vm15, %v3397_v52 }
0x1669   : > { %5263 = vmatmul.mubr.msk.f32.vlgmr.msra.gmra.mrb[36].mxu0 %vm1744_vm15, %v3398_v53 }
0x173c   : > { %v5264_v7 = vpop.f32.mrb[36].mxu0 }
0x173d   : > { %v3491_v58 = vadd.f32 %v5264_v7, %v4791_v4  ;;  %v3485_v5 = vpop.f32.mrb[37].mxu0  ;;  %v7033_v7 = vpack.c.bf16 %v3626_v59, %v3625_v9 }
0x173e   : > { %v3486_v6 = vadd.f32 %v4791_v4, %v3485_v5 }
0x173f   : > { %v3495_v8 = vadd.f32 %v3491_v58, %v3305_v63 }
0x1740   : > { %v3494_v13 = vadd.f32 %v3486_v6, %v3304_v44 }
0x1741   : > { %v3499_v11 = vsel %vm1034_vm3, %v3495_v8, 0.0 }
0x1742   : > { %v3498_v12 = vsel %vm1034_vm3, %v3494_v13, 0.0 }
0x1743   : > { %v3500_v17 = vadd.f32 %v3499_v11, %v3498_v12 }
0x1745   : > { %v3501_v18 = vrot.slane %v3500_v17, 4 }
0x1747   : > { %v3502_v20 = vadd.f32 %v3501_v18, %v3500_v17 }
0x1749   : > { %v3503_v41 = vrot.slane %v3502_v20, 2 }
0x174b   : > { %v3504_v40 = vadd.f32 %v3503_v41, %v3502_v20 }
0x174d   : > { %v3505_v26 = vrot.slane %v3504_v40, 1 }
0x174f   : > { %v3506_v28 = vadd.f32 %v3505_v26, %v3504_v40  ;;  %v7052_v40 = vmov 0.0   ;;  %v7054_v26 = vmov 0.0  }
0x1751   : > { %v3507_v30 = vmul.f32 0.0625, %v3506_v28  ;;  %v7059_v28 = vmov 0.0  }
0x1753   : > { %v3508_v24 = vsub.f32 %v3494_v13, %v3507_v30  ;;  %v3509_v31 = vsub.f32 %v3495_v8, %v3507_v30 }
0x1755   : > { %v3510_v33 = vmul.f32 %v3508_v24, %v3508_v24  ;;  %v3511_v34 = vmul.f32 %v3509_v31, %v3509_v31 }
0x1757   : > { %v3512_v21 = vsel %vm1034_vm3, %v3510_v33, 0.0  ;;  %v3513_v35 = vsel %vm1034_vm3, %v3511_v34, 0.0 }
0x1758   : > { %v3514_v19 = vadd.f32 %v3513_v35, %v3512_v21 }
0x175a   : > { %v3515_v36 = vrot.slane %v3514_v19, 4 }
0x175c   : > { %v3516_v37 = vadd.f32 %v3515_v36, %v3514_v19 }
0x175e   : > { %v3517_v38 = vrot.slane %v3516_v37, 2 }
0x1760   : > { %v3518_v25 = vadd.f32 %v3517_v38, %v3516_v37 }
0x1762   : > { %v3519_v57 = vrot.slane %v3518_v25, 1 }
0x1764   : > { %v3520_v60 = vadd.f32 %v3519_v57, %v3518_v25 }
0x1766   : > { %v3521_v44 = vmul.f32 0.0625, %v3520_v60 }
0x1768   : > { %v3522_v63 = vadd.f32 1e-05, %v3521_v44 }
0x176a   : > { %5831 = vrsqrt.f32 %v3522_v63 }
0x1774   : > { %v5832_v42 = vpop.eup %5831 }
0x1775   : > { %v3524_v27 = vmul.f32 %v5832_v42, %v3508_v24  ;;  %v3525_v45 = vmul.f32 %v5832_v42, %v3509_v31 }
0x1777   : > { %v3530_v51 = vmul.f32 %v4794_v43, %v3524_v27  ;;  %v3531_v52 = vmul.f32 %v4794_v43, %v3525_v45 }
0x1779   : > { %v7018_v53 = vadd.f32 %v4795_v46, %v3530_v51  ;;  %v7020_v55 = vadd.f32 %v4795_v46, %v3531_v52 }
0x177b   : > { %5273 = vmatprep.mubr.msk.f32.mxu1 %vm1034_vm3, %v7018_v53  ;;  %v3631_v10 = vsel %vm1034_vm3, %v7018_v53, 0.0  ;;  %v3632_v61 = vsel %vm1034_vm3, %v7020_v55, 0.0 }
0x177c   : > { %v3633_v4 = vadd.f32 %v3632_v61, %v3631_v10  ;;  %5274 = vmatmul.mubr.msk.f32.vlgmr.msra.gmra.mrb[36].mxu1 %vm1034_vm3, %v7020_v55 }
0x177d   : > { %5504 = vmatpush3.bf16.msra.mxu1 %v7022_v56  ;;  %5284 = vmatprep.mubr.msk.f32.mxu1 %vm6143_vm1, %v6139_v15  ;;  %v7048_v15 = vmov 0.0  }
0x177e   : > { %v3634_v58 = vrot.slane %v3633_v4, 4  ;;  %5505 = vmatprep.subr.bf16.mxu1 %v6142_v62  ;;  %v7050_v62 = vmov 0.0  }
0x1780   : > { %v3635_v5 = vadd.f32 %v3634_v58, %v3633_v4 }
0x1781   : > { %5507 = vmatpush3.bf16.msra.mxu1 %v7033_v7 }
0x1782   : > { %v3636_v6 = vrot.slane %v3635_v5, 2 }
0x1784   : > { %v3637_v8 = vadd.f32 %v3636_v6, %v3635_v5 }
0x1786   : > { %v3638_v13 = vrot.slane %v3637_v8, 1 }
0x1788   : > { %v3639_v11 = vadd.f32 %v3638_v13, %v3637_v8 }
0x178a   : > { %v3640_v12 = vmul.f32 0.0625, %v3639_v11 }
0x178c   : > { %5285 = vmatmul.mubr.msk.f32.vlgmr.msra.gmra.mrb[38].mxu1 %vm1034_vm3, %v3640_v12 }
0x184f   : > { %v7038_v17 = vpop.f32.mrb[36].mxu1 }
0x1850   : > { %v7040_v18 = vpop.f32.mrb[37].mxu1 }
0x185f   : > { %v7042_v20 = vpop.f32.mrb[38].mxu1 }
0x1860   : > { %v5286_v41 = vpop.f32.mrb[39].mxu1 }
0x1861 LB: >> { %v5509_v30 = vpack.c.bf16 %v7020_v55, %v7018_v53  ;;  %v6144_v24 = vmov 0.0|0.0   ;;  %vm6145_vm2 = vmmov 0   ;;  %v6146_v31 = vmov 0.0   ;;  %s6147_s21 = smov 96   ;;  %s6148_s24 = smov 64   ;;  %s6131_s1 = sphi %s7061_s1, %s3722_s1   ;;  %v6127_v28 = vphi %v7059_v28, %v4402_v28   ;;  %v6123_v23 = vphi %v6474_v23, %v4384_v23   ;;  %v6119_v26 = vphi %v7054_v26, %v7379_v26   ;;  %v6115_v40 = vphi %v7052_v40, %v7378_v40   ;;  %v6111_v62 = vphi %v7050_v62, %v7377_v62   ;;  %v6107_v15 = vphi %v7048_v15, %v7376_v15  }
0x1862   : >> { %5508 = vmatprep.subr.bf16.mxu0 %v6144_v24  ;;  %5291 = vmatprep.mubr.msk.f32.mxu0 %vm6145_vm2, %v6146_v31  ;;  %v5517_v21 = vpack.c.bf16 %v7038_v17, %v7040_v18  ;;  %v3811_v35 = vsub.s32 0, %v6488_v29  ;;  %v3729_v42 = vsub.f32 1.0, %v6127_v28  ;;  %vm3734_vm4 = vcmp.eq.s32.totalorder %v6443_v14, 0 }
0x1863   : >> { %5510 = vmatpush3.bf16.msra.mxu0 %v5509_v30  ;;  %5511 = vmatprep.subr.bf16.mxu1 %v6144_v24  ;;  %v5833_v52 = vpack.i.bf16 %v7038_v17, %v7040_v18  ;;  %vm4327_vm6 = vcmask 125952  }
0x1864   : >> { %5513 = vmatpush3.bf16.msra.mxu1 %v7022_v56  ;;  %5302 = vmatprep.mubr.msk.f32.mxu1 %vm6145_vm2, %v6146_v31  ;;  %v3812_v19 = vrot.slane %v7042_v20, %v3811_v35  ;;  %v7120_v43 = vsel %vm3734_vm4, 1.0, %v3729_v42 }
0x1865   : >> { %5514 = vmatprep.subr.bf16.mxu1 %v6144_v24  ;;  %5519 = vmatprep.subr.msk.bf16.mxu0 %vm6548_vm14, %v5517_v21  ;;  %vm3980_vm5 = vcmp.gt.f32.partialorder %v7120_v43, 0.5 }
0x1866   : >> { %5292 = vmatmul.mubr.msk.f32.vlgmr.msra.gmra.mrb[0].mxu0 %vm1271_vm8, %v6123_v23 }
0x1868   : >> { %5516 = vmatpush3.bf16.msra.mxu1 %v7033_v7 }
0x186c   : >> { %5522 = vmatpush3.bf16.xpose.msk.msra.mxu0 %vm6548_vm14, %v5517_v21 }
0x186d   : >> { %5527 = vmatprep.subr.bf16.mxu0 %v6144_v24 }
0x1939   : >> { %v3805_v33 = vpop.f32.mrb[0].mxu0 }
0x193a   : >> { %v5293_v34 = vpop.f32.mrb[1].mxu0  ;;  %5303 = vmatmul.mubr.msk.f32.vlgmr.msra.gmra.mrb[0].mxu1 %vm1034_vm3, %v3805_v33 }
0x1a0d   : >> { %v3882_v36 = vpop.f32.mrb[0].mxu1 }
0x1a0e   : >> { %v3883_v37 = vadd.f32 %v3882_v36, %v3812_v19  ;;  %v5304_v38 = vpop.f32.mrb[1].mxu1 }
0x1a0f   : >> { %v5534_v38 = vpack.c.bf16 %v6424_v3, %v6422_v2 }
0x1a10   : >> { %v3886_v25 = vmul.f32 0.35355338, %v3883_v37  ;;  %v5531_v37 = vpack.c.bf16 %v6420_v1, %v6418_v0 }
0x1a12   : >> { %v3888_v57 = vrot.slane %v3886_v25, 4 }
0x1a14   : >> { %v3890_v60 = vsel %vm955_vm0, %v3886_v25, %v3888_v57 }
0x1a15   : >> { %v3892_v44 = vmul.f32 %v3890_v60, %v6542_v49  ;;  %v3891_v63 = vmul.f32 %v3890_v60, %v6518_v39 }
0x1a17   : >> { %5309 = vmatprep.mubr.msk.f32.mxu0 %vm1034_vm3, %v3891_v63 }
0x1a18   : >> { %5310 = vmatmul.mubr.msk.f32.vlgmr.msra.gmra.mrb[2].mxu0 %vm1034_vm3, %v3892_v44 }
0x1a19   : >> { %5323 = vmatprep.mubr.msk.f32.mxu0 %vm6145_vm2, %v6146_v31 }
0x1aeb   : >> { %v5311_v27 = vpop.f32.mrb[2].mxu0 }
0x1aec   : >> { %v3971_v45 = vpop.f32.mrb[3].mxu0  ;;  %v3984_v48 = vsel %vm3980_vm5, %v5311_v27, -1e+09 }
0x1aed   : >> { %v3983_v46 = vsel %vm3980_vm5, %v3971_v45, -1e+09  ;;  %v3988_v51 = vsel %vm1271_vm8, %v3984_v48, -inf }
0x1aee   : >> { %v3985_v47 = vsel %vm1271_vm8, %v3983_v46, -inf }
0x1aef   : >> { %3986 = vmax.xlane.f32.xlu0 %v3985_v47 }
0x1af3   : >> { %3989 = vmax.xlane.f32.xlu0 %v3988_v51 }
0x1b09   : >> { %5834 = vrot.lane.b32.xlu0 %v5833_v52, %s6147_s21 }
0x1b7c   : >> { %v3987_v9 = vpop.xlane.xlu0 %3986 }
0x1b7d   : >> { %v3991_v59 = vsub.f32 %v3983_v46, %v3987_v9 }
0x1b7f   : >> { %v3993_v10 = vmul.f32 1.442695, %v3991_v59 }
0x1b80   : >> { %v3990_v61 = vpop.xlane.xlu0 %3989 }
0x1b81   : >> { %5843 = vpow2.f32 %v3993_v10  ;;  %v3992_v4 = vsub.f32 %v3984_v48, %v3990_v61 }
0x1b83   : >> { %v3995_v58 = vmul.f32 1.442695, %v3992_v4 }
0x1b84   : >> { %v5835_v11 = vpop.permute.xlu0 %5834 }
0x1b85   : >> { %5845 = vpow2.f32 %v3995_v58  ;;  %v5837_v12 = vunpack.i.h.bf16 %v5835_v11  ;;  %v5836_v41 = vunpack.i.l.bf16 %v5835_v11 }
0x1b87   : >> { %v5523_v30 = vpack.c.bf16 %v5837_v12, %v5836_v41 }
0x1b89   : >> { %5524 = vmatprep.subr.bf16.mxu1 %v5523_v30 }
0x1b8a   : >> { %5526 = vmatpush3.bf16.msra.mxu1 %v5523_v30 }
0x1b8b   : >> { %v5844_v5 = vpop.eup %5843  ;;  %5530 = vmatprep.subr.bf16.mxu1 %v6144_v24 }
0x1b8c   : >> { %v3997_v6 = vsel %vm1271_vm8, %v5844_v5, 0.0 }
0x1b8d   : >> { %3998 = vadd.xlane.f32.xlu1 %v3997_v6 }
0x1b8f   : >> { %v5846_v8 = vpop.eup %5845 }
0x1b90   : >> { %v4000_v13 = vsel %vm1271_vm8, %v5846_v8, 0.0 }
0x1b91   : >> { %4001 = vadd.xlane.f32.xlu1 %v4000_v13 }
0x1ba2   : >> { %5839 = vrot.lane.b32.xlu1 %v5833_v52, %s6148_s24 }
0x1c1a   : >> { %v3999_v33 = vpop.xlane.xlu1 %3998 }
0x1c1b   : >> { %5847 = vrcp.f32 %v3999_v33 }
0x1c1e   : >> { %v4002_v34 = vpop.xlane.xlu1 %4001 }
0x1c1f   : >> { %5849 = vrcp.f32 %v4002_v34 }
0x1c22   : >> { %v5840_v27 = vpop.permute.xlu1 %5839 }
0x1c23   : >> { %v5842_v45 = vunpack.i.h.bf16 %v5840_v27  ;;  %v5841_v46 = vunpack.i.l.bf16 %v5840_v27 }
0x1c25   : >> { %v5848_v21 = vpop.eup %5847  ;;  %v5537_v47 = vpack.c.bf16 %v5842_v45, %v5841_v46 }
0x1c26   : >> { %v4005_v35 = vmul.f32 %v5848_v21, %v5844_v5 }
0x1c28   : >> { %5316 = vmatprep.mubr.msk.f32.mxu1 %vm1271_vm8, %v4005_v35 }
0x1c29   : >> { %v5850_v19 = vpop.eup %5849 }
0x1c2a   : >> { %v4006_v36 = vmul.f32 %v5850_v19, %v5846_v8  ;;  %v3730_v19 = vmul.f32 %v6447_v16, %v3729_v42 }
0x1c2c   : >> { %5317 = vmatmul.mubr.msk.f32.vlgmr.msra.gmra.mrb[2].mxu1 %vm1271_vm8, %v4006_v36 }
0x1c2d   : >> { %5334 = vmatprep.mubr.msk.f32.mxu1 %vm6145_vm2, %v6146_v31  ;;  %5532 = vmatpush3.bf16.msra.mxu1 %v5531_v37 }
0x1c2e   : >> { %5533 = vmatprep.subr.bf16.mxu1 %v6144_v24 }
0x1c31   : >> { %5535 = vmatpush3.bf16.msra.mxu1 %v5534_v38  ;;  %v3731_v38 = vsel %vm1271_vm8, %v3730_v19, -inf }
0x1cff   : >> { %v5318_v25 = vpop.f32.mrb[2].mxu1 }
0x1d00   : >> { %v4095_v57 = vmul.f32 %v5318_v25, %v6542_v49  ;;  %v4085_v60 = vpop.f32.mrb[3].mxu1 }
0x1d01   : >> { %v4094_v44 = vmul.f32 %v4085_v60, %v6518_v39 }
0x1d03   : >> { %v5528_v63 = vpack.c.bf16 %v4095_v57, %v4094_v44 }
0x1d05   : >> { %5529 = vmatpush3.bf16.msra.mxu0 %v5528_v63 }
0x1d06   : >> { %5536 = vmatprep.subr.bf16.mxu0 %v6144_v24 }
0x1d08   : >> { %5324 = vmatmul.mubr.msk.f32.vlgmr.msra.gmra.mrb[4].mxu0 %vm1271_vm8, %v6544_v50 }
0x1d09   : >> { %5341 = vmatprep.mubr.msk.f32.mxu0 %vm6145_vm2, %v6146_v31 }
0x1d0e   : >> { %5539 = vmatpush3.bf16.xpose.msk.msra.mxu0 %vm6548_vm14, %v5537_v47 }
0x1ddb   : >> { %v4165_v48 = vpop.f32.mrb[4].mxu0 }
0x1ddc   : >> { %v5325_v51 = vpop.f32.mrb[5].mxu0  ;;  %5335 = vmatmul.mubr.msk.f32.vlgmr.msra.gmra.mrb[4].mxu1 %vm1034_vm3, %v4165_v48 }
0x1eaf   : >> { %v4238_v24 = vpop.f32.mrb[4].mxu1 }
0x1eb0   : >> { %v5336_v9 = vpop.f32.mrb[5].mxu1  ;;  %5342 = vmatmul.mubr.msk.f32.vlgmr.msra.gmra.mrb[6].mxu0 %vm1034_vm3, %v4238_v24 }
0x1f83   : >> { %v4319_v59 = vpop.f32.mrb[6].mxu0 }
0x1f84   : >> { %v4323_v10 = vmul.f32 0.17677669, %v4319_v59  ;;  %v5343_v61 = vpop.f32.mrb[7].mxu0 }
0x1f86   : >> { %5851 = vtanh.f32 %v4323_v10 }
0x1f90   : >> { %v5852_v52 = vpop.eup %5851 }
0x1f91   : >> { %v4325_v4 = vmul.f32 10.0, %v5852_v52 }
0x1f93   : >> { %v4326_v58 = vsel %vm3980_vm5, %v4325_v4, -1e+09 }
0x1f94   : >> { %v4328_v5 = vsel %vm4327_vm6, %v4326_v58, -inf }
0x1f95   : >> { %4329 = vmax.xlane.f32.xlu1 %v4328_v5 }
0x2022   : >> { %v4330_v6 = vpop.xlane.xlu1 %4329 }
0x2023   : >> { %v4331_v8 = vsub.f32 %v4326_v58, %v4330_v6 }
0x2025   : >> { %v4332_v13 = vmul.f32 1.442695, %v4331_v8 }
0x2027   : >> { %5853 = vpow2.f32 %v4332_v13 }
0x2031   : >> { %v5854_v11 = vpop.eup %5853 }
0x2032   : >> { %v4334_v12 = vsel %vm4327_vm6, %v5854_v11, 0.0 }
0x2033   : >> { %4335 = vadd.xlane.f32.xlu0 %v4334_v12 }
0x20c0   : >> { %v4336_v41 = vpop.xlane.xlu0 %4335 }
0x20c1   : >> { %5855 = vlog2.f32 %v4336_v41 }
0x20cb   : >> { %v5856_v30 = vpop.eup %5855 }
0x20cc   : >> { %v4338_v33 = vmul.f32 0.6931472, %v5856_v30 }
0x20ce   : >> { %v4339_v34 = vadd.f32 %v4338_v33, %v4330_v6 }
0x20d0   : >> { %v4340_v21 = vsub.f32 %v4326_v58, %v4339_v34 }
0x20d2   : >> { %v4341_v43 = vsel %vm4327_vm6, %v4340_v21, -inf }
0x20d3   : >> { %4342 = vmax.xlane.f32.xlu0 %v4341_v43 }
0x2160   : >> { %v4343_v35 = vpop.xlane.xlu0 %4342 }
0x2161   : >> { %vm4344_vm7 = vcmp.ge.f32.partialorder %v4340_v21, %v4343_v35  ;;  %v4403_v25 = vsel %vm955_vm0, %v4343_v35, 0.0 }
0x2162   : >> { %v4345_v36 = vsel %vm4344_vm7, %v6470_v22, 16.0  ;;  %v4404_v57 = vrot.slane %v4403_v25, 4 }
0x2163   : >> { %v4346_v37 = vsel %vm4327_vm6, %v4345_v36, inf }
0x2164   : >> { %4347 = vmin.xlane.f32.xlu1 %v4346_v37  ;;  %v4405_v60 = vadd.f32 %v4404_v57, %v4403_v25 }
0x2166   : >> { %v4406_v44 = vrot.slane %v4405_v60, 2 }
0x2168   : >> { %3732 = vmax.xlane.f32.xlu1 %v3731_v38  ;;  %v4407_v63 = vadd.f32 %v4406_v44, %v4405_v60 }
0x216a   : >> { %v4408_v27 = vrot.slane %v4407_v63, 1 }
0x216c   : >> { %v4409_v46 = vadd.f32 %v4408_v27, %v4407_v63 }
0x21f1   : >> { %v4348_v45 = vpop.xlane.xlu1 %4347 }
0x21f2   : >> { %vm4349_vm9 = vcmp.eq.f32.partialorder %v6470_v22, %v4348_v45 }
0x21f3   : >> { %v4813_v42 = vsel %vm4349_vm9, 1.0, %v6146_v31 }
0x21f4   : >> { %vm4352_vm10 = vcmp.gt.f32.partialorder %v4813_v42, 0.5 }
0x21f5   : >> { %v4353_v47 = vsel %vm4352_vm10, %v4343_v35, -1e+09  ;;  %v3733_v48 = vpop.xlane.xlu1 %3732 }
0x21f6   : >> { %v4354_v51 = vsel %vm4327_vm6, %v4353_v47, -inf  ;;  %v4410_v24 = vmul.f32 %v4409_v46, %v3733_v48  ;;  %v7171_v62 = vadd.f32 %v6111_v62, %v3733_v48  }
0x21f7   : >> { %v4355_v59 = vrot.slane %v4354_v51, 4 }
0x21f8   : >> { %v7374_v9 = vmov %v7171_v62  ;;  %v7174_v26 = vadd.f32 %v6119_v26, %v4410_v24  }
0x21f9   : >> { %v4356_v61 = vmax.f32 %v4354_v51, %v4355_v59  ;;  %v4417_v59 = vstv %s6131_s1  ;;  %s3722_s1 = sadd.s32 1, %s6131_s1  }
0x21fa   : >> { %v7375_v10 = vmov %v7174_v26  ;;  %vm4418_vm1 = vcmp.eq.s32.totalorder %v6443_v14, %v4417_v59  ;;  %p3719_p2 = scmp.ge.s32.totalorder %s3722_s1, 32  }
0x21fb   : >> { %v4357_v52 = vrot.slane %v4356_v61, 2  ;;  %s7380_s8 = sld [smem:[#allocation23_spill]] (%p3719_p2)  ;;  %vm4421_vm2 = vcmp.eq.s32.totalorder (%p3719_p2), %v6443_v14, 1  ;;  %vm4422_vm5 = vcmp.eq.s32.totalorder (%p3719_p2), %v6443_v14, 2  ;;  %s4822_s18 = sshll.u32 (%p3719_p2), %s6264_s28, 8 }
0x21fc   : > { %s7381_s16 = sld [smem:[#allocation30_spill]] (%p3719_p2)  ;;  %s4452_s20 = sshll.u32 (%p3719_p2), %s6457_s27, 4  ;;  %s7225_s20 = int_to_ptr.vmem [resolvable:$true] %s4452_s20 }
0x21fd   : >> { %v4358_v4 = vmax.f32 %v4356_v61, %v4357_v52  ;;  %s4434_s22 = scalar_lea.sflag (%p3719_p2), [#allocation4], %s6412_s10  ;;  %s5969_s19 = scalar_lea.vmem (%p3719_p2), %s7225_s20, 256 }
0x21fe   : > { %p5970_p3 = scmp.ne.s32.totalorder (%p3719_p2), %s7225_s20, %s5969_s19  ;;  %s6149_s0 = smov (%p3719_p2), [#allocation10]  }
0x21ff   : >> { %v4359_v58 = vrot.slane %v4358_v4, 1  ;;  %s5973_s30 = sshll.u32 (%p3719_p2), %s6149_s0, 4  ;;  %s5974_s30 = int_to_ptr.vmem [resolvable:$false] %s5973_s30 }
0x2200   : > { %s5975_s27 = scalar_lea.vmem (%p3719_p2), %s5974_s30, 512  ;;  %p5976_p11 = scmp.lt.s32.totalorder (%p3719_p2), %s7225_s20, %s5974_s30 }
0x2201   : >> { %v4360_v5 = vmax.f32 %v4358_v4, %v4359_v58  ;;  %v4423_v4 = vsel (%p3719_p2), %vm4422_vm5, %v7374_v9, 0.0  ;;  %p7382_p4 = scmp.ne.s32.totalorder (%p3719_p2), %s7380_s8, 0  ;;  %p5977_p13 = scmp.lt.s32.totalorder (%p3719_p2), %s5975_s27, %s5969_s19 }
0x2202   : > { %s7222_s17 = scalar_lea.hbm (%p3719_p2), %s7381_s16, %s4822_s18 }
0x2203   : >> { %vm4361_vm11 = vcmp.ge.f32.partialorder %v4353_v47, %v4360_v5  ;;  %p5971_p7 = pnand (%p3719_p2), %p5970_p3, %p7382_p4  ;;  %p5978_p1 = por (%p3719_p2), %p5977_p13, %p5976_p11 }
0x2204   : >> { %vm4362_vm12 = vmand %vm4352_vm10, %vm4361_vm11 }
0x2205   : >> { %v4363_v6 = vsel %vm4362_vm12, %v937_v32, 4.0  ;;  %p5972_p8 = pneg (%p3719_p2), %p5971_p7 }
0x2206   : >> { %v4364_v8 = vsel %vm4327_vm6, %v4363_v6, inf }
0x2207   : >> { %v4365_v13 = vrot.slane %v4364_v8, 4  ;;  %p5979_p0 = pnand (%p3719_p2), %p5978_p1, %p5972_p8 }
0x2209   : >> { %v4366_v11 = vmin.f32 %v4364_v8, %v4365_v13 }
0x220b   : >> { %v4367_v62 = vrot.slane %v4366_v11, 2 }
0x220d   : >> { %v4368_v12 = vmin.f32 %v4366_v11, %v4367_v62  ;;  %v7377_v62 = vmov %v7374_v9 }
0x220f   : >> { %v4369_v41 = vrot.slane %v4368_v12, 1 }
0x2211   : >> { %v4370_v30 = vmin.f32 %v4368_v12, %v4369_v41 }
0x2213   : >> { %vm4371_vm13 = vcmp.eq.f32.partialorder %v4370_v30, %v937_v32 }
0x2214   : >> { %v4814_v26 = vsel %vm4371_vm13, 1.0, %v6146_v31 }
0x2215   : >> { %v4376_v33 = vsel %vm3734_vm4, 1.0, %v4814_v26  ;;  %v7379_v26 = vmov %v7375_v10 }
0x2216   : >> { %v4377_v34 = vmul.f32 %v4813_v42, %v4376_v33 }
0x2218   : >> { %v4378_v21 = vsel %vm4327_vm6, %v4377_v34, 0.0 }
0x2219   : >> { %4379 = vadd.xlane.f32.xlu0 %v4378_v21 }
0x22a6   : >> { %v4380_v43 = vpop.xlane.xlu0 %4379 }
0x22a7   : >> { %vm4381_vm15 = vcmp.gt.f32.partialorder %v4380_v43, 0.5  ;;  %v4385_v35 = vsub.f32 1.0, %v4380_v43 }
0x22a8   : >> { %v4384_v23 = vsel %vm4381_vm15, %v4813_v42, %v6123_v23  }
0x22a9   : >> { %v4386_v19 = vsel %vm955_vm0, %v4385_v35, 0.0  ;;  %v4413_v36 = vmul.f32 %v4384_v23, %v6470_v22  ;;  %v4394_v37 = vsel %vm4327_vm6, %v4384_v23, -inf }
0x22aa   : >> { %v4387_v38 = vrot.slane %v4386_v19, 4  ;;  %v4395_v31 = vrot.slane %v4394_v37, 4 }
0x22ab   : >> { %v4414_v25 = vsel %vm4327_vm6, %v4413_v36, 0.0  ;;  %vm4426_vm6 = vcmask (%p3719_p2), 1040384  }
0x22ac   : >> { %v4388_v57 = vadd.f32 %v4387_v38, %v4386_v19  ;;  %4415 = vadd.xlane.f32.xlu0 %v4414_v25  ;;  %v4396_v60 = vmax.f32 %v4394_v37, %v4395_v31 }
0x22ae   : >> { %v4389_v44 = vrot.slane %v4388_v57, 2  ;;  %v4397_v63 = vrot.slane %v4396_v60, 2 }
0x22b0   : >> { %v4390_v27 = vadd.f32 %v4389_v44, %v4388_v57  ;;  %v4398_v45 = vmax.f32 %v4396_v60, %v4397_v63 }
0x22b2   : >> { %v4391_v46 = vrot.slane %v4390_v27, 1  ;;  %v4399_v42 = vrot.slane %v4398_v45, 1 }
0x22b4   : >> { %v4392_v47 = vadd.f32 %v4391_v46, %v4390_v27  ;;  %v4400_v48 = vmax.f32 %v4398_v45, %v4399_v42 }
0x22b6   : >> { %v4393_v51 = vadd.f32 %v6115_v40, %v4392_v47   ;;  %v4401_v24 = vmax.f32 %v6127_v28, %v4400_v48 }
0x22b8   : >> { %v4402_v28 = vsel %vm3734_vm4, 0.0, %v4401_v24   ;;  %v7378_v40 = vmov %v4393_v51 }
0x22b9   : > { %v4424_v28 = vsel (%p3719_p2), %vm4421_vm2, %v4393_v51, %v4423_v4 }
0x22ba   : > { %v4425_v0 = vsel (%p3719_p2), %vm3734_vm4, %v7375_v10, %v4424_v28 }
0x22bb   : > { %v4427_v1 = vsel (%p3719_p2), %vm4426_vm6, %v4425_v0, 0.0 }
0x2335   : > { %3721 = sbr.rel (!%p3719_p2) target bundleno = 6241 (0x1861), region = 168 }
0x2339   : >> { %v4416_v61 = vpop.xlane.xlu0 %4415 }
0x233a   : >> { %v4419_v52 = vsel %vm4418_vm1, %v4416_v61, %v6107_v15  }
0x233b   : >> { %v7376_v15 = vmov %v4419_v52 }
0x233c   : > { %5982 = shalt.err (!%p5979_p0)
}
0x233d   : > { %s5983_s1 = scalar_lea.hbm %s7222_s17, 256  ;;  %s5987_s18 = scalar_lea.hbm %s7381_s16, 512 }
0x233e   : > { %p5984_p6 = scmp.ne.s32.totalorder %s7222_s17, %s5983_s1  ;;  %p5988_p12 = scmp.lt.u32.totalorder %s7222_s17, %s7381_s16 }
0x233f   : > { %p5989_p10 = scmp.lt.u32.totalorder %s5987_s18, %s5983_s1  ;;  %p5991_p3 = scmp.lt.u32.totalorder %s5983_s1, %s7222_s17 }
0x2340   : > { %p5985_p5 = pnand %p5984_p6, %p7382_p4 }
0x2341   : > { %p5990_p2 = por %p5989_p10, %p5988_p12 }
0x2342   : > { %p5986_p9 = pneg %p5985_p5 }
0x2343   : > { %p5992_p7 = por %p5991_p3, %p5990_p2 }
0x2345   : > { %p5993_p8 = pnand %p5992_p7, %p5986_p9 }
0x2347   : > { %5996 = shalt.err (!%p5993_p8)
}
0x2348   : > { %s6150_s19 = smov 128   ;;  %s6151_s0 = smov 8   ;;  %v4429_v2 = vrot.slane %v4427_v1, 4 }
0x2349   : > { %5556 = dma.vmem_to_hbm [thread:$0]  (%p7382_p4), %s7225_s20, 256, %s7222_s17, %s4434_s22, %s6150_s19, %s6150_s19, %s6151_s0  }
0x234a   : > { %s4819_s30 = sshll.u32 %s6264_s28, 7  ;;  %s4468_s27 = sshll.u32 %s7046_s26, 4  ;;  %v4431_v3 = vsel %vm955_vm0, %v4419_v52, %v4429_v2  ;;  %s7261_s27 = int_to_ptr.vmem [resolvable:$true] %s4468_s27 }
0x234b   : > { %s7383_s24 = sld [smem:[#allocation31_spill]]  ;;  %4432 = vst [vmem:[%s7046_s26] sm:$0xff] %v4431_v3  ;;  %s4439_s23 = scalar_lea.sflag [#allocation12], %s6412_s10 }
0x234c   : > { %s5997_s2 = scalar_lea.vmem %s7261_s27, 128  ;;  %s6152_s28 = smov [#allocation11]  }
0x234d   : > { %p5998_p11 = scmp.ne.s32.totalorder %s7261_s27, %s5997_s2  ;;  %s6001_s17 = sshll.u32 %s6152_s28, 4  ;;  %s6002_s17 = int_to_ptr.vmem [resolvable:$false] %s6001_s17 }
0x234e   : > { %s6003_s20 = scalar_lea.vmem %s6002_s17, 256  ;;  %p6004_p0 = scmp.lt.s32.totalorder %s7261_s27, %s6002_s17 }
0x234f   : > { %p5999_p13 = pnand %p5998_p11, %p7382_p4  ;;  %p6005_p6 = scmp.lt.s32.totalorder %s6003_s20, %s5997_s2 }
0x2351   : > { %s7384_s18 = smov %s7383_s24  ;;  %s7259_s29 = scalar_lea.hbm %s7383_s24, %s4819_s30 }
0x2352   : > { %p6000_p1 = pneg %p5999_p13  ;;  %p6006_p5 = por %p6005_p6, %p6004_p0 }
0x2354   : > { %p6007_p9 = pnand %p6006_p5, %p6000_p1 }
0x2356   : > { %6010 = shalt.err (!%p6007_p9)
}
0x2357   : > { %s6011_s10 = scalar_lea.hbm %s7259_s29, 128  ;;  %s6015_s19 = scalar_lea.hbm %s7384_s18, 256 }
0x2358   : > { %p6012_p12 = scmp.ne.s32.totalorder %s7259_s29, %s6011_s10  ;;  %p6016_p3 = scmp.lt.u32.totalorder %s7259_s29, %s7384_s18 }
0x2359   : > { %p6017_p7 = scmp.lt.u32.totalorder %s6015_s19, %s6011_s10  ;;  %p6019_p11 = scmp.lt.u32.totalorder %s6011_s10, %s7259_s29 }
0x235a   : > { %p6013_p10 = pnand %p6012_p12, %p7382_p4 }
0x235b   : > { %p6018_p8 = por %p6017_p7, %p6016_p3 }
0x235c   : > { %p6014_p2 = pneg %p6013_p10 }
0x235d   : > { %p6020_p13 = por %p6019_p11, %p6018_p8 }
0x235f   : > { %p6021_p1 = pnand %p6020_p13, %p6014_p2 }
0x2361   : > { %6024 = shalt.err (!%p6021_p1)
}
0x2362   : > { %5557 = dma.vmem_to_hbm [thread:$0]  (%p7382_p4), %s7261_s27, 128, %s7259_s29, %s4439_s23  }
0x2363 PF: > { %s7385_s2 = sld [smem:[#allocation20_spill]]  ;;  %s7386_s1 = sld [smem:[#allocation18_spill]] }
0x2364   : > { %s7387_s21 = sld [smem:[#allocation24_spill]] }
0x2369   : > { %p5588_p0 = scmp.ge.s32.totalorder %s7385_s2, 2  ;;  %s4480_s24 = sand.u32 1, %s7386_s1  }
0x236a   : > { %p7388_p6 = scmp.ne.s32.totalorder %s7387_s21, 0  ;;  %s4481_s28 = scalar_lea.sflag [#allocation4], %s4480_s24 }
0x236c   : > { %p5574_p5 = pnand %p5588_p0, %p7388_p6 }
0x236e   : > { %6082 = dma.done.wait (!%p5574_p5), %s4481_s28, 256  }
0x236f   : > { %6084 = vsyncadd (!%p5574_p5), %s4481_s28, 4294967040  ;;  %s4490_s17 = scalar_lea.sflag [#allocation12], %s4480_s24 }
0x2370   : > { %6086 = dma.done.wait (!%p5574_p5), %s4490_s17, 128  }
0x2371   : > { %6088 = vsyncadd (!%p5574_p5), %s4490_s17, 4294967168  ;;  %s7389_s27 = sld [smem:[#allocation21_spill]]  ;;  %s7390_s8 = sld [smem:[#allocation19_spill]] }
0x2372   : > { %s7391_s26 = sld [smem:[#allocation22_spill]]  ;;  %s7392_s24 = smov %s6095_s25 }
0x2377   : > { %p34_p4 = scmp.ge.s32.totalorder %s7389_s27, 4   ;;  %s7393_s25 = smov %s7390_s8 }
0x2379   :  { %36 = sbr.rel (!%p34_p4) target bundleno = 16 (0x10), region = 179 }
0x2380   :  { %4495 = vsyncpa [#allocation3], 1 }
0x2381   :  { %4497 = vsyncpa [#allocation3 + $0x1], 1 }
0x2382   :  { %4498 = vsyncpa [#allocation6], 1 }
0x2383   :  { %4499 = vsyncpa [#allocation9], 1 }
0x2384   :  { %4500 = vsyncpa [#allocation4], 1 }
0x2385   :  { %4502 = vsyncpa [#allocation4 + $0x1], 1 }
0x2386   :  { %4503 = vsyncpa [#allocation12], 1 }
0x2387   :  { %4505 = vsyncpa [#allocation12 + $0x1], 1 }

</bundles_post_ra>
